<compile_context>
chip_gen: v5e
topology: v5e:2x2
jax: 0.10.0
libtpu: 0.0.40
codegen_flags: <defaults>
</compile_context>

<pallas_src>
import jax
import jax.numpy as jnp
from jax.experimental import pallas as pl
from jax.experimental.pallas import tpu as pltpu

HIDDEN = 1536     # dinov2-giant hidden size
PATCH = 14        # dinov2 patch size
IN_CH = 3
LN_EPS = 1e-6
LANE = 128


def _round_up(x, m):
    return ((x + m - 1) // m) * m


def _stem_kernel(p_ref, w_ref, pos_ref, g_ref, beta_ref, o_ref):
    # p_ref:   (tn, Kp)      bf16 im2col'ed patches (K zero-padded to Kp)
    # w_ref:   (Kp, HIDDEN)  bf16 flattened conv weight (constant index -> resident)
    # pos_ref: (tn, HIDDEN)  bf16 patch-token pos-embeddings with conv bias folded in
    # g_ref / beta_ref: (1, HIDDEN) f32 LayerNorm affine params
    h = jnp.dot(p_ref[...], w_ref[...], preferred_element_type=jnp.float32)
    h = h + pos_ref[...].astype(jnp.float32)
    # Centered two-pass LayerNorm statistics (kept for numerical stability; the
    # one-pass sum/sum-of-squares variant only pays off if vld slots saturate).
    mean = jnp.mean(h, axis=-1, keepdims=True)
    cen = h - mean
    var = jnp.mean(cen * cen, axis=-1, keepdims=True)
    y = cen * jax.lax.rsqrt(var + LN_EPS)
    o_ref[...] = (y * g_ref[...] + beta_ref[...]).astype(o_ref.dtype)


def encoder_dinov2_giant_forward(x, conv_w, conv_b, pos_embed, ln_gamma, ln_beta,
                                 *, tn=512, out_dtype=jnp.float32):
    """Pallas implementation of EncoderDinov2Giant.forward (feature_maps[0]).

    tn: token-tile size (512 for v6e/v7x; 256 is a good choice on v5e).
    out_dtype: feature-map dtype; bf16 halves the largest HBM write if the
               downstream consumer tolerates it (default f32 matches PyTorch).
    """
    B, C_in, H, W = x.shape
    assert C_in == IN_CH and H % PATCH == 0 and W % PATCH == 0
    Hp, Wp = H // PATCH, W // PATCH
    T = Hp * Wp                           # patch tokens per image
    K = C_in * PATCH * PATCH              # 588
    Kp = _round_up(K, LANE)               # 640 = 5*128, lane-aligned MXU tiles

    # Token tiling: biggest sublane-aligned tile that fits, clamped for small T.
    tn_eff = min(tn, _round_up(T, 8))
    if B == 1 and T > 8:
        # v7x megacore: single image -> make the token axis give >= 2 parallel tiles.
        tn_eff = min(tn_eff, _round_up(pl.cdiv(T, 2), 8))
    tn_eff = max(8, (tn_eff // 8) * 8)
    T_pad = pl.cdiv(T, tn_eff) * tn_eff   # pad tokens with zero rows

    # --- glue: im2col of the stride-14 / kernel-14 conv (non-overlapping patches),
    # done in bf16; the single jnp.pad (token + K padding) fuses into the im2col
    # transpose copy, so no extra HBM pass is materialized.  OIHW weight flattening.
    patches = x.astype(jnp.bfloat16).reshape(B, C_in, Hp, PATCH, Wp, PATCH)
    patches = patches.transpose(0, 2, 4, 1, 3, 5).reshape(B, T, K)
    patches = jnp.pad(patches, ((0, 0), (0, T_pad - T), (0, Kp - K)))

    w2d = conv_w.reshape(HIDDEN, K).T.astype(jnp.bfloat16)      # (K, HIDDEN)
    w2d = jnp.pad(w2d, ((0, Kp - K), (0, 0)))                   # (Kp, HIDDEN)

    # CLS token is concatenated then dropped after the per-token LayerNorm, so it
    # never affects feature_maps[0]; only patch-token position embeddings matter.
    # Conv bias is folded into the bf16 pos table (values ~0.02, added before
    # LayerNorm -> negligible accuracy cost, halves this input stream and drops
    # the bias operand entirely).
    # TODO(synk): bicubic interpolation of position embeddings for input sizes
    # that don't match the pretrained pos-embedding grid (identity case only).
    pos_patch = (pos_embed[0, 1:1 + T, :].astype(jnp.float32)
                 + conv_b.reshape(1, HIDDEN).astype(jnp.float32)).astype(jnp.bfloat16)
    pos_patch = jnp.pad(pos_patch, ((0, T_pad - T), (0, 0)))    # (T_pad, HIDDEN)

    gamma2d = ln_gamma.reshape(1, HIDDEN).astype(jnp.float32)
    beta2d = ln_beta.reshape(1, HIDDEN).astype(jnp.float32)

    # Token tiles OUTER, batch INNER: the pos block index is constant over the
    # inner axis, so its tile is fetched once per token tile (not once per image).
    grid = (T_pad // tn_eff, B)
    out = pl.pallas_call(
        _stem_kernel,
        out_shape=jax.ShapeDtypeStruct((B, T_pad, HIDDEN), out_dtype),
        grid=grid,
        in_specs=[
            pl.BlockSpec((None, tn_eff, Kp), lambda t, b: (b, t, 0)),   # patches
            pl.BlockSpec((Kp, HIDDEN), lambda t, b: (0, 0)),            # weight (resident)
            pl.BlockSpec((tn_eff, HIDDEN), lambda t, b: (t, 0)),        # pos (+bias), bf16
            pl.BlockSpec((1, HIDDEN), lambda t, b: (0, 0)),             # gamma
            pl.BlockSpec((1, HIDDEN), lambda t, b: (0, 0)),             # beta
        ],
        out_specs=pl.BlockSpec((None, tn_eff, HIDDEN), lambda t, b: (b, t, 0)),
        compiler_params=pltpu.CompilerParams(
            dimension_semantics=("parallel", "parallel"),
            vmem_limit_bytes=32 * 1024 * 1024,
        ),
    )(patches, w2d, pos_patch, gamma2d, beta2d)

    out = out[:, :T, :]                                          # drop token padding
    # (B, T, C) -> (B, Hp, Wp, C) -> NCHW feature map (Dinov2Backbone convention).
    # Kept in XLA: an in-kernel Wp-last store would be lane-sparse (Wp < 128).
    return out.reshape(B, Hp, Wp, HIDDEN).transpose(0, 3, 1, 2)


def _reference_forward(x, conv_w, conv_b, pos_embed, ln_gamma, ln_beta):
    """Pure-JAX f32 reference of the same semantics (for correctness check)."""
    B, _, H, W = x.shape
    Hp, Wp = H // PATCH, W // PATCH
    pe = jax.lax.conv_general_dilated(
        x.astype(jnp.float32), conv_w.astype(jnp.float32),
        window_strides=(PATCH, PATCH), padding="VALID",
        dimension_numbers=("NCHW", "OIHW", "NCHW"),
    ) + conv_b[None, :, None, None]
    tok = pe.reshape(B, HIDDEN, Hp * Wp).transpose(0, 2, 1) + pos_embed[:, 1:, :]
    mean = tok.mean(-1, keepdims=True)
    var = ((tok - mean) ** 2).mean(-1, keepdims=True)
    y = (tok - mean) / jnp.sqrt(var + LN_EPS) * ln_gamma + ln_beta
    return y.reshape(B, Hp, Wp, HIDDEN).transpose(0, 3, 1, 2)


if __name__ == "__main__":
    key = jax.random.PRNGKey(0)
    k_x, k_w, k_b, k_p, k_g, k_be = jax.random.split(key, 6)

    # Small spatial size consistent with the module: 28x28 -> 2x2 grid of 14x14 patches.
    B, H, W = 2, 28, 28
    Hp, Wp = H // PATCH, W // PATCH

    x = jax.random.normal(k_x, (B, IN_CH, H, W), dtype=jnp.float32)
    conv_w = 0.02 * jax.random.normal(k_w, (HIDDEN, IN_CH, PATCH, PATCH), dtype=jnp.float32)
    conv_b = 0.02 * jax.random.normal(k_b, (HIDDEN,), dtype=jnp.float32)
    pos_embed = 0.02 * jax.random.normal(k_p, (1, 1 + Hp * Wp, HIDDEN), dtype=jnp.float32)
    ln_gamma = 1.0 + 0.02 * jax.random.normal(k_g, (HIDDEN,), dtype=jnp.float32)
    ln_beta = 0.02 * jax.random.normal(k_be, (HIDDEN,), dtype=jnp.float32)

    out = encoder_dinov2_giant_forward(x, conv_w, conv_b, pos_embed, ln_gamma, ln_beta)
    out = jax.block_until_ready(out)
    assert out.shape == (B, HIDDEN, Hp, Wp), out.shape

    ref = jax.block_until_ready(
        _reference_forward(x, conv_w, conv_b, pos_embed, ln_gamma, ln_beta)
    )
    # bf16 operands on the MXU (f32 accumulation) + bf16 pos/bias table -> slightly
    # looser tolerance vs the f32 reference.
    max_err = float(jnp.max(jnp.abs(out - ref)))
    assert jnp.allclose(out, ref, atol=5e-2, rtol=5e-2), max_err

    print("KERNEL_OK")
</pallas_src>

<mosaic_0001>
module attributes {stable_mosaic.version = 11 : i64} {
  func.func @_stem_kernel(%arg0: i32, %arg1: i32, %arg2: memref<1x8x640xbf16, #tpu.memory_space<vmem>>, %arg3: memref<640x1536xbf16, #tpu.memory_space<vmem>>, %arg4: memref<8x1536xbf16, #tpu.memory_space<vmem>>, %arg5: memref<1x1536xf32, #tpu.memory_space<vmem>>, %arg6: memref<1x1536xf32, #tpu.memory_space<vmem>>, %arg7: memref<1x8x1536xf32, #tpu.memory_space<vmem>>) attributes {dimension_semantics = [#tpu.dimension_semantics<parallel>, #tpu.dimension_semantics<parallel>], iteration_bounds = array<i64: 1, 2>, scalar_prefetch = 0 : i64, scratch_operands = 0 : i64, tpu.core_type = #tpu.core_type<tc>, window_params = [{transform_indices = @transform_0, window_bounds = array<i64: 1, 8, 640>}, {pipeline_mode = #tpu.pipeline_mode<synchronous>, transform_indices = @transform_1, window_bounds = array<i64: 640, 1536>}, {transform_indices = @transform_2, window_bounds = array<i64: 8, 1536>}, {pipeline_mode = #tpu.pipeline_mode<synchronous>, transform_indices = @transform_3, window_bounds = array<i64: 1, 1536>}, {pipeline_mode = #tpu.pipeline_mode<synchronous>, transform_indices = @transform_4, window_bounds = array<i64: 1, 1536>}, {transform_indices = @transform_5, window_bounds = array<i64: 1, 8, 1536>}]} {
    %c0 = arith.constant 0 : index
    %c0_0 = arith.constant 0 : index
    %c0_1 = arith.constant 0 : index
    %0 = vector.load %arg2[%c0, %c0_0, %c0_1] : memref<1x8x640xbf16, #tpu.memory_space<vmem>>, vector<1x8x640xbf16>
    %1 = vector.shape_cast %0 : vector<1x8x640xbf16> to vector<8x640xbf16>
    %c0_2 = arith.constant 0 : index
    %c0_3 = arith.constant 0 : index
    %2 = vector.load %arg3[%c0_2, %c0_3] : memref<640x1536xbf16, #tpu.memory_space<vmem>>, vector<640x1536xbf16>
    %cst = arith.constant dense<0.000000e+00> : vector<8x1536xf32>
    %3 = tpu.matmul %1, %2, %cst {dimension_numbers = #tpu.dot_dimension_numbers<[1], [0], [0], [1], [0, 0, 1, 1], [], []>} : vector<8x640xbf16>, vector<640x1536xbf16>, vector<8x1536xf32> -> vector<8x1536xf32>
    %c0_4 = arith.constant 0 : index
    %c0_5 = arith.constant 0 : index
    %4 = vector.load %arg4[%c0_4, %c0_5] : memref<8x1536xbf16, #tpu.memory_space<vmem>>, vector<8x1536xbf16>
    %5 = arith.extf %4 : vector<8x1536xbf16> to vector<8x1536xf32>
    %6 = arith.addf %3, %5 : vector<8x1536xf32>
    %cst_6 = arith.constant dense<0.000000e+00> : vector<8xf32>
    %7 = vector.multi_reduction <add>, %6, %cst_6 [1] : vector<8x1536xf32> to vector<8xf32>
    %8 = vector.shape_cast %7 : vector<8xf32> to vector<8x1xf32>
    %cst_7 = arith.constant 1.536000e+03 : f32
    %9 = vector.broadcast %cst_7 : f32 to vector<8x1xf32>
    %10 = arith.divf %8, %9 : vector<8x1xf32>
    %11 = vector.broadcast %10 : vector<8x1xf32> to vector<8x1536xf32>
    %12 = arith.subf %6, %11 : vector<8x1536xf32>
    %13 = arith.mulf %12, %12 : vector<8x1536xf32>
    %cst_8 = arith.constant dense<0.000000e+00> : vector<8xf32>
    %14 = vector.multi_reduction <add>, %13, %cst_8 [1] : vector<8x1536xf32> to vector<8xf32>
    %15 = vector.shape_cast %14 : vector<8xf32> to vector<8x1xf32>
    %cst_9 = arith.constant 1.536000e+03 : f32
    %16 = vector.broadcast %cst_9 : f32 to vector<8x1xf32>
    %17 = arith.divf %15, %16 : vector<8x1xf32>
    %cst_10 = arith.constant 9.99999997E-7 : f32
    %18 = vector.broadcast %cst_10 : f32 to vector<8x1xf32>
    %19 = arith.addf %17, %18 : vector<8x1xf32>
    %20 = math.rsqrt %19 : vector<8x1xf32>
    %21 = vector.broadcast %20 : vector<8x1xf32> to vector<8x1536xf32>
    %22 = arith.mulf %12, %21 : vector<8x1536xf32>
    %c0_11 = arith.constant 0 : index
    %c0_12 = arith.constant 0 : index
    %23 = vector.load %arg5[%c0_11, %c0_12] : memref<1x1536xf32, #tpu.memory_space<vmem>>, vector<1x1536xf32>
    %24 = vector.broadcast %23 : vector<1x1536xf32> to vector<8x1536xf32>
    %25 = arith.mulf %22, %24 : vector<8x1536xf32>
    %c0_13 = arith.constant 0 : index
    %c0_14 = arith.constant 0 : index
    %26 = vector.load %arg6[%c0_13, %c0_14] : memref<1x1536xf32, #tpu.memory_space<vmem>>, vector<1x1536xf32>
    %27 = vector.broadcast %26 : vector<1x1536xf32> to vector<8x1536xf32>
    %28 = arith.addf %25, %27 : vector<8x1536xf32>
    %c0_15 = arith.constant 0 : index
    %c0_16 = arith.constant 0 : index
    %c0_17 = arith.constant 0 : index
    %29 = vector.load %arg7[%c0_15, %c0_16, %c0_17] : memref<1x8x1536xf32, #tpu.memory_space<vmem>>, vector<1x8x1536xf32>
    %30 = vector.shape_cast %29 : vector<1x8x1536xf32> to vector<8x1536xf32>
    %31 = vector.shape_cast %28 : vector<8x1536xf32> to vector<1x8x1536xf32>
    tpu.vector_store %arg7[%c0_15, %c0_16, %c0_17], %31 {strides = array<i32>} : memref<1x8x1536xf32, #tpu.memory_space<vmem>>, vector<1x8x1536xf32>,
    return
  }
  func.func @transform_0(%arg0: i32, %arg1: i32) -> (i32, i32, i32) {
    %c0_i32 = arith.constant 0 : i32
    %c0_i32_0 = arith.constant 0 : i32
    return %arg1, %arg0, %c0_i32 : i32, i32, i32
  }
  func.func @transform_1(%arg0: i32, %arg1: i32) -> (i32, i32) {
    %c0_i32 = arith.constant 0 : i32
    %c0_i32_0 = arith.constant 0 : i32
    %c0_i32_1 = arith.constant 0 : i32
    return %c0_i32, %c0_i32_0 : i32, i32
  }
  func.func @transform_2(%arg0: i32, %arg1: i32) -> (i32, i32) {
    %c0_i32 = arith.constant 0 : i32
    %c0_i32_0 = arith.constant 0 : i32
    return %arg0, %c0_i32 : i32, i32
  }
  func.func @transform_3(%arg0: i32, %arg1: i32) -> (i32, i32) {
    %c0_i32 = arith.constant 0 : i32
    %c0_i32_0 = arith.constant 0 : i32
    %c0_i32_1 = arith.constant 0 : i32
    return %c0_i32, %c0_i32_0 : i32, i32
  }
  func.func @transform_4(%arg0: i32, %arg1: i32) -> (i32, i32) {
    %c0_i32 = arith.constant 0 : i32
    %c0_i32_0 = arith.constant 0 : i32
    %c0_i32_1 = arith.constant 0 : i32
    return %c0_i32, %c0_i32_0 : i32, i32
  }
  func.func @transform_5(%arg0: i32, %arg1: i32) -> (i32, i32, i32) {
    %c0_i32 = arith.constant 0 : i32
    %c0_i32_0 = arith.constant 0 : i32
    return %arg1, %arg0, %c0_i32 : i32, i32, i32
  }
}

</mosaic_0001>

<bundles_post_ra>
// kernel: tpu_custom_call.1
= control target key start
LH: loop header
LB: loop body
LE: loop exit
PB: predicated region body
PF: predicated region fallthrough
CT: control target
= control target key end

     0   :  { %10 = vsyncpa [#allocation3], 0  ;;  %s7543_s0 = inlined_call_operand.hbm [shape: bf16[2,8,640], index: 0, kind: input, shape index: {}]   ;;  %s7544_s1 = inlined_call_operand.hbm [shape: bf16[640,1536], index: 1, kind: input, shape index: {}]   ;;  %s7545_s2 = inlined_call_operand.hbm [shape: bf16[8,1536], index: 2, kind: input, shape index: {}]   ;;  %s7546_s3 = inlined_call_operand.hbm [shape: f32[1,1536], index: 3, kind: input, shape index: {}]   ;;  %s7547_s4 = inlined_call_operand.hbm [shape: f32[1,1536], index: 4, kind: input, shape index: {}]   ;;  %s7548_s5 = inlined_call_operand.hbm [shape: f32[2,8,1536], index: 5, kind: output, shape index: {}]  }
   0x1   :  { %12 = vsyncpa [#allocation3 + $0x1], 0 }
   0x2   :  { %13 = vsyncpa [#allocation6], 0 }
   0x3   :  { %14 = vsyncpa [#allocation9], 0 }
   0x4   :  { %15 = vsyncpa [#allocation4], 0 }
   0x5   :  { %17 = vsyncpa [#allocation4 + $0x1], 0  ;;  %s7156_s18 = smov 0   ;;  %s7158_s19 = smov 0  }
   0x6   :  { %s7160_s20 = smov 0   ;;  %s7162_s21 = smov 0  }
   0x7   :  { %s7164_s22 = smov 0   ;;  %s7166_s23 = smov 0  }
   0x8 LB: > { %s4345_s24 = sadd.s32 4294967295, %s7117_s23   ;;  %p4347_p0 = scmp.ge.s32.totalorder %s7117_s23, 1  ;;  %s7117_s23 = sphi %s7166_s23, %s23_s23   ;;  %s7113_s22 = sphi %s7164_s22, %s7560_s22   ;;  %s7109_s21 = sphi %s7162_s21, %s7559_s21   ;;  %s7105_s20 = sphi %s7160_s20, %s7558_s20   ;;  %s7101_s19 = sphi %s7158_s19, %s7557_s19   ;;  %s7097_s18 = sphi %s7156_s18, %s7556_s18  }
   0x9   : > { %p7190_p1 = scmp.eq.s32.totalorder %s4345_s24, 0  ;;  %p185_p2 = scmp.lt.s32.totalorder %s7117_s23, 3 }
   0xa   : > { %s196_s28 = sshll.u32 %s7544_s1, 4  ;;  %s7119_s30 = smov [#allocation5]   ;;  %s197_s28 = int_to_ptr.hbm [resolvable:$true] %s196_s28 }
   0xb   : > { %p7198_p3 = pnand %p4347_p0, %p185_p2  ;;  %s198_s6 = sshll.u32 %s7119_s30, 4  ;;  %s199_s6 = int_to_ptr.vmem [resolvable:$true] %s198_s6 }
   0xc   : > { %p4352_p6 = scmp.ge.s32.totalorder %s7117_s23, 2  ;;  %s226_s10 = sshll.u32 %s7546_s3, 4  ;;  %s227_s10 = int_to_ptr.hbm [resolvable:$true] %s226_s10 }
   0xd   : > { %p6787_p4 = pneg %p7198_p3  ;;  %s7120_s11 = smov 768  }
   0xe   : > { %s7121_s12 = smov 48   ;;  %s7122_s13 = smov [#allocation8]  }
   0xf   : > { %p7206_p5 = pnand %p6787_p4, %p7190_p1  ;;  %s228_s14 = sshll.u32 %s7122_s13, 4  ;;  %s229_s14 = int_to_ptr.vmem [resolvable:$true] %s228_s14 }
  0x10   : > { %s214_s17 = sshll.u32 %s7545_s2, 4  ;;  %s7123_s30 = smov [#allocation7]   ;;  %s215_s17 = int_to_ptr.hbm [resolvable:$true] %s214_s17 }
  0x11   : > { %6790 = dma.hbm_to_vmem [thread:$0]  (!%p7206_p5), %s197_s28, 61440, %s199_s6, [#allocation6], %s7120_s11, %s7120_s11, %s7121_s12  }
  0x12   : > { %6796 = dma.hbm_to_vmem [thread:$0]  (!%p7206_p5), %s227_s10, 192, %s229_s14, [#allocation9]  }
  0x13   : > { %s238_s28 = sshll.u32 %s7547_s4, 4  ;;  %s216_s6 = sshll.u32 %s7123_s30, 4  ;;  %s239_s28 = int_to_ptr.hbm [resolvable:$true] %s238_s28  ;;  %s217_s6 = int_to_ptr.vmem [resolvable:$true] %s216_s6 }
  0x14   : > { %6793 = dma.hbm_to_vmem [thread:$0]  (!%p7206_p5), %s215_s17, 768, %s217_s6, [#allocation6]  }
  0x15   : > { %s7124_s8 = smov [#allocation10]   ;;  %s4346_s10 = sadd.s32 4294967294, %s7117_s23  }
  0x16   : > { %s240_s9 = sshll.u32 %s7124_s8, 4  ;;  %s32_s11 = sadd.s32 1, %s7113_s22  ;;  %s241_s9 = int_to_ptr.vmem [resolvable:$true] %s240_s9 }
  0x17   : > { %6799 = dma.hbm_to_vmem [thread:$0]  (!%p7206_p5), %s239_s28, 192, %s241_s9, [#allocation9]  }
  0x18   : > { %p33_p7 = scmp.ge.s32.totalorder %s32_s11, 2  ;;  %s44_s12 = sadd.s32 1, %s7105_s20 }
  0x19   : > { %p51_p8 = scmp.ne.s32.totalorder %s7105_s20, %s7101_s19  ;;  %p52_p9 = scmp.eq.s32.totalorder %s7117_s23, 0 }
  0x1a   : > { %s7562_s11 = smov (%p33_p7, %s32_s11), 0  ;;  %p57_p11 = scmp.ne.s32.totalorder %s7101_s19, %s7097_s18 }
  0x1b   : > { %p7236_p10 = por %p52_p9, %p51_p8  ;;  %s39_s7 = ssub.s32 %s7113_s22, %s7562_s11 }
  0x1c   : > { %p172_p12 = scmp.eq.s32.totalorder %s4345_s24, 1  ;;  %p42_p13 = scmp.eq.s32.totalorder %s39_s7, 0 }
  0x1d   : > { %p7248_p0 = por %p7190_p1, %p57_p11  ;;  %p178_p4 = scmp.eq.s32.totalorder %s4346_s10, 1 }
  0x1e   : > { %p7252_p2 = por %p172_p12, %p51_p8  ;;  %p6812_p7 = scmp.lt.s32.totalorder %s7117_s23, 2 }
  0x1f   : > { %s7257_s16 = scalar_select %p42_p13, %s7105_s20, %s44_s12  }
  0x20   : > { %p7259_p5 = por %p178_p4, %p57_p11  ;;  %s251_s26 = sand.u32 1, %s7105_s20  }
  0x21   : > { %s6763_s24 = smul.u32 20, %s7113_s22  ;;  %p6801_p8 = pnand %p6812_p7, %p7236_p10 }
  0x22   : > { %s6762_s27 = smul.u32 20, %s251_s26  ;;  %s252_s12 = scalar_lea.sflag [#allocation3], %s251_s26 }
  0x23   : > { %s262_s6 = scalar_lea.hbm %s7543_s0, %s6763_s24  ;;  %275 = sbr.rel (%p7198_p3) target bundleno = 971 (0x3cb), region = 40 }
  0x24   : > { %s264_s8 = sshll.u32 %s262_s6, 4  ;;  %s255_s9 = scalar_lea.vmem [#allocation2], %s6762_s27  ;;  %s265_s8 = int_to_ptr.hbm [resolvable:$true] %s264_s8 }
  0x25   : > { %s266_s10 = sshll.u32 %s255_s9, 4  ;;  %s7274_s7 = sand.u32 (!%p7198_p3), 1, %s7101_s19   ;;  %s267_s10 = int_to_ptr.vmem [resolvable:$true] %s266_s10 }
  0x26   : > { %6803 = dma.hbm_to_vmem [thread:$0]  (!%p6801_p8), %s265_s8, 320, %s267_s10, %s252_s12  }
  0x27   : > { %s6764_s28 = smul.u32 (!%p7198_p3), 20, %s7274_s7  ;;  %s278_s24 = scalar_lea.sflag (!%p7198_p3), [#allocation3], %s7274_s7 }
  0x29   : > { %s7278_s13 = scalar_lea.vmem [#allocation2], %s6764_s28 }
  0x2a   : > { %7080 = dma.done.wait (%p7248_p0), %s278_s24, 320  }
  0x2b   : > { %7082 = vsyncadd (%p7248_p0), %s278_s24, 4294966976 }
  0x2c   : > { %7084 = dma.done.wait (%p7190_p1), [#allocation6], 62208  }
  0x2d   : > { %7086 = vsyncadd (%p7190_p1), [#allocation6], 4294905088 }
  0x2e   : > { %7088 = dma.done.wait (%p7190_p1), [#allocation9], 384  }
  0x2f   : > { %7090 = vsyncadd (%p7190_p1), [#allocation9], 4294966912  ;;  %v4697_v0 = vld [vmem:[#allocation5 + $0x2a0] sm:$0xf]  ;;  %v6372_v1 = vld [vmem:[#allocation5 + $0x2cc] sm:$0xf0] }
  0x30   : > { %v5081_v2 = vld [vmem:[#allocation5 + $0x5a0] sm:$0xf]  ;;  %v4698_v3 = vor.u32 %v6372_v1, %v4697_v0  ;;  %v6468_v4 = vld [vmem:[#allocation5 + $0x5cc] sm:$0xf0]  ;;  %s6765_s25 = smul.u32 96, %s7274_s7  ;;  %s4203_s8 = scalar_lea.sflag [#allocation4], %s7274_s7 }
  0x31   : > { %v5465_v5 = vld [vmem:[#allocation5 + $0x8a0] sm:$0xf]  ;;  %v6564_v6 = vld [vmem:[#allocation5 + $0x8cc] sm:$0xf0]  ;;  %v5082_v7 = vor.u32 %v6468_v4, %v5081_v2  ;;  %s6766_s29 = smul.u32 96, %s7109_s21  ;;  %s7047_s24 = scalar_lea.hbm %s7548_s5, 192 }
  0x32   : > { %v5466_v8 = vor.u32 %v6564_v6, %v5465_v5  ;;  %v5849_v9 = vld [vmem:[#allocation5 + $0xba0] sm:$0xf]  ;;  %v6660_v10 = vld [vmem:[#allocation5 + $0xbcc] sm:$0xf0]  ;;  %3248 = vmatpush.bf16.msra.mxu0 %v4698_v3  ;;  %s328_s14 = scalar_lea.vmem [#allocation11], %s6765_s25 }
  0x33   : > { %v4649_v11 = vld [vmem:[#allocation5 + $0x240] sm:$0xf]  ;;  %v5850_v12 = vor.u32 %v6660_v10, %v5849_v9  ;;  %v6360_v13 = vld [vmem:[#allocation5 + $0x26c] sm:$0xf0]  ;;  %3261 = vmatpush.bf16.msra.mxu1 %v5082_v7  ;;  %s4216_s27 = scalar_lea.hbm %s7548_s5, %s6766_s29  ;;  %s4218_s30 = sshll.u32 %s328_s14, 4  ;;  %s4219_s30 = int_to_ptr.vmem [resolvable:$true] %s4218_s30 }
  0x34   : > { %v5033_v14 = vld [vmem:[#allocation5 + $0x540] sm:$0xf]  ;;  %v6456_v15 = vld [vmem:[#allocation5 + $0x56c] sm:$0xf0]  ;;  %3274 = vmatpush.bf16.msra.mxu2 %v5466_v8  ;;  %v4650_v16 = vor.u32 %v6360_v13, %v4649_v11  ;;  %s4220_s6 = sshll.u32 %s4216_s27, 4  ;;  %s4221_s6 = int_to_ptr.hbm [resolvable:$true] %s4220_s6 }
  0x35   : > { %v5034_v17 = vor.u32 %v6456_v15, %v5033_v14  ;;  %v5417_v18 = vld [vmem:[#allocation5 + $0x840] sm:$0xf]  ;;  %v6552_v19 = vld [vmem:[#allocation5 + $0x86c] sm:$0xf0]  ;;  %3287 = vmatpush.bf16.msra.mxu3 %v5850_v12  ;;  %s7041_s9 = sshra.s32 %s4221_s6, 4  ;;  %s7042_s9 = int_to_ptr.hbm [resolvable:$true] %s7041_s9 }
  0x36   : > { %v5801_v20 = vld [vmem:[#allocation5 + $0xb40] sm:$0xf]  ;;  %v5418_v21 = vor.u32 %v6552_v19, %v5417_v18  ;;  %v6648_v22 = vld [vmem:[#allocation5 + $0xb6c] sm:$0xf0]  ;;  %3249 = vmatpush.bf16.msra.mxu0 %v4650_v16  ;;  %s7043_s10 = scalar_lea.hbm %s7042_s9, 96  ;;  %p7048_p10 = scmp.lt.s32.totalorder %s7042_s9, %s7548_s5 }
  0x37   : > { %v4601_v23 = vld [vmem:[#allocation5 + $0x1e0] sm:$0xf]  ;;  %v6348_v24 = vld [vmem:[#allocation5 + $0x20c] sm:$0xf0]  ;;  %v5802_v25 = vor.u32 %v6648_v22, %v5801_v20  ;;  %3262 = vmatpush.bf16.msra.mxu1 %v5034_v17  ;;  %p7044_p1 = scmp.ne.s32.totalorder %s7042_s9, %s7043_s10  ;;  %p7049_p11 = scmp.lt.s32.totalorder %s7047_s24, %s7043_s10 }
  0x38   : > { %v4985_v26 = vld [vmem:[#allocation5 + $0x4e0] sm:$0xf]  ;;  %v6444_v27 = vld [vmem:[#allocation5 + $0x50c] sm:$0xf0]  ;;  %v4602_v29 = vor.u32 %v6348_v24, %v4601_v23  ;;  %3275 = vmatpush.bf16.msra.mxu2 %v5418_v21 }
  0x39   : > { %v5369_v28 = vld [vmem:[#allocation5 + $0x7e0] sm:$0xf]  ;;  %v6540_v30 = vld [vmem:[#allocation5 + $0x80c] sm:$0xf0]  ;;  %v4986_v33 = vor.u32 %v6444_v27, %v4985_v26  ;;  %3288 = vmatpush.bf16.msra.mxu3 %v5802_v25  ;;  %p7045_p3 = pnand %p7044_p1, %p7252_p2  ;;  %p7050_p12 = por %p7049_p11, %p7048_p10 }
  0x3a   : > { %v5753_v31 = vld [vmem:[#allocation5 + $0xae0] sm:$0xf]  ;;  %v6636_v32 = vld [vmem:[#allocation5 + $0xb0c] sm:$0xf0]  ;;  %v5370_v34 = vor.u32 %v6540_v30, %v5369_v28  ;;  %3250 = vmatpush.bf16.msra.mxu0 %v4602_v29  ;;  %v6366_v30 = vld [vmem:[#allocation5 + $0x2a4] sm:$0xf] }
  0x3b   : > { %v4553_v35 = vld [vmem:[#allocation5 + $0x180] sm:$0xf]  ;;  %v6336_v36 = vld [vmem:[#allocation5 + $0x1ac] sm:$0xf0]  ;;  %v5754_v38 = vor.u32 %v6636_v32, %v5753_v31  ;;  %3263 = vmatpush.bf16.msra.mxu1 %v4986_v33  ;;  %v4699_v32 = vld [vmem:[#allocation5 + $0x2d0] sm:$0xf0]  ;;  %p7046_p9 = pneg %p7045_p3 }
  0x3c   : > { %v4937_v37 = vld [vmem:[#allocation5 + $0x480] sm:$0xf]  ;;  %v6432_v39 = vld [vmem:[#allocation5 + $0x4ac] sm:$0xf0]  ;;  %v4554_v44 = vor.u32 %v6336_v36, %v4553_v35  ;;  %3276 = vmatpush.bf16.msra.mxu2 %v5370_v34  ;;  %v6462_v33 = vld [vmem:[#allocation5 + $0x5a4] sm:$0xf] }
  0x3d   : > { %v5321_v40 = vld [vmem:[#allocation5 + $0x780] sm:$0xf]  ;;  %v6528_v41 = vld [vmem:[#allocation5 + $0x7ac] sm:$0xf0]  ;;  %v4938_v45 = vor.u32 %v6432_v39, %v4937_v37  ;;  %3289 = vmatpush.bf16.msra.mxu3 %v5754_v38  ;;  %v5083_v34 = vld [vmem:[#allocation5 + $0x5d0] sm:$0xf0]  ;;  %p7051_p13 = pnand %p7050_p12, %p7046_p9 }
  0x3e   : > { %v5705_v42 = vld [vmem:[#allocation5 + $0xa80] sm:$0xf]  ;;  %v6624_v43 = vld [vmem:[#allocation5 + $0xaac] sm:$0xf0]  ;;  %v5322_v46 = vor.u32 %v6528_v41, %v5321_v40  ;;  %3251 = vmatpush.bf16.msra.mxu0 %v4554_v44  ;;  %v6558_v37 = vld [vmem:[#allocation5 + $0x8a4] sm:$0xf]  ;;  %v4702_v41 = vor.u32 %v6366_v30, %v4699_v32 }
  0x3f   : > { %v4505_v47 = vld [vmem:[#allocation5 + $0x120] sm:$0xf]  ;;  %v6324_v48 = vld [vmem:[#allocation5 + $0x14c] sm:$0xf0]  ;;  %v5706_v50 = vor.u32 %v6624_v43, %v5705_v42  ;;  %3264 = vmatpush.bf16.msra.mxu1 %v4938_v45  ;;  %v5467_v38 = vld [vmem:[#allocation5 + $0x8d0] sm:$0xf0]  ;;  %v5086_v42 = vor.u32 %v6462_v33, %v5083_v34 }
  0x40   : > { %v4889_v49 = vld [vmem:[#allocation5 + $0x420] sm:$0xf]  ;;  %v6420_v51 = vld [vmem:[#allocation5 + $0x44c] sm:$0xf0]  ;;  %v4506_v56 = vor.u32 %v6324_v48, %v4505_v47  ;;  %3277 = vmatpush.bf16.msra.mxu2 %v5322_v46  ;;  %v6354_v45 = vld [vmem:[#allocation5 + $0x244] sm:$0xf]  ;;  %v5470_v46 = vor.u32 %v6558_v37, %v5467_v38 }
  0x41   : > { %v5273_v52 = vld [vmem:[#allocation5 + $0x720] sm:$0xf]  ;;  %v6516_v53 = vld [vmem:[#allocation5 + $0x74c] sm:$0xf0]  ;;  %v4890_v57 = vor.u32 %v6420_v51, %v4889_v49  ;;  %3290 = vmatpush.bf16.msra.mxu3 %v5706_v50  ;;  %v4651_v47 = vld [vmem:[#allocation5 + $0x270] sm:$0xf0] }
  0x42   : > { %v5657_v54 = vld [vmem:[#allocation5 + $0xa20] sm:$0xf]  ;;  %v6612_v55 = vld [vmem:[#allocation5 + $0xa4c] sm:$0xf0]  ;;  %v5274_v58 = vor.u32 %v6516_v53, %v5273_v52  ;;  %3252 = vmatpush.bf16.msra.mxu0 %v4506_v56  ;;  %v6450_v48 = vld [vmem:[#allocation5 + $0x544] sm:$0xf] }
  0x43   : > { %v4457_v59 = vld [vmem:[#allocation5 + $0xc0] sm:$0xf]  ;;  %v6312_v60 = vld [vmem:[#allocation5 + $0xec] sm:$0xf0]  ;;  %v5658_v62 = vor.u32 %v6612_v55, %v5657_v54  ;;  %3265 = vmatpush.bf16.msra.mxu1 %v4890_v57  ;;  %v5035_v49 = vld [vmem:[#allocation5 + $0x570] sm:$0xf0]  ;;  %v4654_v54 = vor.u32 %v6354_v45, %v4651_v47 }
  0x44   : > { %v4841_v61 = vld [vmem:[#allocation5 + $0x3c0] sm:$0xf]  ;;  %v6408_v63 = vld [vmem:[#allocation5 + $0x3ec] sm:$0xf0]  ;;  %v4458_v4 = vor.u32 %v6312_v60, %v4457_v59  ;;  %3278 = vmatpush.bf16.msra.mxu2 %v5274_v58  ;;  %v6546_v50 = vld [vmem:[#allocation5 + $0x844] sm:$0xf]  ;;  %v5038_v55 = vor.u32 %v6450_v48, %v5035_v49 }
  0x45   : > { %v5225_v0 = vld [vmem:[#allocation5 + $0x6c0] sm:$0xf]  ;;  %v6504_v1 = vld [vmem:[#allocation5 + $0x6ec] sm:$0xf0]  ;;  %v4842_v5 = vor.u32 %v6408_v63, %v4841_v61  ;;  %3291 = vmatpush.bf16.msra.mxu3 %v5658_v62  ;;  %v5419_v51 = vld [vmem:[#allocation5 + $0x870] sm:$0xf0] }
  0x46   : > { %v5609_v2 = vld [vmem:[#allocation5 + $0x9c0] sm:$0xf]  ;;  %v6600_v3 = vld [vmem:[#allocation5 + $0x9ec] sm:$0xf0]  ;;  %v5226_v6 = vor.u32 %v6504_v1, %v5225_v0  ;;  %3253 = vmatpush.bf16.msra.mxu0 %v4458_v4  ;;  %v6342_v57 = vld [vmem:[#allocation5 + $0x1e4] sm:$0xf]  ;;  %v5422_v59 = vor.u32 %v6546_v50, %v5419_v51 }
  0x47   : > { %v4409_v7 = vld [vmem:[#allocation5 + $0x60] sm:$0xf]  ;;  %v6300_v8 = vld [vmem:[#allocation5 + $0x8c] sm:$0xf0]  ;;  %v5610_v10 = vor.u32 %v6600_v3, %v5609_v2  ;;  %3266 = vmatpush.bf16.msra.mxu1 %v4842_v5  ;;  %v4603_v58 = vld [vmem:[#allocation5 + $0x210] sm:$0xf0] }
  0x48   : > { %v4793_v9 = vld [vmem:[#allocation5 + $0x360] sm:$0xf]  ;;  %v6396_v11 = vld [vmem:[#allocation5 + $0x38c] sm:$0xf0]  ;;  %v4410_v16 = vor.u32 %v6300_v8, %v4409_v7  ;;  %3279 = vmatpush.bf16.msra.mxu2 %v5226_v6  ;;  %v6438_v60 = vld [vmem:[#allocation5 + $0x4e4] sm:$0xf]  ;;  %v4606_v1 = vor.u32 %v6342_v57, %v4603_v58 }
  0x49   : > { %v5177_v12 = vld [vmem:[#allocation5 + $0x660] sm:$0xf]  ;;  %v6492_v13 = vld [vmem:[#allocation5 + $0x68c] sm:$0xf0]  ;;  %v4794_v19 = vor.u32 %v6396_v11, %v4793_v9  ;;  %3292 = vmatpush.bf16.msra.mxu3 %v5610_v10  ;;  %v4987_v61 = vld [vmem:[#allocation5 + $0x510] sm:$0xf0] }
  0x4a   : > { %v5561_v14 = vld [vmem:[#allocation5 + $0x960] sm:$0xf]  ;;  %v6588_v15 = vld [vmem:[#allocation5 + $0x98c] sm:$0xf0]  ;;  %v5178_v20 = vor.u32 %v6492_v13, %v5177_v12  ;;  %3254 = vmatpush.bf16.msra.mxu0 %v4410_v16  ;;  %v6534_v62 = vld [vmem:[#allocation5 + $0x7e4] sm:$0xf]  ;;  %v4990_v4 = vor.u32 %v6438_v60, %v4987_v61 }
  0x4b   : > { %v4361_v17 = vld [vmem:[#allocation5] sm:$0xf]  ;;  %v6288_v18 = vld [vmem:[#allocation5 + $0x2c] sm:$0xf0]  ;;  %v5562_v24 = vor.u32 %v6588_v15, %v5561_v14  ;;  %3267 = vmatpush.bf16.msra.mxu1 %v4794_v19  ;;  %v5371_v63 = vld [vmem:[#allocation5 + $0x810] sm:$0xf0] }
  0x4c   : > { %v4745_v21 = vld [vmem:[#allocation5 + $0x300] sm:$0xf]  ;;  %v6384_v22 = vld [vmem:[#allocation5 + $0x32c] sm:$0xf0]  ;;  %v4362_v31 = vor.u32 %v6288_v18, %v4361_v17  ;;  %3280 = vmatpush.bf16.msra.mxu2 %v5178_v20  ;;  %v6330_v7 = vld [vmem:[#allocation5 + $0x184] sm:$0xf]  ;;  %v5374_v11 = vor.u32 %v6534_v62, %v5371_v63 }
  0x4d   : > { %v5129_v23 = vld [vmem:[#allocation5 + $0x600] sm:$0xf]  ;;  %v6480_v25 = vld [vmem:[#allocation5 + $0x62c] sm:$0xf0]  ;;  %v4746_v35 = vor.u32 %v6384_v22, %v4745_v21  ;;  %3293 = vmatpush.bf16.msra.mxu3 %v5562_v24  ;;  %v4555_v12 = vld [vmem:[#allocation5 + $0x1b0] sm:$0xf0] }
  0x4e   : > { %v5513_v26 = vld [vmem:[#allocation5 + $0x900] sm:$0xf]  ;;  %v6576_v27 = vld [vmem:[#allocation5 + $0x92c] sm:$0xf0]  ;;  %v5130_v36 = vor.u32 %v6480_v25, %v5129_v23  ;;  %3255 = vmatpush.bf16.msra.mxu0 %v4362_v31  ;;  %v6426_v13 = vld [vmem:[#allocation5 + $0x484] sm:$0xf]  ;;  %v4558_v23 = vor.u32 %v6330_v7, %v4555_v12 }
  0x4f   : > { %v6233_v28 = vld [vmem:[#allocation5 + $0xea0] sm:$0xf]  ;;  %v6756_v29 = vld [vmem:[#allocation5 + $0xecc] sm:$0xf0]  ;;  %v5514_v39 = vor.u32 %v6576_v27, %v5513_v26  ;;  %3268 = vmatpush.bf16.msra.mxu1 %v4746_v35  ;;  %v4939_v14 = vld [vmem:[#allocation5 + $0x4b0] sm:$0xf0] }
  0x50   : > { %v6234_v40 = vor.u32 %v6756_v29, %v6233_v28  ;;  %v6185_v43 = vld [vmem:[#allocation5 + $0xe40] sm:$0xf]  ;;  %v6744_v44 = vld [vmem:[#allocation5 + $0xe6c] sm:$0xf0]  ;;  %3281 = vmatpush.bf16.msra.mxu2 %v5130_v36  ;;  %v6522_v16 = vld [vmem:[#allocation5 + $0x784] sm:$0xf]  ;;  %v4942_v24 = vor.u32 %v6426_v13, %v4939_v14 }
  0x51   : > { %3294 = vmatpush.bf16.msra.mxu3 %v5514_v39  ;;  %v6186_v52 = vor.u32 %v6744_v44, %v6185_v43  ;;  %v6137_v53 = vld [vmem:[#allocation5 + $0xde0] sm:$0xf]  ;;  %v6732_v56 = vld [vmem:[#allocation5 + $0xe0c] sm:$0xf0]  ;;  %v5323_v17 = vld [vmem:[#allocation5 + $0x7b0] sm:$0xf0] }
  0x52   : > { %3300 = vmatpush.bf16.msrb.mxu0 %v6234_v40  ;;  %v6138_v0 = vor.u32 %v6732_v56, %v6137_v53  ;;  %v330_v2 = vld [vmem:[%s7278_s13 + $0x8] sm:$0xff]  ;;  %v329_v3 = vld [vmem:[%s7278_s13] sm:$0xff]  ;;  %v5326_v28 = vor.u32 %v6522_v16, %v5323_v17  ;;  %v4705_v12 = vld [vmem:[#allocation5 + $0x2a8] sm:$0xf] }
  0x53   : > { %3313 = vmatpush.bf16.msrb.mxu1 %v4702_v41  ;;  %v6089_v5 = vld [vmem:[#allocation5 + $0xd80] sm:$0xf]  ;;  %v6720_v6 = vld [vmem:[#allocation5 + $0xdac] sm:$0xf0]  ;;  %v835_v8 = vunpack.c.l.b16 %v330_v2  ;;  %v833_v9 = vunpack.c.l.b16 %v329_v3  ;;  %v836_v10 = vunpack.c.h.b16 %v330_v2  ;;  %v834_v15 = vunpack.c.h.b16 %v329_v3  ;;  %v6318_v27 = vld [vmem:[#allocation5 + $0x124] sm:$0xf] }
  0x54   : > { %3326 = vmatpush.bf16.msrb.mxu2 %v5086_v42  ;;  %v6090_v21 = vor.u32 %v6720_v6, %v6089_v5  ;;  %v6041_v25 = vld [vmem:[#allocation5 + $0xd20] sm:$0xf]  ;;  %v6708_v26 = vld [vmem:[#allocation5 + $0xd4c] sm:$0xf0]  ;;  %v4507_v29 = vld [vmem:[#allocation5 + $0x150] sm:$0xf0] }
  0x55   : > { %3339 = vmatpush.bf16.msrb.mxu3 %v5470_v46  ;;  %v7294_v18 = vpack.c.b16 %v835_v8, %v835_v8  ;;  %v7296_v19 = vpack.c.b16 %v833_v9, %v833_v9  ;;  %v7298_v20 = vpack.c.b16 %v836_v10, %v836_v10  ;;  %v7300_v22 = vpack.c.b16 %v834_v15, %v834_v15  ;;  %v6414_v30 = vld [vmem:[#allocation5 + $0x424] sm:$0xf]  ;;  %v4891_v31 = vld [vmem:[#allocation5 + $0x450] sm:$0xf0]  ;;  %v5993_v37 = vld [vmem:[#allocation5 + $0xcc0] sm:$0xf] }
  0x56   : > { %3301 = vmatpush.bf16.msrb.mxu0 %v6186_v52  ;;  %v6510_v32 = vld [vmem:[#allocation5 + $0x724] sm:$0xf]  ;;  %v5275_v33 = vld [vmem:[#allocation5 + $0x750] sm:$0xf0]  ;;  %v6042_v34 = vor.u32 %v6708_v26, %v6041_v25  ;;  %v4510_v35 = vor.u32 %v6318_v27, %v4507_v29  ;;  %v4894_v36 = vor.u32 %v6414_v30, %v4891_v31  ;;  %v6696_v38 = vld [vmem:[#allocation5 + $0xcec] sm:$0xf0] }
  0x57   : > { %3314 = vmatpush.bf16.msrb.mxu1 %v4654_v54  ;;  %3282 = vmatmul.bf16.vlgmr.msra.gmra.mxu2 %v7294_v18  ;;  %v6306_v39 = vld [vmem:[#allocation5 + $0xc4] sm:$0xf]  ;;  %v5278_v40 = vor.u32 %v6510_v32, %v5275_v33  ;;  %v4459_v41 = vld [vmem:[#allocation5 + $0xf0] sm:$0xf0]  ;;  %v5994_v46 = vor.u32 %v6696_v38, %v5993_v37  ;;  %v5945_v49 = vld [vmem:[#allocation5 + $0xc60] sm:$0xf] }
  0x58   : > { %3327 = vmatpush.bf16.msrb.mxu2 %v5038_v55  ;;  %3256 = vmatmul.bf16.vlgmr.msra.gmra.mxu0 %v7296_v19  ;;  %v6402_v42 = vld [vmem:[#allocation5 + $0x3c4] sm:$0xf]  ;;  %v4843_v43 = vld [vmem:[#allocation5 + $0x3f0] sm:$0xf0]  ;;  %v4462_v47 = vor.u32 %v6306_v39, %v4459_v41  ;;  %v6684_v50 = vld [vmem:[#allocation5 + $0xc8c] sm:$0xf0] }
  0x59   : > { %3340 = vmatpush.bf16.msrb.mxu3 %v5422_v59  ;;  %3269 = vmatmul.bf16.vlgmr.msra.gmra.mxu1 %v7300_v22  ;;  %v6498_v44 = vld [vmem:[#allocation5 + $0x6c4] sm:$0xf]  ;;  %v5227_v45 = vld [vmem:[#allocation5 + $0x6f0] sm:$0xf0]  ;;  %v4846_v48 = vor.u32 %v6402_v42, %v4843_v43  ;;  %v5946_v58 = vor.u32 %v6684_v50, %v5945_v49  ;;  %v5897_v59 = vld [vmem:[#allocation5 + $0xc00] sm:$0xf] }
  0x5a   : > { %3302 = vmatpush.bf16.msrb.mxu0 %v6138_v0  ;;  %3295 = vmatmul.bf16.vlgmr.msra.gmra.mxu3 %v7298_v20  ;;  %v6294_v51 = vld [vmem:[#allocation5 + $0x64] sm:$0xf]  ;;  %v5230_v52 = vor.u32 %v6498_v44, %v5227_v45  ;;  %v4411_v53 = vld [vmem:[#allocation5 + $0x90] sm:$0xf0]  ;;  %v6672_v60 = vld [vmem:[#allocation5 + $0xc2c] sm:$0xf0] }
  0x5b   : > { %3315 = vmatpush.bf16.msrb.mxu1 %v4606_v1  ;;  %v6390_v54 = vld [vmem:[#allocation5 + $0x364] sm:$0xf]  ;;  %v4795_v55 = vld [vmem:[#allocation5 + $0x390] sm:$0xf0]  ;;  %v4414_v62 = vor.u32 %v6294_v51, %v4411_v53  ;;  %v331_v2 = vld [vmem:[%s7278_s13 + $0x10] sm:$0xf]  ;;  %v5898_v10 = vor.u32 %v6672_v60, %v5897_v59 }
  0x5c   : > { %3328 = vmatpush.bf16.msrb.mxu2 %v4990_v4  ;;  %v6486_v56 = vld [vmem:[#allocation5 + $0x664] sm:$0xf]  ;;  %v5179_v57 = vld [vmem:[#allocation5 + $0x690] sm:$0xf0]  ;;  %v4798_v63 = vor.u32 %v6390_v54, %v4795_v55  ;;  %v6373_v13 = vld [vmem:[#allocation5 + $0x2d4] sm:$0xf0]  ;;  %v837_v14 = vunpack.c.l.b16 %v331_v2 }
  0x5d   : > { %3341 = vmatpush.bf16.msrb.mxu3 %v5374_v11  ;;  %v6282_v61 = vld [vmem:[#allocation5 + $0x4] sm:$0xf]  ;;  %v4363_v0 = vld [vmem:[#allocation5 + $0x30] sm:$0xf0]  ;;  %v5182_v3 = vor.u32 %v6486_v56, %v5179_v57  ;;  %v5089_v17 = vld [vmem:[#allocation5 + $0x5a8] sm:$0xf]  ;;  %v4706_v26 = vor.u32 %v6373_v13, %v4705_v12 }
  0x5e   : > { %3303 = vmatpush.bf16.msrb.mxu0 %v6090_v21  ;;  %v6378_v1 = vld [vmem:[#allocation5 + $0x304] sm:$0xf]  ;;  %v4747_v4 = vld [vmem:[#allocation5 + $0x330] sm:$0xf0]  ;;  %v4366_v15 = vor.u32 %v6282_v61, %v4363_v0  ;;  %v6469_v21 = vld [vmem:[#allocation5 + $0x5d4] sm:$0xf0] }
  0x5f   : > { %3316 = vmatpush.bf16.msrb.mxu1 %v4558_v23  ;;  %v6474_v5 = vld [vmem:[#allocation5 + $0x604] sm:$0xf]  ;;  %v5131_v6 = vld [vmem:[#allocation5 + $0x630] sm:$0xf0]  ;;  %v4750_v16 = vor.u32 %v6378_v1, %v4747_v4  ;;  %v5090_v30 = vor.u32 %v6469_v21, %v5089_v17  ;;  %v4657_v32 = vld [vmem:[#allocation5 + $0x248] sm:$0xf] }
  0x60   : > { %3329 = vmatpush.bf16.msrb.mxu2 %v4942_v24  ;;  %v6654_v7 = vld [vmem:[#allocation5 + $0xba4] sm:$0xf]  ;;  %v5851_v8 = vld [vmem:[#allocation5 + $0xbd0] sm:$0xf0]  ;;  %v5134_v23 = vor.u32 %v6474_v5, %v5131_v6  ;;  %v6361_v33 = vld [vmem:[#allocation5 + $0x274] sm:$0xf0] }
  0x61   : > { %3342 = vmatpush.bf16.msrb.mxu3 %v5326_v28  ;;  %v6750_v9 = vld [vmem:[#allocation5 + $0xea4] sm:$0xf]  ;;  %v6235_v11 = vld [vmem:[#allocation5 + $0xed0] sm:$0xf0]  ;;  %v5854_v24 = vor.u32 %v6654_v7, %v5851_v8  ;;  %v4658_v39 = vor.u32 %v6361_v33, %v4657_v32  ;;  %v4609_v45 = vld [vmem:[#allocation5 + $0x1e8] sm:$0xf] }
  0x62   : > { %3304 = vmatpush.bf16.msrb.mxu0 %v6042_v34  ;;  %v6238_v25 = vor.u32 %v6750_v9, %v6235_v11  ;;  %v6642_v27 = vld [vmem:[#allocation5 + $0xb44] sm:$0xf]  ;;  %v5803_v28 = vld [vmem:[#allocation5 + $0xb70] sm:$0xf0]  ;;  %v7307_v34 = vpack.c.b16 %v837_v14, %v837_v14  ;;  %v4561_v57 = vld [vmem:[#allocation5 + $0x188] sm:$0xf] }
  0x63   : > { %3317 = vmatpush.bf16.msrb.mxu1 %v4510_v35  ;;  %v6738_v29 = vld [vmem:[#allocation5 + $0xe44] sm:$0xf]  ;;  %v6187_v31 = vld [vmem:[#allocation5 + $0xe70] sm:$0xf0]  ;;  %v5041_v35 = vld [vmem:[#allocation5 + $0x548] sm:$0xf]  ;;  %v5806_v37 = vor.u32 %v6642_v27, %v5803_v28 }
  0x64   : > { %3330 = vmatpush.bf16.msrb.mxu2 %v4894_v36  ;;  %v6457_v36 = vld [vmem:[#allocation5 + $0x574] sm:$0xf0]  ;;  %v6190_v38 = vor.u32 %v6738_v29, %v6187_v31  ;;  %v5755_v41 = vld [vmem:[#allocation5 + $0xb10] sm:$0xf0]  ;;  %v6726_v42 = vld [vmem:[#allocation5 + $0xde4] sm:$0xf] }
  0x65   : > { %3343 = vmatpush.bf16.msrb.mxu3 %v5278_v40  ;;  %v6630_v40 = vld [vmem:[#allocation5 + $0xae4] sm:$0xf]  ;;  %v5042_v43 = vor.u32 %v6457_v36, %v5041_v35  ;;  %v6139_v44 = vld [vmem:[#allocation5 + $0xe10] sm:$0xf0]  ;;  %v4945_v59 = vld [vmem:[#allocation5 + $0x488] sm:$0xf] }
  0x66   : > { %3305 = vmatpush.bf16.msrb.mxu0 %v5994_v46  ;;  %v6349_v46 = vld [vmem:[#allocation5 + $0x214] sm:$0xf0]  ;;  %v5758_v49 = vor.u32 %v6630_v40, %v5755_v41  ;;  %v6142_v50 = vor.u32 %v6726_v42, %v6139_v44  ;;  %v5707_v53 = vld [vmem:[#allocation5 + $0xab0] sm:$0xf0]  ;;  %v6714_v54 = vld [vmem:[#allocation5 + $0xd84] sm:$0xf] }
  0x67   : > { %3318 = vmatpush.bf16.msrb.mxu1 %v4462_v47  ;;  %v4993_v47 = vld [vmem:[#allocation5 + $0x4e8] sm:$0xf]  ;;  %v4610_v51 = vor.u32 %v6349_v46, %v4609_v45  ;;  %v6091_v56 = vld [vmem:[#allocation5 + $0xdb0] sm:$0xf0]  ;;  %v6433_v60 = vld [vmem:[#allocation5 + $0x4b4] sm:$0xf0] }
  0x68   : > { %3331 = vmatpush.bf16.msrb.mxu2 %v4846_v48  ;;  %v6445_v48 = vld [vmem:[#allocation5 + $0x514] sm:$0xf0]  ;;  %v6606_v0 = vld [vmem:[#allocation5 + $0xa24] sm:$0xf]  ;;  %v5659_v1 = vld [vmem:[#allocation5 + $0xa50] sm:$0xf0] }
  0x69   : > { %3344 = vmatpush.bf16.msrb.mxu3 %v5230_v52  ;;  %v6618_v52 = vld [vmem:[#allocation5 + $0xa84] sm:$0xf]  ;;  %v4994_v55 = vor.u32 %v6445_v48, %v4993_v47  ;;  %v6043_v4 = vld [vmem:[#allocation5 + $0xd50] sm:$0xf0]  ;;  %v4513_v5 = vld [vmem:[#allocation5 + $0x128] sm:$0xf]  ;;  %v5662_v9 = vor.u32 %v6606_v0, %v5659_v1 }
  0x6a   : > { %3306 = vmatpush.bf16.msrb.mxu0 %v5946_v58  ;;  %v6337_v58 = vld [vmem:[#allocation5 + $0x1b4] sm:$0xf0]  ;;  %v5710_v61 = vor.u32 %v6618_v52, %v5707_v53  ;;  %v6702_v2 = vld [vmem:[#allocation5 + $0xd24] sm:$0xf]  ;;  %v4897_v7 = vld [vmem:[#allocation5 + $0x428] sm:$0xf] }
  0x6b   : > { %3319 = vmatpush.bf16.msrb.mxu1 %v4414_v62  ;;  %v6094_v62 = vor.u32 %v6714_v54, %v6091_v56  ;;  %v6325_v6 = vld [vmem:[#allocation5 + $0x154] sm:$0xf0]  ;;  %v6594_v12 = vld [vmem:[#allocation5 + $0x9c4] sm:$0xf]  ;;  %v5611_v13 = vld [vmem:[#allocation5 + $0x9f0] sm:$0xf0] }
  0x6c   : > { %3332 = vmatpush.bf16.msrb.mxu2 %v4798_v63  ;;  %v4562_v63 = vor.u32 %v6337_v58, %v4561_v57  ;;  %v6421_v8 = vld [vmem:[#allocation5 + $0x454] sm:$0xf0]  ;;  %v4514_v11 = vor.u32 %v6325_v6, %v4513_v5  ;;  %v6690_v14 = vld [vmem:[#allocation5 + $0xcc4] sm:$0xf]  ;;  %v4465_v17 = vld [vmem:[#allocation5 + $0xc8] sm:$0xf] }
  0x6d   : > { %3345 = vmatpush.bf16.msrb.mxu3 %v5182_v3  ;;  %v4946_v3 = vor.u32 %v6433_v60, %v4945_v59  ;;  %v6313_v21 = vld [vmem:[#allocation5 + $0xf4] sm:$0xf0]  ;;  %v6582_v28 = vld [vmem:[#allocation5 + $0x964] sm:$0xf]  ;;  %v5563_v29 = vld [vmem:[#allocation5 + $0x990] sm:$0xf0] }
  0x6e   : > { %3307 = vmatpush.bf16.msrb.mxu0 %v5898_v10  ;;  %v6046_v10 = vor.u32 %v6702_v2, %v6043_v4  ;;  %v4466_v27 = vor.u32 %v6313_v21, %v4465_v17  ;;  %v5947_v32 = vld [vmem:[#allocation5 + $0xc90] sm:$0xf0]  ;;  %v4417_v33 = vld [vmem:[#allocation5 + $0x68] sm:$0xf]  ;;  %v6301_v35 = vld [vmem:[#allocation5 + $0x94] sm:$0xf0] }
  0x6f   : > { %3320 = vmatpush.bf16.msrb.mxu1 %v4366_v15  ;;  %v4898_v15 = vor.u32 %v6421_v8, %v4897_v7  ;;  %v4801_v36 = vld [vmem:[#allocation5 + $0x368] sm:$0xf]  ;;  %v5515_v40 = vld [vmem:[#allocation5 + $0x930] sm:$0xf0]  ;;  %v4418_v42 = vor.u32 %v6301_v35, %v4417_v33  ;;  %v6289_v47 = vld [vmem:[#allocation5 + $0x34] sm:$0xf0] }
  0x70   : > { %3333 = vmatpush.bf16.msrb.mxu2 %v4750_v16  ;;  %v5995_v16 = vld [vmem:[#allocation5 + $0xcf0] sm:$0xf0]  ;;  %v4369_v45 = vld [vmem:[#allocation5 + $0x8] sm:$0xf]  ;;  %v6661_v54 = vld [vmem:[#allocation5 + $0xbd4] sm:$0xf0] }
  0x71   : > { %3346 = vmatpush.bf16.msrb.mxu3 %v5134_v23  ;;  %3308 = vmatmul.bf16.vlgmr.msrb.gmra.mxu0 %v7307_v34  ;;  %v4849_v23 = vld [vmem:[#allocation5 + $0x3c8] sm:$0xf]  ;;  %v5899_v44 = vld [vmem:[#allocation5 + $0xc30] sm:$0xf0]  ;;  %v6757_v56 = vld [vmem:[#allocation5 + $0xed4] sm:$0xf0]  ;;  %v4370_v58 = vor.u32 %v6289_v47, %v4369_v45 }
  0x72   : > { %3352 = vmatpush.bf16.msra.mxu0 %v5854_v24  ;;  %3321 = vmatmul.bf16.vlgmr.msrb.gmra.mxu1 %v7296_v19  ;;  %v6409_v24 = vld [vmem:[#allocation5 + $0x3f4] sm:$0xf0]  ;;  %v4753_v48 = vld [vmem:[#allocation5 + $0x308] sm:$0xf]  ;;  %v6367_v59 = vld [vmem:[#allocation5 + $0x2ac] sm:$0xf] }
  0x73   : > { %3365 = vmatpush.bf16.msra.mxu1 %v6238_v25  ;;  %3334 = vmatmul.bf16.vlgmr.msrb.gmra.mxu2 %v7300_v22  ;;  %v5614_v25 = vor.u32 %v6594_v12, %v5611_v13  ;;  %v4850_v31 = vor.u32 %v6409_v24, %v4849_v23  ;;  %v5857_v52 = vld [vmem:[#allocation5 + $0xba8] sm:$0xf]  ;;  %v4707_v60 = vld [vmem:[#allocation5 + $0x2d8] sm:$0xf0]  ;;  %v6553_v2 = vld [vmem:[#allocation5 + $0x874] sm:$0xf0] }
  0x74   : > { %3378 = vmatpush.bf16.msra.mxu2 %v4706_v26  ;;  %3347 = vmatmul.bf16.vlgmr.msrb.gmra.mxu3 %v7294_v18  ;;  %v5998_v26 = vor.u32 %v6690_v14, %v5995_v16  ;;  %v5425_v1 = vld [vmem:[#allocation5 + $0x848] sm:$0xf]  ;;  %v4710_v4 = vor.u32 %v6367_v59, %v4707_v60  ;;  %v6649_v5 = vld [vmem:[#allocation5 + $0xb74] sm:$0xf0]  ;;  %v6355_v8 = vld [vmem:[#allocation5 + $0x24c] sm:$0xf] }
  0x75   : > { %3391 = vmatpush.bf16.msra.mxu3 %v5090_v30  ;;  %v6678_v30 = vld [vmem:[#allocation5 + $0xc64] sm:$0xf]  ;;  %v6193_v6 = vld [vmem:[#allocation5 + $0xe48] sm:$0xf]  ;;  %v6745_v7 = vld [vmem:[#allocation5 + $0xe74] sm:$0xf0] }
  0x76   : > { %3353 = vmatpush.bf16.msra.mxu0 %v5806_v37  ;;  %v6397_v37 = vld [vmem:[#allocation5 + $0x394] sm:$0xf0]  ;;  %v5950_v41 = vor.u32 %v6678_v30, %v5947_v32  ;;  %v6194_v12 = vor.u32 %v6745_v7, %v6193_v6  ;;  %v5377_v13 = vld [vmem:[#allocation5 + $0x7e8] sm:$0xf]  ;;  %v6343_v24 = vld [vmem:[#allocation5 + $0x1ec] sm:$0xf] }
  0x77   : > { %3366 = vmatpush.bf16.msra.mxu1 %v6190_v38  ;;  %v5566_v38 = vor.u32 %v6582_v28, %v5563_v29  ;;  %v4802_v46 = vor.u32 %v6397_v37, %v4801_v36  ;;  %v6541_v14 = vld [vmem:[#allocation5 + $0x814] sm:$0xf0]  ;;  %v6145_v21 = vld [vmem:[#allocation5 + $0xde8] sm:$0xf]  ;;  %v6331_v37 = vld [vmem:[#allocation5 + $0x18c] sm:$0xf] }
  0x78   : > { %3379 = vmatpush.bf16.msra.mxu2 %v4658_v39  ;;  %v6570_v39 = vld [vmem:[#allocation5 + $0x904] sm:$0xf]  ;;  %v6637_v17 = vld [vmem:[#allocation5 + $0xb14] sm:$0xf0]  ;;  %v5329_v29 = vld [vmem:[#allocation5 + $0x788] sm:$0xf] }
  0x79   : > { %3392 = vmatpush.bf16.msra.mxu3 %v5042_v43  ;;  %v6666_v43 = vld [vmem:[#allocation5 + $0xc04] sm:$0xf]  ;;  %v5518_v53 = vor.u32 %v6570_v39, %v5515_v40  ;;  %v6733_v23 = vld [vmem:[#allocation5 + $0xe14] sm:$0xf0]  ;;  %v6097_v35 = vld [vmem:[#allocation5 + $0xd88] sm:$0xf] }
  0x7a   : > { %3354 = vmatpush.bf16.msra.mxu0 %v5758_v49  ;;  %v6385_v49 = vld [vmem:[#allocation5 + $0x334] sm:$0xf0]  ;;  %v5902_v57 = vor.u32 %v6666_v43, %v5899_v44  ;;  %v6146_v28 = vor.u32 %v6733_v23, %v6145_v21  ;;  %v5665_v44 = vld [vmem:[#allocation5 + $0xa28] sm:$0xf] }
  0x7b   : > { %3367 = vmatpush.bf16.msra.mxu1 %v6142_v50  ;;  %v5473_v50 = vld [vmem:[#allocation5 + $0x8a8] sm:$0xf]  ;;  %v6529_v30 = vld [vmem:[#allocation5 + $0x7b4] sm:$0xf0] }
  0x7c   : > { %3380 = vmatpush.bf16.msra.mxu2 %v4610_v51  ;;  %v6565_v51 = vld [vmem:[#allocation5 + $0x8d4] sm:$0xf0]  ;;  %v5330_v39 = vor.u32 %v6529_v30, %v5329_v29  ;;  %v6049_v47 = vld [vmem:[#allocation5 + $0xd28] sm:$0xf]  ;;  %v6559_v29 = vld [vmem:[#allocation5 + $0x8ac] sm:$0xf] }
  0x7d   : > { %3393 = vmatpush.bf16.msra.mxu3 %v4994_v55  ;;  %v6241_v55 = vld [vmem:[#allocation5 + $0xea8] sm:$0xf]  ;;  %v6625_v33 = vld [vmem:[#allocation5 + $0xab4] sm:$0xf0] }
  0x7e   : > { %3355 = vmatpush.bf16.msra.mxu0 %v5710_v61  ;;  %v4754_v61 = vor.u32 %v6385_v49, %v4753_v48  ;;  %v6242_v0 = vor.u32 %v6757_v56, %v6241_v55  ;;  %v6721_v36 = vld [vmem:[#allocation5 + $0xdb4] sm:$0xf0]  ;;  %v6319_v49 = vld [vmem:[#allocation5 + $0x12c] sm:$0xf]  ;;  %v5617_v56 = vld [vmem:[#allocation5 + $0x9c8] sm:$0xf] }
  0x7f   : > { %3368 = vmatpush.bf16.msra.mxu1 %v6094_v62  ;;  %v5474_v62 = vor.u32 %v6565_v51, %v5473_v50  ;;  %v6517_v43 = vld [vmem:[#allocation5 + $0x754] sm:$0xf0]  ;;  %v4515_v50 = vld [vmem:[#allocation5 + $0x158] sm:$0xf0]  ;;  %v6001_v59 = vld [vmem:[#allocation5 + $0xcc8] sm:$0xf] }
  0x80   : > { %3381 = vmatpush.bf16.msra.mxu2 %v4562_v63  ;;  %v5858_v63 = vor.u32 %v6661_v54, %v5857_v52  ;;  %v6709_v48 = vld [vmem:[#allocation5 + $0xd54] sm:$0xf0]  ;;  %v5233_v54 = vld [vmem:[#allocation5 + $0x6c8] sm:$0xf] }
  0x81   : > { %3394 = vmatpush.bf16.msra.mxu3 %v4946_v3  ;;  %v5809_v3 = vld [vmem:[#allocation5 + $0xb48] sm:$0xf]  ;;  %v6505_v55 = vld [vmem:[#allocation5 + $0x6f4] sm:$0xf0] }
  0x82   : > { %3356 = vmatpush.bf16.msra.mxu0 %v5662_v9  ;;  %v4659_v9 = vld [vmem:[#allocation5 + $0x278] sm:$0xf0]  ;;  %v6697_v60 = vld [vmem:[#allocation5 + $0xcf4] sm:$0xf0]  ;;  %v5953_v7 = vld [vmem:[#allocation5 + $0xc68] sm:$0xf] }
  0x83   : > { %3369 = vmatpush.bf16.msra.mxu1 %v6046_v10  ;;  %v5426_v10 = vor.u32 %v6553_v2, %v5425_v1  ;;  %v4662_v16 = vor.u32 %v6355_v8, %v4659_v9  ;;  %v6002_v1 = vor.u32 %v6697_v60, %v6001_v59  ;;  %v5185_v2 = vld [vmem:[#allocation5 + $0x668] sm:$0xf]  ;;  %v6589_v6 = vld [vmem:[#allocation5 + $0x994] sm:$0xf0]  ;;  %v6295_v9 = vld [vmem:[#allocation5 + $0x6c] sm:$0xf] }
  0x84   : > { %3382 = vmatpush.bf16.msra.mxu2 %v4514_v11  ;;  %v5810_v11 = vor.u32 %v6649_v5, %v5809_v3  ;;  %v6493_v3 = vld [vmem:[#allocation5 + $0x694] sm:$0xf0]  ;;  %v5905_v21 = vld [vmem:[#allocation5 + $0xc08] sm:$0xf]  ;;  %v5379_v59 = vld [vmem:[#allocation5 + $0x818] sm:$0xf0] }
  0x85   : > { %3395 = vmatpush.bf16.msra.mxu3 %v4898_v15  ;;  %v5761_v15 = vld [vmem:[#allocation5 + $0xae8] sm:$0xf]  ;;  %v6685_v8 = vld [vmem:[#allocation5 + $0xc94] sm:$0xf0]  ;;  %v6631_v60 = vld [vmem:[#allocation5 + $0xaec] sm:$0xf] }
  0x86   : > { %3357 = vmatpush.bf16.msra.mxu0 %v5614_v25  ;;  %v4611_v25 = vld [vmem:[#allocation5 + $0x218] sm:$0xf0] }
  0x87   : > { %3370 = vmatpush.bf16.msra.mxu1 %v5998_v26  ;;  %v5378_v26 = vor.u32 %v6541_v14, %v5377_v13  ;;  %v4614_v32 = vor.u32 %v6343_v24, %v4611_v25  ;;  %v6481_v13 = vld [vmem:[#allocation5 + $0x634] sm:$0xf0]  ;;  %v6283_v25 = vld [vmem:[#allocation5 + $0xc] sm:$0xf] }
  0x88   : > { %3383 = vmatpush.bf16.msra.mxu2 %v4466_v27  ;;  %v5762_v27 = vor.u32 %v6637_v17, %v5761_v15  ;;  %v5954_v15 = vor.u32 %v6685_v8, %v5953_v7  ;;  %v6577_v17 = vld [vmem:[#allocation5 + $0x934] sm:$0xf0]  ;;  %v5331_v7 = vld [vmem:[#allocation5 + $0x7b8] sm:$0xf0]  ;;  %v6619_v8 = vld [vmem:[#allocation5 + $0xa8c] sm:$0xf] }
  0x89   : > { %3396 = vmatpush.bf16.msra.mxu3 %v4850_v31  ;;  %v5713_v31 = vld [vmem:[#allocation5 + $0xa88] sm:$0xf]  ;;  %v6673_v24 = vld [vmem:[#allocation5 + $0xc34] sm:$0xf0] }
  0x8a   : > { %3358 = vmatpush.bf16.msra.mxu0 %v5566_v38  ;;  %v4563_v38 = vld [vmem:[#allocation5 + $0x1b8] sm:$0xf0]  ;;  %v5714_v40 = vor.u32 %v6625_v33, %v5713_v31 }
  0x8b   : > { %3371 = vmatpush.bf16.msra.mxu1 %v5950_v41  ;;  %v6098_v41 = vor.u32 %v6721_v36, %v6097_v35  ;;  %v4566_v45 = vor.u32 %v6331_v37, %v4563_v38  ;;  %v5475_v31 = vld [vmem:[#allocation5 + $0x8d8] sm:$0xf0]  ;;  %v5906_v36 = vor.u32 %v6673_v24, %v5905_v21  ;;  %v6751_v37 = vld [vmem:[#allocation5 + $0xeac] sm:$0xf] }
  0x8c   : > { %3384 = vmatpush.bf16.msra.mxu2 %v4418_v42  ;;  %v5281_v42 = vld [vmem:[#allocation5 + $0x728] sm:$0xf]  ;;  %v5859_v33 = vld [vmem:[#allocation5 + $0xbd8] sm:$0xf0]  ;;  %v6607_v24 = vld [vmem:[#allocation5 + $0xa2c] sm:$0xf] }
  0x8d   : > { %3397 = vmatpush.bf16.msra.mxu3 %v4802_v46  ;;  %v6613_v46 = vld [vmem:[#allocation5 + $0xa54] sm:$0xf0]  ;;  %v5282_v51 = vor.u32 %v6517_v43, %v5281_v42  ;;  %v6243_v38 = vld [vmem:[#allocation5 + $0xed8] sm:$0xf0]  ;;  %v6451_v43 = vld [vmem:[#allocation5 + $0x54c] sm:$0xf] }
  0x8e   : > { %3359 = vmatpush.bf16.msra.mxu0 %v5518_v53  ;;  %v5666_v52 = vor.u32 %v6613_v46, %v5665_v44  ;;  %v6050_v53 = vor.u32 %v6709_v48, %v6049_v47  ;;  %v5043_v44 = vld [vmem:[#allocation5 + $0x578] sm:$0xf0]  ;;  %v6246_v46 = vor.u32 %v6751_v37, %v6243_v38  ;;  %v6643_v48 = vld [vmem:[#allocation5 + $0xb4c] sm:$0xf] }
  0x8f   : > { %3372 = vmatpush.bf16.msra.mxu1 %v5902_v57  ;;  %v4518_v57 = vor.u32 %v6319_v49, %v4515_v50  ;;  %v5427_v47 = vld [vmem:[#allocation5 + $0x878] sm:$0xf0]  ;;  %v6739_v50 = vld [vmem:[#allocation5 + $0xe4c] sm:$0xf] }
  0x90   : > { %3385 = vmatpush.bf16.msra.mxu2 %v4370_v58  ;;  %v6601_v58 = vld [vmem:[#allocation5 + $0x9f4] sm:$0xf0]  ;;  %v5811_v49 = vld [vmem:[#allocation5 + $0xb78] sm:$0xf0]  ;;  %v6595_v37 = vld [vmem:[#allocation5 + $0x9cc] sm:$0xf] }
  0x91   : > { %3398 = vmatpush.bf16.msra.mxu3 %v4754_v61  ;;  %3360 = vmatmul.bf16.vlgmr.msra.gmra.mxu0 %v7298_v20  ;;  %v6307_v61 = vld [vmem:[#allocation5 + $0xcc] sm:$0xf]  ;;  %v5619_v38 = vld [vmem:[#allocation5 + $0x9f8] sm:$0xf0] }
  0x92   : > { %3404 = vmatpush.bf16.msrb.mxu0 %v5474_v62  ;;  %3373 = vmatmul.bf16.vlgmr.msra.gmra.mxu1 %v7307_v34  ;;  %v4467_v62 = vld [vmem:[#allocation5 + $0xf8] sm:$0xf0] }
  0x93   : > { %3417 = vmatpush.bf16.msrb.mxu1 %v5858_v63  ;;  %3386 = vmatmul.bf16.vlgmr.msra.gmra.mxu2 %v7296_v19  ;;  %v5234_v63 = vor.u32 %v6505_v55, %v5233_v54  ;;  %v4470_v5 = vor.u32 %v6307_v61, %v4467_v62  ;;  %v5814_v54 = vor.u32 %v6643_v48, %v5811_v49  ;;  %v6439_v55 = vld [vmem:[#allocation5 + $0x4ec] sm:$0xf]  ;;  %v5763_v61 = vld [vmem:[#allocation5 + $0xb18] sm:$0xf0] }
  0x94   : > { %3430 = vmatpush.bf16.msrb.mxu2 %v6242_v0  ;;  %3399 = vmatmul.bf16.vlgmr.msra.gmra.mxu3 %v7300_v22  ;;  %v5618_v0 = vor.u32 %v6601_v58, %v5617_v56  ;;  %v4995_v56 = vld [vmem:[#allocation5 + $0x518] sm:$0xf0]  ;;  %v6727_v62 = vld [vmem:[#allocation5 + $0xdec] sm:$0xf] }
  0x95   : > { %3443 = vmatpush.bf16.msrb.mxu3 %v4710_v4  ;;  %v5569_v4 = vld [vmem:[#allocation5 + $0x968] sm:$0xf]  ;;  %v5187_v48 = vld [vmem:[#allocation5 + $0x698] sm:$0xf0]  ;;  %v6583_v49 = vld [vmem:[#allocation5 + $0x96c] sm:$0xf] }
  0x96   : > { %3405 = vmatpush.bf16.msrb.mxu0 %v5426_v10  ;;  %v4419_v10 = vld [vmem:[#allocation5 + $0x98] sm:$0xf0]  ;;  %v5570_v14 = vor.u32 %v6589_v6, %v5569_v4 }
  0x97   : > { %3418 = vmatpush.bf16.msrb.mxu1 %v5810_v11  ;;  %v5186_v11 = vor.u32 %v6493_v3, %v5185_v2  ;;  %v4422_v23 = vor.u32 %v6295_v9, %v4419_v10  ;;  %v5766_v2 = vor.u32 %v6631_v60, %v5763_v61  ;;  %v6427_v3 = vld [vmem:[#allocation5 + $0x48c] sm:$0xf]  ;;  %v4947_v4 = vld [vmem:[#allocation5 + $0x4b8] sm:$0xf0] }
  0x98   : > { %3431 = vmatpush.bf16.msrb.mxu2 %v6194_v12  ;;  %v5137_v12 = vld [vmem:[#allocation5 + $0x608] sm:$0xf]  ;;  %v5715_v9 = vld [vmem:[#allocation5 + $0xab8] sm:$0xf0]  ;;  %v6715_v10 = vld [vmem:[#allocation5 + $0xd8c] sm:$0xf] }
  0x99   : > { %3444 = vmatpush.bf16.msrb.mxu3 %v4662_v16  ;;  %v5521_v16 = vld [vmem:[#allocation5 + $0x908] sm:$0xf]  ;;  %v5138_v30 = vor.u32 %v6481_v13, %v5137_v12  ;;  %v4950_v12 = vor.u32 %v6427_v3, %v4947_v4  ;;  %v6571_v60 = vld [vmem:[#allocation5 + $0x90c] sm:$0xf]  ;;  %v5097_v3 = vld [vmem:[#allocation5 + $0x5b0] sm:$0xf] }
  0x9a   : > { %3406 = vmatpush.bf16.msrb.mxu0 %v5378_v26  ;;  %v4371_v26 = vld [vmem:[#allocation5 + $0x38] sm:$0xf0]  ;;  %v5522_v35 = vor.u32 %v6577_v17, %v5521_v16  ;;  %v6511_v17 = vld [vmem:[#allocation5 + $0x72c] sm:$0xf] }
  0x9b   : > { %3419 = vmatpush.bf16.msrb.mxu1 %v5762_v27  ;;  %v6463_v27 = vld [vmem:[#allocation5 + $0x5ac] sm:$0xf]  ;;  %v4899_v16 = vld [vmem:[#allocation5 + $0x458] sm:$0xf0] }
  0x9c   : > { %3432 = vmatpush.bf16.msrb.mxu2 %v6146_v28  ;;  %v5091_v28 = vld [vmem:[#allocation5 + $0x5d8] sm:$0xf0] }
  0x9d   : > { %3445 = vmatpush.bf16.msrb.mxu3 %v4614_v32  ;;  %v6655_v32 = vld [vmem:[#allocation5 + $0xbac] sm:$0xf] }
  0x9e   : > { %3407 = vmatpush.bf16.msrb.mxu0 %v5330_v39  ;;  %v4374_v39 = vor.u32 %v6283_v25, %v4371_v26  ;;  %v5862_v42 = vor.u32 %v6655_v32, %v5859_v33  ;;  %v5667_v25 = vld [vmem:[#allocation5 + $0xa58] sm:$0xf0]  ;;  %v6703_v26 = vld [vmem:[#allocation5 + $0xd2c] sm:$0xf] }
  0x9f   : > { %3420 = vmatpush.bf16.msrb.mxu1 %v5714_v40  ;;  %v5094_v40 = vor.u32 %v6463_v27, %v5091_v28  ;;  %v6051_v27 = vld [vmem:[#allocation5 + $0xd58] sm:$0xf0]  ;;  %v6499_v33 = vld [vmem:[#allocation5 + $0x6cc] sm:$0xf] }
  0xa0   : > { %3433 = vmatpush.bf16.msrb.mxu2 %v6098_v41  ;;  %v5478_v41 = vor.u32 %v6559_v29, %v5475_v31  ;;  %v6403_v31 = vld [vmem:[#allocation5 + $0x3cc] sm:$0xf]  ;;  %v4851_v32 = vld [vmem:[#allocation5 + $0x3f8] sm:$0xf0] }
  0xa1   : > { %3446 = vmatpush.bf16.msrb.mxu3 %v4566_v45  ;;  %v6547_v45 = vld [vmem:[#allocation5 + $0x84c] sm:$0xf] }
  0xa2   : > { %3408 = vmatpush.bf16.msrb.mxu0 %v5282_v51  ;;  %v6195_v51 = vld [vmem:[#allocation5 + $0xe78] sm:$0xf0] }
  0xa3   : > { %3421 = vmatpush.bf16.msrb.mxu1 %v5666_v52  ;;  %v5046_v52 = vor.u32 %v6451_v43, %v5043_v44  ;;  %v6198_v58 = vor.u32 %v6739_v50, %v6195_v51  ;;  %v5622_v43 = vor.u32 %v6595_v37, %v5619_v38  ;;  %v6391_v44 = vld [vmem:[#allocation5 + $0x36c] sm:$0xf]  ;;  %v5571_v50 = vld [vmem:[#allocation5 + $0x998] sm:$0xf0]  ;;  %v6446_v37 = vld [vmem:[#allocation5 + $0x51c] sm:$0xf0] }
  0xa4   : > { %3434 = vmatpush.bf16.msrb.mxu2 %v6050_v53  ;;  %v5430_v53 = vor.u32 %v6547_v45, %v5427_v47  ;;  %v4803_v45 = vld [vmem:[#allocation5 + $0x398] sm:$0xf0]  ;;  %v6679_v51 = vld [vmem:[#allocation5 + $0xc6c] sm:$0xf]  ;;  %v5385_v38 = vld [vmem:[#allocation5 + $0x7f0] sm:$0xf] }
  0xa5   : > { %3447 = vmatpush.bf16.msrb.mxu3 %v4518_v57  ;;  %v6535_v57 = vld [vmem:[#allocation5 + $0x7ec] sm:$0xf] }
  0xa6   : > { %3409 = vmatpush.bf16.msrb.mxu0 %v5234_v63  ;;  %v6147_v63 = vld [vmem:[#allocation5 + $0xe18] sm:$0xf0] }
  0xa7   : > { %3422 = vmatpush.bf16.msrb.mxu1 %v5618_v0  ;;  %v4998_v0 = vor.u32 %v6439_v55, %v4995_v56  ;;  %v6150_v6 = vor.u32 %v6727_v62, %v6147_v63  ;;  %v4755_v55 = vld [vmem:[#allocation5 + $0x338] sm:$0xf0]  ;;  %v6667_v63 = vld [vmem:[#allocation5 + $0xc0c] sm:$0xf] }
  0xa8   : > { %3435 = vmatpush.bf16.msrb.mxu2 %v6002_v1  ;;  %v5382_v1 = vor.u32 %v6535_v57, %v5379_v59  ;;  %v5574_v57 = vor.u32 %v6583_v49, %v5571_v50  ;;  %v5139_v59 = vld [vmem:[#allocation5 + $0x638] sm:$0xf0]  ;;  %v6434_v49 = vld [vmem:[#allocation5 + $0x4bc] sm:$0xf0]  ;;  %v5337_v50 = vld [vmem:[#allocation5 + $0x790] sm:$0xf] }
  0xa9   : > { %3448 = vmatpush.bf16.msrb.mxu3 %v4470_v5  ;;  %v6523_v5 = vld [vmem:[#allocation5 + $0x78c] sm:$0xf]  ;;  %v5523_v62 = vld [vmem:[#allocation5 + $0x938] sm:$0xf0] }
  0xaa   : > { %3410 = vmatpush.bf16.msrb.mxu0 %v5186_v11  ;;  %v6099_v11 = vld [vmem:[#allocation5 + $0xdb8] sm:$0xf0]  ;;  %v5334_v13 = vor.u32 %v6523_v5, %v5331_v7  ;;  %v6470_v5 = vld [vmem:[#allocation5 + $0x5dc] sm:$0xf0] }
  0xab   : > { %3423 = vmatpush.bf16.msrb.mxu1 %v5570_v14  ;;  %v5718_v14 = vor.u32 %v6619_v8, %v5715_v9  ;;  %v6102_v21 = vor.u32 %v6715_v10, %v6099_v11  ;;  %v6566_v7 = vld [vmem:[#allocation5 + $0x8dc] sm:$0xf0]  ;;  %v5526_v9 = vor.u32 %v6571_v60, %v5523_v62  ;;  %v5865_v10 = vld [vmem:[#allocation5 + $0xbb0] sm:$0xf] }
  0xac   : > { %3436 = vmatpush.bf16.msrb.mxu2 %v5954_v15  ;;  %v6415_v15 = vld [vmem:[#allocation5 + $0x42c] sm:$0xf]  ;;  %v6662_v11 = vld [vmem:[#allocation5 + $0xbdc] sm:$0xf0]  ;;  %v5289_v62 = vld [vmem:[#allocation5 + $0x730] sm:$0xf] }
  0xad   : > { %3449 = vmatpush.bf16.msrb.mxu3 %v4422_v23  ;;  %v5283_v23 = vld [vmem:[#allocation5 + $0x758] sm:$0xf0]  ;;  %v4902_v28 = vor.u32 %v6415_v15, %v4899_v16  ;;  %v4665_v16 = vld [vmem:[#allocation5 + $0x250] sm:$0xf]  ;;  %v6422_v60 = vld [vmem:[#allocation5 + $0x45c] sm:$0xf0] }
  0xae   : > { %3411 = vmatpush.bf16.msrb.mxu0 %v5138_v30  ;;  %v5286_v29 = vor.u32 %v6511_v17, %v5283_v23  ;;  %v5670_v30 = vor.u32 %v6607_v24, %v5667_v25  ;;  %v6362_v17 = vld [vmem:[#allocation5 + $0x27c] sm:$0xf0]  ;;  %v5866_v23 = vor.u32 %v6662_v11, %v5865_v10  ;;  %v5433_v25 = vld [vmem:[#allocation5 + $0x850] sm:$0xf] }
  0xaf   : > { %3424 = vmatpush.bf16.msrb.mxu1 %v5522_v35  ;;  %v6054_v35 = vor.u32 %v6703_v26, %v6051_v27  ;;  %v6458_v24 = vld [vmem:[#allocation5 + $0x57c] sm:$0xf0]  ;;  %v5817_v27 = vld [vmem:[#allocation5 + $0xb50] sm:$0xf] }
  0xb0   : > { %3437 = vmatpush.bf16.msrb.mxu2 %v5906_v36  ;;  %v5235_v36 = vld [vmem:[#allocation5 + $0x6f8] sm:$0xf0]  ;;  %v6554_v26 = vld [vmem:[#allocation5 + $0x87c] sm:$0xf0] }
  0xb1   : > { %3450 = vmatpush.bf16.msrb.mxu3 %v4374_v39  ;;  %3412 = vmatmul.bf16.vlgmr.msrb.gmra.mxu0 %v7294_v18  ;;  %v6691_v39 = vld [vmem:[#allocation5 + $0xccc] sm:$0xf]  ;;  %v6410_v11 = vld [vmem:[#allocation5 + $0x3fc] sm:$0xf0] }
  0xb2   : > { %3456 = vmatpush.bf16.msra.mxu0 %v5094_v40  ;;  %3425 = vmatmul.bf16.vlgmr.msrb.gmra.mxu1 %v7298_v20  ;;  %v6003_v40 = vld [vmem:[#allocation5 + $0xcf8] sm:$0xf0] }
  0xb3   : > { %3469 = vmatpush.bf16.msra.mxu1 %v5478_v41  ;;  %3438 = vmatmul.bf16.vlgmr.msrb.gmra.mxu2 %v7307_v34  ;;  %v4854_v41 = vor.u32 %v6403_v31, %v4851_v32  ;;  %v6006_v47 = vor.u32 %v6691_v39, %v6003_v40  ;;  %v5434_v31 = vor.u32 %v6554_v26, %v5433_v25  ;;  %v4617_v32 = vld [vmem:[#allocation5 + $0x1f0] sm:$0xf]  ;;  %v6542_v39 = vld [vmem:[#allocation5 + $0x81c] sm:$0xf0] }
  0xb4   : > { %3482 = vmatpush.bf16.msra.mxu2 %v5862_v42  ;;  %3451 = vmatmul.bf16.vlgmr.msrb.gmra.mxu3 %v7296_v19  ;;  %v5238_v42 = vor.u32 %v6499_v33, %v5235_v36  ;;  %v6350_v33 = vld [vmem:[#allocation5 + $0x21c] sm:$0xf0]  ;;  %v5769_v40 = vld [vmem:[#allocation5 + $0xaf0] sm:$0xf] }
  0xb5   : > { %3495 = vmatpush.bf16.msra.mxu3 %v6246_v46  ;;  %v6487_v46 = vld [vmem:[#allocation5 + $0x66c] sm:$0xf]  ;;  %v6302_v25 = vld [vmem:[#allocation5 + $0x9c] sm:$0xf0]  ;;  %v4809_v26 = vld [vmem:[#allocation5 + $0x370] sm:$0xf] }
  0xb6   : > { %3457 = vmatpush.bf16.msra.mxu0 %v5046_v52  ;;  %v5955_v52 = vld [vmem:[#allocation5 + $0xc98] sm:$0xf0]  ;;  %v5190_v56 = vor.u32 %v6487_v46, %v5187_v48  ;;  %v6338_v46 = vld [vmem:[#allocation5 + $0x1bc] sm:$0xf0] }
  0xb7   : > { %3470 = vmatpush.bf16.msra.mxu1 %v5430_v53  ;;  %v4806_v53 = vor.u32 %v6391_v44, %v4803_v45  ;;  %v5958_v61 = vor.u32 %v6679_v51, %v5955_v52  ;;  %v5386_v44 = vor.u32 %v6542_v39, %v5385_v38  ;;  %v4569_v45 = vld [vmem:[#allocation5 + $0x190] sm:$0xf]  ;;  %v6530_v51 = vld [vmem:[#allocation5 + $0x7bc] sm:$0xf0] }
  0xb8   : > { %3483 = vmatpush.bf16.msra.mxu2 %v5814_v54  ;;  %v6379_v54 = vld [vmem:[#allocation5 + $0x30c] sm:$0xf]  ;;  %v5721_v52 = vld [vmem:[#allocation5 + $0xa90] sm:$0xf]  ;;  %v6290_v39 = vld [vmem:[#allocation5 + $0x3c] sm:$0xf0] }
  0xb9   : > { %3496 = vmatpush.bf16.msra.mxu3 %v6198_v58  ;;  %v6475_v58 = vld [vmem:[#allocation5 + $0x60c] sm:$0xf]  ;;  %v4758_v4 = vor.u32 %v6379_v54, %v4755_v55  ;;  %v4570_v54 = vor.u32 %v6338_v46, %v4569_v45  ;;  %v4521_v55 = vld [vmem:[#allocation5 + $0x130] sm:$0xf] }
  0xba   : > { %3458 = vmatpush.bf16.msra.mxu0 %v4998_v0  ;;  %v5907_v0 = vld [vmem:[#allocation5 + $0xc38] sm:$0xf0]  ;;  %v5142_v8 = vor.u32 %v6475_v58, %v5139_v59  ;;  %v6326_v58 = vld [vmem:[#allocation5 + $0x15c] sm:$0xf0]  ;;  %v4905_v59 = vld [vmem:[#allocation5 + $0x430] sm:$0xf] }
  0xbb   : > { %3471 = vmatpush.bf16.msra.mxu1 %v5382_v1  ;;  %v4713_v1 = vld [vmem:[#allocation5 + $0x2b0] sm:$0xf] }
  0xbc   : > { %3484 = vmatpush.bf16.msra.mxu2 %v5766_v2  ;;  %v6374_v2 = vld [vmem:[#allocation5 + $0x2dc] sm:$0xf0]  ;;  %v4377_v38 = vld [vmem:[#allocation5 + $0x10] sm:$0xf] }
  0xbd   : > { %3497 = vmatpush.bf16.msra.mxu3 %v6150_v6  ;;  %v5481_v6 = vld [vmem:[#allocation5 + $0x8b0] sm:$0xf] }
  0xbe   : > { %3459 = vmatpush.bf16.msra.mxu0 %v4950_v12  ;;  %v5910_v12 = vor.u32 %v6667_v63, %v5907_v0  ;;  %v5482_v15 = vor.u32 %v6566_v7, %v5481_v6  ;;  %v6518_v63 = vld [vmem:[#allocation5 + $0x75c] sm:$0xf0]  ;;  %v4473_v6 = vld [vmem:[#allocation5 + $0xd0] sm:$0xf] }
  0xbf   : > { %3472 = vmatpush.bf16.msra.mxu1 %v5334_v13  ;;  %v4714_v13 = vor.u32 %v6374_v2, %v4713_v1  ;;  %v7325_v0 = vld [vmem:[#allocation7] sm:$0xff]  ;;  %v5673_v1 = vld [vmem:[#allocation5 + $0xa30] sm:$0xf] }
  0xc0   : > { %3485 = vmatpush.bf16.msra.mxu2 %v5718_v14  ;;  %v5098_v14 = vor.u32 %v6470_v5, %v5097_v3  ;;  %v6614_v2 = vld [vmem:[#allocation5 + $0xa5c] sm:$0xf0]  ;;  %v4522_v3 = vor.u32 %v6326_v58, %v4521_v55  ;;  %v5290_v5 = vor.u32 %v6518_v63, %v5289_v62  ;;  %v4378_v55 = vor.u32 %v6290_v39, %v4377_v38  ;;  %v5099_v58 = vld [vmem:[#allocation5 + $0x5e0] sm:$0xf0]  ;;  %v6560_v63 = vld [vmem:[#allocation5 + $0x8b4] sm:$0xf] }
  0xc1   : > { %3498 = vmatpush.bf16.msra.mxu3 %v6102_v21  ;;  %v5049_v21 = vld [vmem:[#allocation5 + $0x550] sm:$0xf]  ;;  %v6314_v7 = vld [vmem:[#allocation5 + $0xfc] sm:$0xf0]  ;;  %v5674_v10 = vor.u32 %v6614_v2, %v5673_v1  ;;  %v5483_v1 = vld [vmem:[#allocation5 + $0x8e0] sm:$0xf0] }
  0xc2   : > { %3460 = vmatpush.bf16.msra.mxu0 %v4902_v28  ;;  %v6650_v28 = vld [vmem:[#allocation5 + $0xb7c] sm:$0xf0]  ;;  %v6105_v38 = vld [vmem:[#allocation5 + $0xd90] sm:$0xf] }
  0xc3   : > { %3473 = vmatpush.bf16.msra.mxu1 %v5286_v29  ;;  %v4666_v29 = vor.u32 %v6362_v17, %v4665_v16  ;;  %v5818_v36 = vor.u32 %v6650_v28, %v5817_v27  ;;  %v4474_v16 = vor.u32 %v6314_v7, %v4473_v6  ;;  %v6201_v7 = vld [vmem:[#allocation5 + $0xe50] sm:$0xf]  ;;  %v6722_v39 = vld [vmem:[#allocation5 + $0xdbc] sm:$0xf0] }
  0xc4   : > { %3486 = vmatpush.bf16.msra.mxu2 %v5670_v30  ;;  %v5050_v30 = vor.u32 %v6458_v24, %v5049_v21  ;;  %v4425_v24 = vld [vmem:[#allocation5 + $0x70] sm:$0xf] }
  0xc5   : > { %3499 = vmatpush.bf16.msra.mxu3 %v6054_v35  ;;  %v5001_v35 = vld [vmem:[#allocation5 + $0x4f0] sm:$0xf] }
  0xc6   : > { %3461 = vmatpush.bf16.msra.mxu0 %v4854_v41  ;;  %v6638_v41 = vld [vmem:[#allocation5 + $0xb1c] sm:$0xf0] }
  0xc7   : > { %3474 = vmatpush.bf16.msra.mxu1 %v5238_v42  ;;  %v4618_v42 = vor.u32 %v6350_v33, %v4617_v32  ;;  %v5770_v48 = vor.u32 %v6638_v41, %v5769_v40  ;;  %v6494_v32 = vld [vmem:[#allocation5 + $0x69c] sm:$0xf0]  ;;  %v5577_v33 = vld [vmem:[#allocation5 + $0x970] sm:$0xf] }
  0xc8   : > { %3487 = vmatpush.bf16.msra.mxu2 %v5622_v43  ;;  %v5002_v43 = vor.u32 %v6446_v37, %v5001_v35  ;;  %v6590_v35 = vld [vmem:[#allocation5 + $0x99c] sm:$0xf0]  ;;  %v4426_v37 = vor.u32 %v6302_v25, %v4425_v24  ;;  %v6153_v25 = vld [vmem:[#allocation5 + $0xdf0] sm:$0xf] }
  0xc9   : > { %3500 = vmatpush.bf16.msra.mxu3 %v6006_v47  ;;  %v4953_v47 = vld [vmem:[#allocation5 + $0x490] sm:$0xf]  ;;  %v5578_v46 = vor.u32 %v6590_v35, %v5577_v33  ;;  %v5387_v33 = vld [vmem:[#allocation5 + $0x820] sm:$0xf0] }
  0xca   : > { %3462 = vmatpush.bf16.msra.mxu0 %v4806_v53  ;;  %v6626_v53 = vld [vmem:[#allocation5 + $0xabc] sm:$0xf0] }
  0xcb   : > { %3475 = vmatpush.bf16.msra.mxu1 %v5190_v56  ;;  %v4954_v56 = vor.u32 %v6434_v49, %v4953_v47  ;;  %v6482_v47 = vld [vmem:[#allocation5 + $0x63c] sm:$0xf0] }
  0xcc   : > { %3488 = vmatpush.bf16.msra.mxu2 %v5574_v57  ;;  %v5338_v57 = vor.u32 %v6530_v51, %v5337_v50  ;;  %v6578_v49 = vld [vmem:[#allocation5 + $0x93c] sm:$0xf0] }
  0xcd   : > { %3501 = vmatpush.bf16.msra.mxu3 %v5958_v61  ;;  %v5722_v61 = vor.u32 %v6626_v53, %v5721_v52  ;;  %v6249_v52 = vld [vmem:[#allocation5 + $0xeb0] sm:$0xf]  ;;  %v6758_v53 = vld [vmem:[#allocation5 + $0xedc] sm:$0xf0] }
  0xce   : > { %3463 = vmatpush.bf16.msra.mxu0 %v4758_v4  ;;  %v4906_v4 = vor.u32 %v6422_v60, %v4905_v59 }
  0xcf   : > { %3476 = vmatpush.bf16.msra.mxu1 %v5142_v8  ;;  %v4857_v8 = vld [vmem:[#allocation5 + $0x3d0] sm:$0xf] }
  0xd0   : > { %3489 = vmatpush.bf16.msra.mxu2 %v5526_v9  ;;  %v818_v9 = vunpack.c.l.bf16 %v7325_v0  ;;  %v4858_v21 = vor.u32 %v6410_v11, %v4857_v8  ;;  %v6746_v8 = vld [vmem:[#allocation5 + $0xe7c] sm:$0xf0]  ;;  %v4667_v11 = vld [vmem:[#allocation5 + $0x280] sm:$0xf0] }
  0xd1   : > { %3502 = vmatpush.bf16.msra.mxu3 %v5910_v12  ;;  %3464 = vmatmul.bf16.vlgmr.msra.gmra.mxu0 %v7300_v22  ;;  %v5241_v12 = vld [vmem:[#allocation5 + $0x6d0] sm:$0xf] }
  0xd2   : > { %3508 = vmatpush.bf16.msrb.mxu0 %v4714_v13  ;;  %3477 = vmatmul.bf16.vlgmr.msra.gmra.mxu1 %v7294_v18  ;;  %v6506_v13 = vld [vmem:[#allocation5 + $0x6fc] sm:$0xf0] }
  0xd3   : > { %3521 = vmatpush.bf16.msrb.mxu1 %v5098_v14  ;;  %3490 = vmatmul.bf16.vlgmr.msra.gmra.mxu2 %v7298_v20  ;;  %v5625_v14 = vld [vmem:[#allocation5 + $0x9d0] sm:$0xf] }
  0xd4   : > { %3534 = vmatpush.bf16.msrb.mxu2 %v5482_v15  ;;  %3503 = vmatmul.bf16.vlgmr.msra.gmra.mxu3 %v7307_v34  ;;  %v6602_v15 = vld [vmem:[#allocation5 + $0x9fc] sm:$0xf0] }
  0xd5   : > { %3547 = vmatpush.bf16.msrb.mxu3 %v5866_v23  ;;  %v3257_v17 = vpop.f32.mrf.mxu0  ;;  %v5242_v23 = vor.u32 %v6506_v13, %v5241_v12  ;;  %v6452_v12 = vld [vmem:[#allocation5 + $0x554] sm:$0xf]  ;;  %v5051_v13 = vld [vmem:[#allocation5 + $0x580] sm:$0xf0] }
  0xd6   : > { %3509 = vmatpush.bf16.msrb.mxu0 %v4666_v29  ;;  %v3258_v27 = vadd.f32 %v3257_v17, %v818_v9  ;;  %v3270_v28 = vpop.f32.mrf.mxu1  ;;  %v5626_v29 = vor.u32 %v6602_v15, %v5625_v14  ;;  %v6356_v9 = vld [vmem:[#allocation5 + $0x254] sm:$0xf]  ;;  %v5435_v15 = vld [vmem:[#allocation5 + $0x880] sm:$0xf0]  ;;  %v6202_v17 = vor.u32 %v6746_v8, %v6201_v7  ;;  %v5054_v24 = vor.u32 %v6452_v12, %v5051_v13 }
  0xd7   : > { %3522 = vmatpush.bf16.msrb.mxu1 %v5050_v30  ;;  %v6398_v30 = vld [vmem:[#allocation5 + $0x39c] sm:$0xf0]  ;;  %v6548_v14 = vld [vmem:[#allocation5 + $0x854] sm:$0xf]  ;;  %v4475_v7 = vld [vmem:[#allocation5 + $0x100] sm:$0xf0] }
  0xd8   : > { %3535 = vmatpush.bf16.msrb.mxu2 %v5434_v31  ;;  %v5193_v31 = vld [vmem:[#allocation5 + $0x670] sm:$0xf]  ;;  %v4810_v40 = vor.u32 %v6398_v30, %v4809_v26  ;;  %v6734_v26 = vld [vmem:[#allocation5 + $0xe1c] sm:$0xf0]  ;;  %v6440_v30 = vld [vmem:[#allocation5 + $0x4f4] sm:$0xf] }
  0xd9   : > { %3548 = vmatpush.bf16.msrb.mxu3 %v5818_v36  ;;  %v3271_v36 = vadd.f32 %v3270_v28, %v3258_v27  ;;  %v5194_v41 = vor.u32 %v6494_v32, %v5193_v31  ;;  %v6344_v27 = vld [vmem:[#allocation5 + $0x1f4] sm:$0xf]  ;;  %v5438_v28 = vor.u32 %v6548_v14, %v5435_v15  ;;  %v5003_v31 = vld [vmem:[#allocation5 + $0x520] sm:$0xf0]  ;;  %v6154_v35 = vor.u32 %v6734_v26, %v6153_v25  ;;  %v6686_v25 = vld [vmem:[#allocation5 + $0xc9c] sm:$0xf0] }
  0xda   : > { %3510 = vmatpush.bf16.msrb.mxu0 %v4618_v42  ;;  %v4761_v42 = vld [vmem:[#allocation5 + $0x310] sm:$0xf]  ;;  %v3283_v45 = vpop.f32.mrf.mxu2  ;;  %v6536_v32 = vld [vmem:[#allocation5 + $0x7f4] sm:$0xf]  ;;  %v5243_v12 = vld [vmem:[#allocation5 + $0x700] sm:$0xf0] }
  0xdb   : > { %3523 = vmatpush.bf16.msrb.mxu1 %v5002_v43  ;;  %v6386_v43 = vld [vmem:[#allocation5 + $0x33c] sm:$0xf0]  ;;  %v3284_v50 = vadd.f32 %v3283_v45, %v3271_v36  ;;  %v6524_v45 = vld [vmem:[#allocation5 + $0x794] sm:$0xf] }
  0xdc   : > { %3536 = vmatpush.bf16.msrb.mxu2 %v5386_v44  ;;  %v5145_v44 = vld [vmem:[#allocation5 + $0x610] sm:$0xf]  ;;  %v6404_v8 = vld [vmem:[#allocation5 + $0x3d4] sm:$0xf] }
  0xdd   : > { %3549 = vmatpush.bf16.msrb.mxu3 %v5770_v48  ;;  %v5529_v48 = vld [vmem:[#allocation5 + $0x910] sm:$0xf]  ;;  %v3296_v51 = vpop.f32.mrf.mxu3  ;;  %v3259_v60 = vpop.f32.mrf.mxu0  ;;  %v5146_v62 = vor.u32 %v6482_v47, %v5145_v44  ;;  %v4955_v44 = vld [vmem:[#allocation5 + $0x4c0] sm:$0xf0]  ;;  %v6296_v26 = vld [vmem:[#allocation5 + $0x74] sm:$0xf] }
  0xde   : > { %3511 = vmatpush.bf16.msrb.mxu0 %v4570_v54  ;;  %v6368_v54 = vld [vmem:[#allocation5 + $0x2b4] sm:$0xf]  ;;  %v7328_v59 = vadd.f32 %v3296_v51, %v3284_v50  ;;  %v3272_v2 = vpop.f32.mrf.mxu1 }
  0xdf   : > { %3524 = vmatpush.bf16.msrb.mxu1 %v4954_v56  ;;  %v4715_v56 = vld [vmem:[#allocation5 + $0x2e0] sm:$0xf0]  ;;  %v6416_v60 = vld [vmem:[#allocation5 + $0x434] sm:$0xf] }
  0xe0   : > { %3537 = vmatpush.bf16.msrb.mxu2 %v5338_v57  ;;  %v6464_v57 = vld [vmem:[#allocation5 + $0x5b4] sm:$0xf] }
  0xe1   : > { %3550 = vmatpush.bf16.msrb.mxu3 %v5722_v61  ;;  %v4762_v61 = vor.u32 %v6386_v43, %v4761_v42  ;;  %v5102_v6 = vor.u32 %v6464_v57, %v5099_v58  ;;  %v4571_v42 = vld [vmem:[#allocation5 + $0x1c0] sm:$0xf0]  ;;  %v6428_v43 = vld [vmem:[#allocation5 + $0x494] sm:$0xf] }
  0xe2   : > { %3512 = vmatpush.bf16.msrb.mxu0 %v4522_v3  ;;  %v5530_v3 = vor.u32 %v6578_v49, %v5529_v48  ;;  %v819_v48 = vunpack.c.h.bf16 %v7325_v0  ;;  %v6106_v49 = vor.u32 %v6722_v39, %v6105_v38  ;;  %v4523_v58 = vld [vmem:[#allocation5 + $0x160] sm:$0xf0] }
  0xe3   : > { %3525 = vmatpush.bf16.msrb.mxu1 %v4906_v4  ;;  %v6250_v4 = vor.u32 %v6758_v53, %v6249_v52  ;;  %v4958_v53 = vor.u32 %v6428_v43, %v4955_v44  ;;  %v5291_v0 = vld [vmem:[#allocation5 + $0x760] sm:$0xf0] }
  0xe4   : > { %3538 = vmatpush.bf16.msrb.mxu2 %v5290_v5  ;;  %v4718_v5 = vor.u32 %v6368_v54, %v4715_v56  ;;  %v6057_v54 = vld [vmem:[#allocation5 + $0xd30] sm:$0xf]  ;;  %v6320_v56 = vld [vmem:[#allocation5 + $0x134] sm:$0xf]  ;;  %v4763_v44 = vld [vmem:[#allocation5 + $0x340] sm:$0xf0] }
  0xe5   : > { %3551 = vmatpush.bf16.msrb.mxu3 %v5674_v10  ;;  %v5486_v10 = vor.u32 %v6560_v63, %v5483_v1 }
  0xe6   : > { %3513 = vmatpush.bf16.msrb.mxu0 %v4474_v16  ;;  %v3285_v16 = vpop.f32.mrf.mxu2 }
  0xe7   : > { %3526 = vmatpush.bf16.msrb.mxu1 %v4858_v21  ;;  %v3298_v21 = vpop.f32.mrf.mxu3 }
  0xe8   : > { %3539 = vmatpush.bf16.msrb.mxu2 %v5242_v23  ;;  %v4670_v23 = vor.u32 %v6356_v9, %v4667_v11  ;;  %v4859_v9 = vld [vmem:[#allocation5 + $0x400] sm:$0xf0]  ;;  %v6500_v11 = vld [vmem:[#allocation5 + $0x6d4] sm:$0xf] }
  0xe9   : > { %3552 = vmatpush.bf16.msrb.mxu3 %v5626_v29  ;;  %v4619_v29 = vld [vmem:[#allocation5 + $0x220] sm:$0xf0] }
  0xea   : > { %3514 = vmatpush.bf16.msrb.mxu0 %v4426_v37  ;;  %v4622_v36 = vor.u32 %v6344_v27, %v4619_v29  ;;  %v5006_v37 = vor.u32 %v6440_v30, %v5003_v31  ;;  %v4427_v29 = vld [vmem:[#allocation5 + $0xa0] sm:$0xf0]  ;;  %v6392_v30 = vld [vmem:[#allocation5 + $0x374] sm:$0xf] }
  0xeb   : > { %3527 = vmatpush.bf16.msrb.mxu1 %v4810_v40  ;;  %v6332_v40 = vld [vmem:[#allocation5 + $0x194] sm:$0xf]  ;;  %v4811_v31 = vld [vmem:[#allocation5 + $0x3a0] sm:$0xf0]  ;;  %v4430_v38 = vor.u32 %v6296_v26, %v4427_v29 }
  0xec   : > { %3540 = vmatpush.bf16.msrb.mxu2 %v5194_v41  ;;  %v5390_v41 = vor.u32 %v6536_v32, %v5387_v33  ;;  %v4574_v52 = vor.u32 %v6332_v40, %v4571_v42  ;;  %v6488_v32 = vld [vmem:[#allocation5 + $0x674] sm:$0xf]  ;;  %v5195_v33 = vld [vmem:[#allocation5 + $0x6a0] sm:$0xf0]  ;;  %v4814_v39 = vor.u32 %v6392_v30, %v4811_v31 }
  0xed   : > { %3553 = vmatpush.bf16.msrb.mxu3 %v5578_v46  ;;  %v5339_v46 = vld [vmem:[#allocation5 + $0x7c0] sm:$0xf0]  ;;  %v6284_v40 = vld [vmem:[#allocation5 + $0x14] sm:$0xf]  ;;  %v5198_v43 = vor.u32 %v6488_v32, %v5195_v33 }
  0xee   : > { %3515 = vmatpush.bf16.msrb.mxu0 %v4378_v55  ;;  %v3309_v47 = vpop.f32.mrf.mxu0  ;;  %v6710_v55 = vld [vmem:[#allocation5 + $0xd5c] sm:$0xf0]  ;;  %v5342_v57 = vor.u32 %v6524_v45, %v5339_v46  ;;  %v6380_v42 = vld [vmem:[#allocation5 + $0x314] sm:$0xf]  ;;  %v5147_v46 = vld [vmem:[#allocation5 + $0x640] sm:$0xf0] }
  0xef   : > { %3528 = vmatpush.bf16.msrb.mxu1 %v4762_v61  ;;  %v7336_v50 = vadd.f32 %v3309_v47, %v7328_v59  ;;  %v3322_v51 = vpop.f32.mrf.mxu1  ;;  %v4907_v61 = vld [vmem:[#allocation5 + $0x460] sm:$0xf0]  ;;  %v6058_v1 = vor.u32 %v6710_v55, %v6057_v54  ;;  %v4526_v59 = vor.u32 %v6320_v56, %v4523_v58  ;;  %v6476_v45 = vld [vmem:[#allocation5 + $0x614] sm:$0xf]  ;;  %v4721_v55 = vld [vmem:[#allocation5 + $0x2b8] sm:$0xf]  ;;  %v4766_v58 = vor.u32 %v6380_v42, %v4763_v44 }
  0xf0   : > { %3541 = vmatpush.bf16.msrb.mxu2 %v5146_v62  ;;  %v6512_v62 = vld [vmem:[#allocation5 + $0x734] sm:$0xf]  ;;  %v3323_v63 = vadd.f32 %v3322_v51, %v819_v48  ;;  %v4910_v2 = vor.u32 %v6416_v60, %v4907_v61  ;;  %v6251_v54 = vld [vmem:[#allocation5 + $0xee0] sm:$0xf0]  ;;  %v6375_v56 = vld [vmem:[#allocation5 + $0x2e4] sm:$0xf0] }
  0xf1   : > { %3554 = vmatpush.bf16.msrb.mxu3 %v5530_v3  ;;  %3516 = vmatmul.bf16.vlgmr.msrb.gmra.mxu0 %v7296_v19  ;;  %v6009_v3 = vld [vmem:[#allocation5 + $0xcd0] sm:$0xf]  ;;  %v6656_v48 = vld [vmem:[#allocation5 + $0xbb4] sm:$0xf]  ;;  %v5105_v60 = vld [vmem:[#allocation5 + $0x5b8] sm:$0xf] }
  0xf2   : > { %3560 = vmatpush.bf16.msra.mxu0 %v6250_v4  ;;  %3529 = vmatmul.bf16.vlgmr.msrb.gmra.mxu1 %v7300_v22  ;;  %v6698_v4 = vld [vmem:[#allocation5 + $0xcfc] sm:$0xf0]  ;;  %v6752_v51 = vld [vmem:[#allocation5 + $0xeb4] sm:$0xf]  ;;  %v6471_v61 = vld [vmem:[#allocation5 + $0x5e4] sm:$0xf0] }
  0xf3   : > { %3573 = vmatpush.bf16.msra.mxu1 %v4718_v5  ;;  %3542 = vmatmul.bf16.vlgmr.msrb.gmra.mxu2 %v7294_v18  ;;  %v6308_v5 = vld [vmem:[#allocation5 + $0xd4] sm:$0xf]  ;;  %v6010_v16 = vor.u32 %v6698_v4, %v6009_v3  ;;  %v5106_v4 = vor.u32 %v6471_v61, %v5105_v60  ;;  %v5723_v31 = vld [vmem:[#allocation5 + $0xac0] sm:$0xf0]  ;;  %v7345_v44 = vld [vmem:[#allocation7 + $0x8] sm:$0xff] }
  0xf4   : > { %3586 = vmatpush.bf16.msra.mxu2 %v5102_v6  ;;  %3555 = vmatmul.bf16.vlgmr.msrb.gmra.mxu3 %v7298_v20  ;;  %v5294_v6 = vor.u32 %v6512_v62, %v5291_v0  ;;  %v4478_v21 = vor.u32 %v6308_v5, %v4475_v7  ;;  %v5150_v62 = vor.u32 %v6476_v45, %v5147_v46  ;;  %v6740_v3 = vld [vmem:[#allocation5 + $0xe54] sm:$0xf]  ;;  %v6203_v5 = vld [vmem:[#allocation5 + $0xe80] sm:$0xf0]  ;;  %v6363_v7 = vld [vmem:[#allocation5 + $0x284] sm:$0xf0] }
  0xf5   : > { %3599 = vmatpush.bf16.msra.mxu3 %v5486_v10  ;;  %v6620_v30 = vld [vmem:[#allocation5 + $0xa94] sm:$0xf] }
  0xf6   : > { %3561 = vmatpush.bf16.msra.mxu0 %v6202_v17  ;;  %v3335_v10 = vpop.f32.mrf.mxu2  ;;  %v3311_v13 = vpop.f32.mrf.mxu0  ;;  %v6716_v32 = vld [vmem:[#allocation5 + $0xd94] sm:$0xf]  ;;  %v5726_v42 = vor.u32 %v6620_v30, %v5723_v31  ;;  %v5531_v31 = vld [vmem:[#allocation5 + $0x940] sm:$0xf0] }
  0xf7   : > { %3574 = vmatpush.bf16.msra.mxu1 %v4670_v23  ;;  %v3336_v14 = vadd.f32 %v3335_v10, %v3323_v63  ;;  %v3348_v15 = vpop.f32.mrf.mxu3  ;;  %v3324_v17 = vpop.f32.mrf.mxu1  ;;  %v4862_v23 = vor.u32 %v6404_v8, %v4859_v9  ;;  %v6254_v63 = vor.u32 %v6752_v51, %v6251_v54  ;;  %v5057_v8 = vld [vmem:[#allocation5 + $0x558] sm:$0xf]  ;;  %v6459_v9 = vld [vmem:[#allocation5 + $0x584] sm:$0xf0]  ;;  %v6632_v13 = vld [vmem:[#allocation5 + $0xaf4] sm:$0xf] }
  0xf8   : > { %3587 = vmatpush.bf16.msra.mxu2 %v5054_v24  ;;  %v5961_v24 = vld [vmem:[#allocation5 + $0xc70] sm:$0xf]  ;;  %v6155_v17 = vld [vmem:[#allocation5 + $0xe20] sm:$0xf0]  ;;  %v4529_v54 = vld [vmem:[#allocation5 + $0x138] sm:$0xf] }
  0xf9   : > { %3600 = vmatpush.bf16.msra.mxu3 %v5438_v28  ;;  %v7338_v27 = vadd.f32 %v3348_v15, %v3336_v14  ;;  %v5246_v28 = vor.u32 %v6500_v11, %v5243_v12  ;;  %v6206_v11 = vor.u32 %v6740_v3, %v6203_v5  ;;  %v5771_v14 = vld [vmem:[#allocation5 + $0xb20] sm:$0xf0]  ;;  %v6728_v15 = vld [vmem:[#allocation5 + $0xdf4] sm:$0xf]  ;;  %v6315_v3 = vld [vmem:[#allocation5 + $0x104] sm:$0xf0] }
  0xfa   : > { %3562 = vmatpush.bf16.msra.mxu0 %v6154_v35  ;;  %v5962_v35 = vor.u32 %v6686_v25, %v5961_v24  ;;  %v5009_v24 = vld [vmem:[#allocation5 + $0x4f8] sm:$0xf]  ;;  %v6447_v25 = vld [vmem:[#allocation5 + $0x524] sm:$0xf0]  ;;  %v5774_v26 = vor.u32 %v6632_v13, %v5771_v14  ;;  %v6584_v14 = vld [vmem:[#allocation5 + $0x974] sm:$0xf] }
  0xfb   : > { %3575 = vmatpush.bf16.msra.mxu1 %v4622_v36  ;;  %v5913_v36 = vld [vmem:[#allocation5 + $0xc10] sm:$0xf]  ;;  %v5010_v33 = vor.u32 %v6447_v25, %v5009_v24  ;;  %v4865_v5 = vld [vmem:[#allocation5 + $0x3d8] sm:$0xf]  ;;  %v6303_v25 = vld [vmem:[#allocation5 + $0xa4] sm:$0xf0] }
  0xfc   : > { %3588 = vmatpush.bf16.msra.mxu2 %v5006_v37  ;;  %v6674_v37 = vld [vmem:[#allocation5 + $0xc3c] sm:$0xf0]  ;;  %v4433_v24 = vld [vmem:[#allocation5 + $0x78] sm:$0xf]  ;;  %v6572_v30 = vld [vmem:[#allocation5 + $0x914] sm:$0xf] }
  0xfd   : > { %3601 = vmatpush.bf16.msra.mxu3 %v5390_v41  ;;  %v4379_v41 = vld [vmem:[#allocation5 + $0x40] sm:$0xf0] }
  0xfe   : > { %3563 = vmatpush.bf16.msra.mxu0 %v6106_v49  ;;  %v3337_v47 = vpop.f32.mrf.mxu2  ;;  %v5867_v49 = vld [vmem:[#allocation5 + $0xbe0] sm:$0xf0] }
  0xff   : > { %3576 = vmatpush.bf16.msra.mxu1 %v4574_v52  ;;  %v3350_v52 = vpop.f32.mrf.mxu3  ;;  %v5870_v0 = vor.u32 %v6656_v48, %v5867_v49  ;;  %v6608_v47 = vld [vmem:[#allocation5 + $0xa34] sm:$0xf]  ;;  %v5675_v48 = vld [vmem:[#allocation5 + $0xa60] sm:$0xf0] }
 0x100   : > { %3589 = vmatpush.bf16.msra.mxu2 %v4958_v53  ;;  %v5914_v53 = vor.u32 %v6674_v37, %v5913_v36  ;;  %v4577_v36 = vld [vmem:[#allocation5 + $0x198] sm:$0xf]  ;;  %v6339_v37 = vld [vmem:[#allocation5 + $0x1c4] sm:$0xf0]  ;;  %v6704_v49 = vld [vmem:[#allocation5 + $0xd34] sm:$0xf] }
 0x101   : > { %3602 = vmatpush.bf16.msra.mxu3 %v5342_v57  ;;  %v4382_v57 = vor.u32 %v6284_v40, %v4379_v41  ;;  %v6435_v40 = vld [vmem:[#allocation5 + $0x4c4] sm:$0xf0]  ;;  %v4578_v46 = vor.u32 %v6339_v37, %v4577_v36  ;;  %v5915_v36 = vld [vmem:[#allocation5 + $0xc40] sm:$0xf0]  ;;  %v4385_v37 = vld [vmem:[#allocation5 + $0x18] sm:$0xf] }
 0x102   : > { %3564 = vmatpush.bf16.msra.mxu0 %v6058_v1  ;;  %v4722_v1 = vor.u32 %v6375_v56, %v4721_v55  ;;  %v6327_v55 = vld [vmem:[#allocation5 + $0x164] sm:$0xf0]  ;;  %v4913_v56 = vld [vmem:[#allocation5 + $0x438] sm:$0xf] }
 0x103   : > { %3577 = vmatpush.bf16.msra.mxu1 %v4526_v59  ;;  %v6644_v59 = vld [vmem:[#allocation5 + $0xb54] sm:$0xf]  ;;  %v4530_v61 = vor.u32 %v6327_v55, %v4529_v54 }
 0x104   : > { %3590 = vmatpush.bf16.msra.mxu2 %v4910_v2  ;;  %v5819_v2 = vld [vmem:[#allocation5 + $0xb80] sm:$0xf0] }
 0x105   : > { %3603 = vmatpush.bf16.msra.mxu3 %v5294_v6  ;;  %v4673_v6 = vld [vmem:[#allocation5 + $0x258] sm:$0xf]  ;;  %v5822_v10 = vor.u32 %v6644_v59, %v5819_v2  ;;  %v6011_v59 = vld [vmem:[#allocation5 + $0xd00] sm:$0xf0] }
 0x106   : > { %3565 = vmatpush.bf16.msra.mxu0 %v6010_v16  ;;  %v4674_v12 = vor.u32 %v6363_v7, %v4673_v6  ;;  %v5058_v16 = vor.u32 %v6459_v9, %v5057_v8  ;;  %v4481_v2 = vld [vmem:[#allocation5 + $0xd8] sm:$0xf]  ;;  %v6411_v6 = vld [vmem:[#allocation5 + $0x404] sm:$0xf0] }
 0x107   : > { %3578 = vmatpush.bf16.msra.mxu1 %v4478_v21  ;;  %v4625_v21 = vld [vmem:[#allocation5 + $0x1f8] sm:$0xf]  ;;  %v4482_v13 = vor.u32 %v6315_v3, %v4481_v2  ;;  %v6747_v3 = vld [vmem:[#allocation5 + $0xe84] sm:$0xf0] }
 0x108   : > { %3591 = vmatpush.bf16.msra.mxu2 %v4862_v23  ;;  %v6351_v23 = vld [vmem:[#allocation5 + $0x224] sm:$0xf0]  ;;  %v6209_v2 = vld [vmem:[#allocation5 + $0xe58] sm:$0xf] }
 0x109   : > { %3604 = vmatpush.bf16.msra.mxu3 %v5246_v28  ;;  %v6158_v28 = vor.u32 %v6728_v15, %v6155_v17  ;;  %v4626_v29 = vor.u32 %v6351_v23, %v4625_v21  ;;  %v5579_v15 = vld [vmem:[#allocation5 + $0x9a0] sm:$0xf0]  ;;  %v4866_v21 = vor.u32 %v6411_v6, %v4865_v5  ;;  %v4675_v5 = vld [vmem:[#allocation5 + $0x288] sm:$0xf0] }
 0x10a   : > { %3566 = vmatpush.bf16.msra.mxu0 %v5962_v35  ;;  %v6107_v35 = vld [vmem:[#allocation5 + $0xdc0] sm:$0xf0] }
 0x10b   : > { %3579 = vmatpush.bf16.msra.mxu1 %v4430_v38  ;;  %v6110_v45 = vor.u32 %v6716_v32, %v6107_v35  ;;  %v5963_v23 = vld [vmem:[#allocation5 + $0xca0] sm:$0xf0]  ;;  %v6668_v35 = vld [vmem:[#allocation5 + $0xc14] sm:$0xf] }
 0x10c   : > { %3592 = vmatpush.bf16.msra.mxu2 %v4814_v39  ;;  %v4961_v39 = vld [vmem:[#allocation5 + $0x498] sm:$0xf]  ;;  %v5918_v54 = vor.u32 %v6668_v35, %v5915_v36  ;;  %v6333_v35 = vld [vmem:[#allocation5 + $0x19c] sm:$0xf]  ;;  %v4579_v36 = vld [vmem:[#allocation5 + $0x1c8] sm:$0xf0] }
 0x10d   : > { %3605 = vmatpush.bf16.msra.mxu3 %v5198_v43  ;;  %v4962_v51 = vor.u32 %v6435_v40, %v4961_v39  ;;  %v6291_v39 = vld [vmem:[#allocation5 + $0x44] sm:$0xf0]  ;;  %v4769_v40 = vld [vmem:[#allocation5 + $0x318] sm:$0xf] }
 0x10e   : > { %3567 = vmatpush.bf16.msra.mxu0 %v5914_v53  ;;  %v3361_v38 = vpop.f32.mrf.mxu0  ;;  %v6059_v53 = vld [vmem:[#allocation5 + $0xd60] sm:$0xf0]  ;;  %v4386_v55 = vor.u32 %v6291_v39, %v4385_v37 }
 0x10f   : > { %3580 = vmatpush.bf16.msra.mxu1 %v4382_v57  ;;  %v3362_v41 = vadd.f32 %v3361_v38, %v7338_v27  ;;  %v3374_v43 = vpop.f32.mrf.mxu1  ;;  %v6423_v27 = vld [vmem:[#allocation5 + $0x464] sm:$0xf0]  ;;  %v820_v57 = vunpack.c.l.bf16 %v7345_v44  ;;  %v6062_v60 = vor.u32 %v6704_v49, %v6059_v53 }
 0x110   : > { %3593 = vmatpush.bf16.msra.mxu2 %v4766_v58  ;;  %v5678_v58 = vor.u32 %v6608_v47, %v5675_v48  ;;  %v5534_v48 = vor.u32 %v6572_v30, %v5531_v31  ;;  %v6663_v49 = vld [vmem:[#allocation5 + $0xbe4] sm:$0xf0] }
 0x111   : > { %3606 = vmatpush.bf16.msra.mxu3 %v5150_v62  ;;  %3568 = vmatmul.bf16.vlgmr.msra.gmra.mxu0 %v7307_v34  ;;  %v7347_v52 = vadd.f32 %v3374_v43, %v3362_v41  ;;  %v6596_v62 = vld [vmem:[#allocation5 + $0x9d4] sm:$0xf]  ;;  %v6387_v41 = vld [vmem:[#allocation5 + $0x344] sm:$0xf0]  ;;  %v5489_v43 = vld [vmem:[#allocation5 + $0x8b8] sm:$0xf] }
 0x112   : > { %3612 = vmatpush.bf16.msrb.mxu0 %v5870_v0  ;;  %3581 = vmatmul.bf16.vlgmr.msra.gmra.mxu1 %v7296_v19  ;;  %v5627_v0 = vld [vmem:[#allocation5 + $0xa00] sm:$0xf0]  ;;  %v6759_v53 = vld [vmem:[#allocation5 + $0xee4] sm:$0xf0] }
 0x113   : > { %3625 = vmatpush.bf16.msrb.mxu1 %v6254_v63  ;;  %3594 = vmatmul.bf16.vlgmr.msra.gmra.mxu2 %v7300_v22  ;;  %v6692_v63 = vld [vmem:[#allocation5 + $0xcd4] sm:$0xf]  ;;  %v6627_v31 = vld [vmem:[#allocation5 + $0xac4] sm:$0xf0] }
 0x114   : > { %3638 = vmatpush.bf16.msrb.mxu2 %v4722_v1  ;;  %3607 = vmatmul.bf16.vlgmr.msra.gmra.mxu3 %v7294_v18  ;;  %v4914_v1 = vor.u32 %v6423_v27, %v4913_v56  ;;  %v6369_v56 = vld [vmem:[#allocation5 + $0x2bc] sm:$0xf]  ;;  %v4723_v27 = vld [vmem:[#allocation5 + $0x2e8] sm:$0xf0] }
 0x115   : > { %3651 = vmatpush.bf16.msrb.mxu3 %v5106_v4 }
 0x116   : > { %3613 = vmatpush.bf16.msrb.mxu0 %v5822_v10  ;;  %v3387_v4 = vpop.f32.mrf.mxu2  ;;  %v3363_v8 = vpop.f32.mrf.mxu0  ;;  %v5630_v10 = vor.u32 %v6596_v62, %v5627_v0  ;;  %v5441_v62 = vld [vmem:[#allocation5 + $0x858] sm:$0xf]  ;;  %v6555_v0 = vld [vmem:[#allocation5 + $0x884] sm:$0xf0] }
 0x117   : > { %3626 = vmatpush.bf16.msrb.mxu1 %v6206_v11  ;;  %v3388_v7 = vadd.f32 %v3387_v4, %v820_v57  ;;  %v3400_v9 = vpop.f32.mrf.mxu3  ;;  %v3376_v11 = vpop.f32.mrf.mxu1  ;;  %v4770_v57 = vor.u32 %v6387_v41, %v4769_v40  ;;  %v6357_v4 = vld [vmem:[#allocation5 + $0x25c] sm:$0xf]  ;;  %v5442_v6 = vor.u32 %v6555_v0, %v5441_v62  ;;  %v6210_v8 = vor.u32 %v6747_v3, %v6209_v2  ;;  %v4483_v3 = vld [vmem:[#allocation5 + $0x108] sm:$0xf0] }
 0x118   : > { %3639 = vmatpush.bf16.msrb.mxu2 %v4674_v12  ;;  %v6014_v12 = vor.u32 %v6692_v63, %v6011_v59  ;;  %v5825_v63 = vld [vmem:[#allocation5 + $0xb58] sm:$0xf]  ;;  %v6651_v59 = vld [vmem:[#allocation5 + $0xb84] sm:$0xf0]  ;;  %v6309_v2 = vld [vmem:[#allocation5 + $0xdc] sm:$0xf] }
 0x119   : > { %3652 = vmatpush.bf16.msrb.mxu3 %v5058_v16  ;;  %v6680_v16 = vld [vmem:[#allocation5 + $0xc74] sm:$0xf]  ;;  %v7350_v17 = vadd.f32 %v3400_v9, %v3388_v7  ;;  %v5826_v7 = vor.u32 %v6651_v59, %v5825_v63  ;;  %v5393_v9 = vld [vmem:[#allocation5 + $0x7f8] sm:$0xf]  ;;  %v6603_v63 = vld [vmem:[#allocation5 + $0xa04] sm:$0xf0] }
 0x11a   : > { %3614 = vmatpush.bf16.msrb.mxu0 %v5774_v26  ;;  %v4817_v26 = vld [vmem:[#allocation5 + $0x378] sm:$0xf]  ;;  %v5966_v32 = vor.u32 %v6680_v16, %v5963_v23  ;;  %v6345_v16 = vld [vmem:[#allocation5 + $0x1fc] sm:$0xf]  ;;  %v6699_v59 = vld [vmem:[#allocation5 + $0xd04] sm:$0xf0] }
 0x11b   : > { %3627 = vmatpush.bf16.msrb.mxu1 %v6158_v28  ;;  %v6399_v28 = vld [vmem:[#allocation5 + $0x3a4] sm:$0xf0]  ;;  %v5777_v11 = vld [vmem:[#allocation5 + $0xaf8] sm:$0xf] }
 0x11c   : > { %3640 = vmatpush.bf16.msrb.mxu2 %v4626_v29  ;;  %v5582_v29 = vor.u32 %v6584_v14, %v5579_v15  ;;  %v4818_v38 = vor.u32 %v6399_v28, %v4817_v26  ;;  %v6161_v14 = vld [vmem:[#allocation5 + $0xdf8] sm:$0xf]  ;;  %v6735_v15 = vld [vmem:[#allocation5 + $0xe24] sm:$0xf0] }
 0x11d   : > { %3653 = vmatpush.bf16.msrb.mxu3 %v5010_v33  ;;  %v4434_v33 = vor.u32 %v6303_v25, %v4433_v24  ;;  %v6162_v25 = vor.u32 %v6735_v15, %v6161_v14  ;;  %v5345_v26 = vld [vmem:[#allocation5 + $0x798] sm:$0xf]  ;;  %v6531_v28 = vld [vmem:[#allocation5 + $0x7c4] sm:$0xf0] }
 0x11e   : > { %3615 = vmatpush.bf16.msrb.mxu0 %v5726_v42  ;;  %v3389_v42 = vpop.f32.mrf.mxu2  ;;  %v5346_v37 = vor.u32 %v6531_v28, %v5345_v26  ;;  %v6591_v14 = vld [vmem:[#allocation5 + $0x9a4] sm:$0xf0]  ;;  %v5969_v15 = vld [vmem:[#allocation5 + $0xc78] sm:$0xf] }
 0x11f   : > { %3628 = vmatpush.bf16.msrb.mxu1 %v6110_v45  ;;  %v6567_v45 = vld [vmem:[#allocation5 + $0x8e4] sm:$0xf0]  ;;  %v3402_v47 = vpop.f32.mrf.mxu3 }
 0x120   : > { %3641 = vmatpush.bf16.msrb.mxu2 %v4578_v46  ;;  %v5873_v46 = vld [vmem:[#allocation5 + $0xbb8] sm:$0xf]  ;;  %v4582_v47 = vor.u32 %v6333_v35, %v4579_v36  ;;  %v6483_v26 = vld [vmem:[#allocation5 + $0x644] sm:$0xf0] }
 0x121   : > { %3654 = vmatpush.bf16.msrb.mxu3 %v4962_v51  ;;  %v6257_v51 = vld [vmem:[#allocation5 + $0xeb8] sm:$0xf]  ;;  %v6675_v36 = vld [vmem:[#allocation5 + $0xc44] sm:$0xf0] }
 0x122   : > { %3616 = vmatpush.bf16.msrb.mxu0 %v5678_v58  ;;  %v5490_v58 = vor.u32 %v6567_v45, %v5489_v43  ;;  %v5297_v43 = vld [vmem:[#allocation5 + $0x738] sm:$0xf]  ;;  %v6519_v45 = vld [vmem:[#allocation5 + $0x764] sm:$0xf0] }
 0x123   : > { %3629 = vmatpush.bf16.msrb.mxu1 %v6062_v60  ;;  %v5874_v60 = vor.u32 %v6663_v49, %v5873_v46  ;;  %v5681_v46 = vld [vmem:[#allocation5 + $0xa38] sm:$0xf] }
 0x124   : > { %3642 = vmatpush.bf16.msrb.mxu2 %v4530_v61  ;;  %v6258_v61 = vor.u32 %v6759_v53, %v6257_v51  ;;  %v6065_v49 = vld [vmem:[#allocation5 + $0xd38] sm:$0xf]  ;;  %v6711_v51 = vld [vmem:[#allocation5 + $0xd64] sm:$0xf0] }
 0x125   : > { %3655 = vmatpush.bf16.msrb.mxu3 %v4914_v1  ;;  %v4726_v1 = vor.u32 %v6369_v56, %v4723_v27  ;;  %v5298_v56 = vor.u32 %v6519_v45, %v5297_v43  ;;  %v5491_v45 = vld [vmem:[#allocation5 + $0x8e8] sm:$0xf0] }
 0x126   : > { %3617 = vmatpush.bf16.msrb.mxu0 %v5630_v10  ;;  %v6543_v10 = vld [vmem:[#allocation5 + $0x824] sm:$0xf0] }
 0x127   : > { %3630 = vmatpush.bf16.msrb.mxu1 %v6014_v12  ;;  %v4678_v12 = vor.u32 %v6357_v4, %v4675_v5  ;;  %v5394_v23 = vor.u32 %v6543_v10, %v5393_v9  ;;  %v5201_v10 = vld [vmem:[#allocation5 + $0x678] sm:$0xf] }
 0x128   : > { %3643 = vmatpush.bf16.msrb.mxu2 %v4482_v13  ;;  %v6639_v13 = vld [vmem:[#allocation5 + $0xb24] sm:$0xf0] }
 0x129   : > { %3656 = vmatpush.bf16.msrb.mxu3 %v4866_v21  ;;  %v4627_v21 = vld [vmem:[#allocation5 + $0x228] sm:$0xf0]  ;;  %v5778_v24 = vor.u32 %v6639_v13, %v5777_v11  ;;  %v6495_v11 = vld [vmem:[#allocation5 + $0x6a4] sm:$0xf0]  ;;  %v4486_v13 = vor.u32 %v6309_v2, %v4483_v3  ;;  %v821_v3 = vunpack.c.h.bf16 %v7345_v44 }
 0x12a   : > { %3618 = vmatpush.bf16.msrb.mxu0 %v5582_v29  ;;  %v5729_v29 = vld [vmem:[#allocation5 + $0xa98] sm:$0xf]  ;;  %v4630_v30 = vor.u32 %v6345_v16, %v4627_v21  ;;  %v6687_v16 = vld [vmem:[#allocation5 + $0xca4] sm:$0xf0]  ;;  %v6297_v21 = vld [vmem:[#allocation5 + $0x7c] sm:$0xf] }
 0x12b   : > { %3631 = vmatpush.bf16.msrb.mxu1 %v5966_v32  ;;  %v6113_v32 = vld [vmem:[#allocation5 + $0xd98] sm:$0xf]  ;;  %v5730_v40 = vor.u32 %v6627_v31, %v5729_v29  ;;  %v5970_v29 = vor.u32 %v6687_v16, %v5969_v15  ;;  %v6579_v31 = vld [vmem:[#allocation5 + $0x944] sm:$0xf0]  ;;  %v6163_v15 = vld [vmem:[#allocation5 + $0xe28] sm:$0xf0] }
 0x12c   : > { %3644 = vmatpush.bf16.msrb.mxu2 %v4434_v33  ;;  %v6723_v33 = vld [vmem:[#allocation5 + $0xdc4] sm:$0xf0] }
 0x12d   : > { %3657 = vmatpush.bf16.msrb.mxu3 %v4818_v38  ;;  %v6114_v41 = vor.u32 %v6723_v33, %v6113_v32  ;;  %v5921_v32 = vld [vmem:[#allocation5 + $0xc18] sm:$0xf] }
 0x12e   : > { %3619 = vmatpush.bf16.msrb.mxu0 %v5534_v48  ;;  %v3413_v38 = vpop.f32.mrf.mxu0  ;;  %v6615_v48 = vld [vmem:[#allocation5 + $0xa64] sm:$0xf0] }
 0x12f   : > { %3632 = vmatpush.bf16.msrb.mxu1 %v5918_v54  ;;  %v3426_v39 = vpop.f32.mrf.mxu1  ;;  %v3414_v42 = vadd.f32 %v3413_v38, %v7350_v17  ;;  %v6321_v54 = vld [vmem:[#allocation5 + $0x13c] sm:$0xf]  ;;  %v5682_v27 = vor.u32 %v6615_v48, %v5681_v46  ;;  %v6507_v17 = vld [vmem:[#allocation5 + $0x704] sm:$0xf0]  ;;  %v4387_v38 = vld [vmem:[#allocation5 + $0x48] sm:$0xf0] }
 0x130   : > { %3645 = vmatpush.bf16.msrb.mxu2 %v4386_v55  ;;  %v4531_v55 = vld [vmem:[#allocation5 + $0x168] sm:$0xf0]  ;;  %v6657_v46 = vld [vmem:[#allocation5 + $0xbbc] sm:$0xf] }
 0x131   : > { %3658 = vmatpush.bf16.msrb.mxu3 %v4770_v57  ;;  %3620 = vmatmul.bf16.vlgmr.msrb.gmra.mxu0 %v7298_v20  ;;  %v3427_v53 = vadd.f32 %v3426_v39, %v3414_v42  ;;  %v6066_v57 = vor.u32 %v6711_v51, %v6065_v49  ;;  %v4534_v62 = vor.u32 %v6321_v54, %v4531_v55  ;;  %v6465_v39 = vld [vmem:[#allocation5 + $0x5bc] sm:$0xf] }
 0x132   : > { %3664 = vmatpush.bf16.msra.mxu0 %v5490_v58  ;;  %3633 = vmatmul.bf16.vlgmr.msrb.gmra.mxu1 %v7307_v34  ;;  %v5922_v49 = vor.u32 %v6675_v36, %v5921_v32  ;;  %v6753_v51 = vld [vmem:[#allocation5 + $0xebc] sm:$0xf] }
 0x133   : > { %3677 = vmatpush.bf16.msra.mxu1 %v5874_v60  ;;  %3646 = vmatmul.bf16.vlgmr.msrb.gmra.mxu2 %v7296_v19  ;;  %v5249_v60 = vld [vmem:[#allocation5 + $0x6d8] sm:$0xf]  ;;  %v6717_v32 = vld [vmem:[#allocation5 + $0xd9c] sm:$0xf] }
 0x134   : > { %3690 = vmatpush.bf16.msra.mxu2 %v6258_v61  ;;  %3659 = vmatmul.bf16.vlgmr.msrb.gmra.mxu3 %v7300_v22  ;;  %v5633_v61 = vld [vmem:[#allocation5 + $0x9d8] sm:$0xf]  ;;  %v5250_v5 = vor.u32 %v6507_v17, %v5249_v60  ;;  %v6549_v60 = vld [vmem:[#allocation5 + $0x85c] sm:$0xf] }
 0x135   : > { %3703 = vmatpush.bf16.msra.mxu3 %v4726_v1  ;;  %v6017_v1 = vld [vmem:[#allocation5 + $0xcd8] sm:$0xf] }
 0x136   : > { %3665 = vmatpush.bf16.msra.mxu0 %v5442_v6  ;;  %v3439_v58 = vpop.f32.mrf.mxu2  ;;  %v3415_v6 = vpop.f32.mrf.mxu0  ;;  %v6018_v9 = vor.u32 %v6699_v59, %v6017_v1  ;;  %v6741_v1 = vld [vmem:[#allocation5 + $0xe5c] sm:$0xf]  ;;  %v6211_v59 = vld [vmem:[#allocation5 + $0xe88] sm:$0xf0] }
 0x137   : > { %3678 = vmatpush.bf16.msra.mxu1 %v5826_v7  ;;  %v7357_v0 = vadd.f32 %v3439_v58, %v3427_v53  ;;  %v7359_v4 = vpop.f32.mrf.mxu3  ;;  %v3428_v7 = vpop.f32.mrf.mxu1  ;;  %v6259_v53 = vld [vmem:[#allocation5 + $0xee8] sm:$0xf0] }
 0x138   : > { %3691 = vmatpush.bf16.msra.mxu2 %v6210_v8  ;;  %v5634_v8 = vor.u32 %v6603_v63, %v5633_v61  ;;  %v5059_v58 = vld [vmem:[#allocation5 + $0x588] sm:$0xf0]  ;;  %v6262_v17 = vor.u32 %v6753_v51, %v6259_v53  ;;  %v6441_v7 = vld [vmem:[#allocation5 + $0x4fc] sm:$0xf]  ;;  %v3453_v16 = vadd.f32 %v7359_v4, %v821_v3 }
 0x139   : > { %3704 = vmatpush.bf16.msra.mxu3 %v4678_v12  ;;  %v5585_v12 = vld [vmem:[#allocation5 + $0x978] sm:$0xf]  ;;  %v5443_v61 = vld [vmem:[#allocation5 + $0x888] sm:$0xf0] }
 0x13a   : > { %3666 = vmatpush.bf16.msra.mxu0 %v5394_v23  ;;  %v4435_v23 = vld [vmem:[#allocation5 + $0xa8] sm:$0xf0]  ;;  %v5586_v28 = vor.u32 %v6591_v14, %v5585_v12  ;;  %v6633_v12 = vld [vmem:[#allocation5 + $0xafc] sm:$0xf] }
 0x13b   : > { %3679 = vmatpush.bf16.msra.mxu1 %v5778_v24  ;;  %v5202_v24 = vor.u32 %v6495_v11, %v5201_v10  ;;  %v4438_v35 = vor.u32 %v6297_v21, %v4435_v23  ;;  %v5827_v63 = vld [vmem:[#allocation5 + $0xb88] sm:$0xf0]  ;;  %v6214_v10 = vor.u32 %v6741_v1, %v6211_v59  ;;  %v6729_v14 = vld [vmem:[#allocation5 + $0xdfc] sm:$0xf] }
 0x13c   : > { %3692 = vmatpush.bf16.msra.mxu2 %v6162_v25  ;;  %v5153_v25 = vld [vmem:[#allocation5 + $0x618] sm:$0xf]  ;;  %v5395_v11 = vld [vmem:[#allocation5 + $0x828] sm:$0xf0]  ;;  %v6693_v59 = vld [vmem:[#allocation5 + $0xcdc] sm:$0xf] }
 0x13d   : > { %3705 = vmatpush.bf16.msra.mxu3 %v4630_v30  ;;  %v5537_v30 = vld [vmem:[#allocation5 + $0x918] sm:$0xf]  ;;  %v5154_v43 = vor.u32 %v6483_v26, %v5153_v25  ;;  %v4963_v25 = vld [vmem:[#allocation5 + $0x4c8] sm:$0xf0]  ;;  %v6525_v26 = vld [vmem:[#allocation5 + $0x79c] sm:$0xf] }
 0x13e   : > { %3667 = vmatpush.bf16.msra.mxu0 %v5346_v37  ;;  %v3441_v33 = vpop.f32.mrf.mxu2  ;;  %v6285_v37 = vld [vmem:[#allocation5 + $0x1c] sm:$0xf]  ;;  %v5538_v48 = vor.u32 %v6579_v31, %v5537_v30  ;;  %v5731_v31 = vld [vmem:[#allocation5 + $0xac8] sm:$0xf0] }
 0x13f   : > { %3680 = vmatpush.bf16.msra.mxu1 %v5730_v40  ;;  %v5107_v40 = vld [vmem:[#allocation5 + $0x5e8] sm:$0xf0]  ;;  %v3454_v42 = vpop.f32.mrf.mxu3  ;;  %v4390_v54 = vor.u32 %v6285_v37, %v4387_v38  ;;  %v6621_v30 = vld [vmem:[#allocation5 + $0xa9c] sm:$0xf] }
 0x140   : > { %3693 = vmatpush.bf16.msra.mxu2 %v6114_v41  ;;  %v6561_v41 = vld [vmem:[#allocation5 + $0x8bc] sm:$0xf]  ;;  %v5110_v55 = vor.u32 %v6465_v39, %v5107_v40  ;;  %v6115_v33 = vld [vmem:[#allocation5 + $0xdc8] sm:$0xf0]  ;;  %v5734_v37 = vor.u32 %v6621_v30, %v5731_v31 }
 0x141   : > { %3706 = vmatpush.bf16.msra.mxu3 %v4582_v47  ;;  %v5875_v47 = vld [vmem:[#allocation5 + $0xbe8] sm:$0xf0]  ;;  %v6417_v40 = vld [vmem:[#allocation5 + $0x43c] sm:$0xf] }
 0x142   : > { %3668 = vmatpush.bf16.msra.mxu0 %v5298_v56  ;;  %v5494_v56 = vor.u32 %v6561_v41, %v5491_v45  ;;  %v4915_v41 = vld [vmem:[#allocation5 + $0x468] sm:$0xf0]  ;;  %v6513_v42 = vld [vmem:[#allocation5 + $0x73c] sm:$0xf] }
 0x143   : > { %3681 = vmatpush.bf16.msra.mxu1 %v5682_v27  ;;  %v5878_v27 = vor.u32 %v6657_v46, %v5875_v47  ;;  %v5299_v45 = vld [vmem:[#allocation5 + $0x768] sm:$0xf0]  ;;  %v6609_v46 = vld [vmem:[#allocation5 + $0xa3c] sm:$0xf]  ;;  %v4918_v53 = vor.u32 %v6417_v40, %v4915_v41  ;;  %v5113_v40 = vld [vmem:[#allocation5 + $0x5c0] sm:$0xf] }
 0x144   : > { %3694 = vmatpush.bf16.msra.mxu2 %v6066_v57  ;;  %v6453_v57 = vld [vmem:[#allocation5 + $0x55c] sm:$0xf]  ;;  %v5683_v47 = vld [vmem:[#allocation5 + $0xa68] sm:$0xf0] }
 0x145   : > { %3707 = vmatpush.bf16.msra.mxu3 %v4534_v62  ;;  %v6645_v62 = vld [vmem:[#allocation5 + $0xb5c] sm:$0xf]  ;;  %v5062_v2 = vor.u32 %v6453_v57, %v5059_v58  ;;  %v6067_v51 = vld [vmem:[#allocation5 + $0xd68] sm:$0xf0] }
 0x146   : > { %3669 = vmatpush.bf16.msra.mxu0 %v5250_v5  ;;  %v5446_v5 = vor.u32 %v6549_v60, %v5443_v61  ;;  %v5830_v6 = vor.u32 %v6645_v62, %v5827_v63  ;;  %v4867_v57 = vld [vmem:[#allocation5 + $0x408] sm:$0xf0]  ;;  %v6501_v58 = vld [vmem:[#allocation5 + $0x6dc] sm:$0xf] }
 0x147   : > { %3682 = vmatpush.bf16.msra.mxu1 %v5634_v8  ;;  %v5011_v8 = vld [vmem:[#allocation5 + $0x528] sm:$0xf0]  ;;  %v6597_v63 = vld [vmem:[#allocation5 + $0x9dc] sm:$0xf] }
 0x148   : > { %3695 = vmatpush.bf16.msra.mxu2 %v6018_v9  ;;  %v6537_v9 = vld [vmem:[#allocation5 + $0x7fc] sm:$0xf]  ;;  %v5014_v44 = vor.u32 %v6441_v7, %v5011_v8  ;;  %v5251_v62 = vld [vmem:[#allocation5 + $0x708] sm:$0xf0] }
 0x149   : > { %3708 = vmatpush.bf16.msra.mxu3 %v4486_v13  ;;  %v5779_v13 = vld [vmem:[#allocation5 + $0xb28] sm:$0xf0]  ;;  %v5398_v21 = vor.u32 %v6537_v9, %v5395_v11  ;;  %v5254_v7 = vor.u32 %v6501_v58, %v5251_v62  ;;  %v6393_v9 = vld [vmem:[#allocation5 + $0x37c] sm:$0xf]  ;;  %v5833_v62 = vld [vmem:[#allocation5 + $0xb60] sm:$0xf] }
 0x14a   : > { %3670 = vmatpush.bf16.msra.mxu0 %v5202_v24  ;;  %v5782_v23 = vor.u32 %v6633_v12, %v5779_v13  ;;  %v6429_v24 = vld [vmem:[#allocation5 + $0x49c] sm:$0xf]  ;;  %v5635_v1 = vld [vmem:[#allocation5 + $0xa08] sm:$0xf0] }
 0x14b   : > { %3683 = vmatpush.bf16.msra.mxu1 %v5586_v28  ;;  %v6166_v28 = vor.u32 %v6729_v14, %v6163_v15  ;;  %v5638_v8 = vor.u32 %v6597_v63, %v5635_v1  ;;  %v6489_v11 = vld [vmem:[#allocation5 + $0x67c] sm:$0xf]  ;;  %v5203_v14 = vld [vmem:[#allocation5 + $0x6a8] sm:$0xf0]  ;;  %v6652_v63 = vld [vmem:[#allocation5 + $0xb8c] sm:$0xf0] }
 0x14c   : > { %3696 = vmatpush.bf16.msra.mxu2 %v5970_v29  ;;  %v5347_v29 = vld [vmem:[#allocation5 + $0x7c8] sm:$0xf0]  ;;  %v6585_v15 = vld [vmem:[#allocation5 + $0x97c] sm:$0xf] }
 0x14d   : > { %3709 = vmatpush.bf16.msra.mxu3 %v4438_v35  ;;  %v4966_v35 = vor.u32 %v6429_v24, %v4963_v25  ;;  %v5350_v4 = vor.u32 %v6525_v26, %v5347_v29  ;;  %v6381_v24 = vld [vmem:[#allocation5 + $0x31c] sm:$0xf]  ;;  %v4771_v25 = vld [vmem:[#allocation5 + $0x348] sm:$0xf0]  ;;  %v5206_v26 = vor.u32 %v6489_v11, %v5203_v14  ;;  %v5401_v11 = vld [vmem:[#allocation5 + $0x800] sm:$0xf] }
 0x14e   : > { %3671 = vmatpush.bf16.msra.mxu0 %v5154_v43  ;;  %v3465_v36 = vpop.f32.mrf.mxu0  ;;  %v6118_v43 = vor.u32 %v6717_v32, %v6115_v33  ;;  %v6477_v29 = vld [vmem:[#allocation5 + $0x61c] sm:$0xf]  ;;  %v5155_v30 = vld [vmem:[#allocation5 + $0x648] sm:$0xf0]  ;;  %v4774_v41 = vor.u32 %v6381_v24, %v4771_v25  ;;  %v6640_v14 = vld [vmem:[#allocation5 + $0xb2c] sm:$0xf0] }
 0x14f   : > { %3684 = vmatpush.bf16.msra.mxu1 %v5538_v48  ;;  %v3466_v38 = vadd.f32 %v3465_v36, %v3453_v16  ;;  %v3478_v39 = vpop.f32.mrf.mxu1  ;;  %v6681_v16 = vld [vmem:[#allocation5 + $0xc7c] sm:$0xf]  ;;  %v6340_v24 = vld [vmem:[#allocation5 + $0x1cc] sm:$0xf0]  ;;  %v4969_v25 = vld [vmem:[#allocation5 + $0x4a0] sm:$0xf] }
 0x150   : > { %3697 = vmatpush.bf16.msra.mxu2 %v5922_v49  ;;  %v6705_v49 = vld [vmem:[#allocation5 + $0xd3c] sm:$0xf] }
 0x151   : > { %3710 = vmatpush.bf16.msra.mxu3 %v4390_v54  ;;  %3672 = vmatmul.bf16.vlgmr.msra.gmra.mxu0 %v7294_v18  ;;  %v3479_v48 = vadd.f32 %v3478_v39, %v3466_v38  ;;  %v5302_v54 = vor.u32 %v6513_v42, %v5299_v45  ;;  %v6070_v60 = vor.u32 %v6705_v49, %v6067_v51  ;;  %v6573_v31 = vld [vmem:[#allocation5 + $0x91c] sm:$0xf]  ;;  %v4729_v38 = vld [vmem:[#allocation5 + $0x2c0] sm:$0xf]  ;;  %v6376_v39 = vld [vmem:[#allocation5 + $0x2ec] sm:$0xf0] }
 0x152   : > { %3716 = vmatpush.bf16.msrb.mxu0 %v5110_v55  ;;  %3685 = vmatmul.bf16.vlgmr.msra.gmra.mxu1 %v7298_v20  ;;  %v5686_v55 = vor.u32 %v6609_v46, %v5683_v47  ;;  %v6669_v36 = vld [vmem:[#allocation5 + $0xc1c] sm:$0xf]  ;;  %v6472_v42 = vld [vmem:[#allocation5 + $0x5ec] sm:$0xf0]  ;;  %v5158_v46 = vor.u32 %v6477_v29, %v5155_v30  ;;  %v5353_v29 = vld [vmem:[#allocation5 + $0x7a0] sm:$0xf] }
 0x153   : > { %3729 = vmatpush.bf16.msrb.mxu1 %v5494_v56  ;;  %3698 = vmatmul.bf16.vlgmr.msra.gmra.mxu2 %v7307_v34  ;;  %v6568_v45 = vld [vmem:[#allocation5 + $0x8ec] sm:$0xf0] }
 0x154   : > { %3742 = vmatpush.bf16.msrb.mxu2 %v5878_v27  ;;  %3711 = vmatmul.bf16.vlgmr.msra.gmra.mxu3 %v7296_v19  ;;  %v6405_v27 = vld [vmem:[#allocation5 + $0x3dc] sm:$0xf]  ;;  %v6664_v49 = vld [vmem:[#allocation5 + $0xbec] sm:$0xf0] }
 0x155   : > { %3755 = vmatpush.bf16.msrb.mxu3 %v6262_v17  ;;  %v6532_v30 = vld [vmem:[#allocation5 + $0x7cc] sm:$0xf0] }
 0x156   : > { %3717 = vmatpush.bf16.msrb.mxu0 %v5062_v2  ;;  %v3491_v56 = vpop.f32.mrf.mxu2  ;;  %v6019_v2 = vld [vmem:[#allocation5 + $0xd08] sm:$0xf0] }
 0x157   : > { %3730 = vmatpush.bf16.msrb.mxu1 %v5446_v5  ;;  %v3492_v17 = vadd.f32 %v3491_v56, %v3479_v48  ;;  %v3504_v61 = vpop.f32.mrf.mxu3  ;;  %v4870_v5 = vor.u32 %v6405_v27, %v4867_v57  ;;  %v3480_v12 = vpop.f32.mrf.mxu1  ;;  %v6022_v13 = vor.u32 %v6693_v59, %v6019_v2  ;;  %v5881_v48 = vld [vmem:[#allocation5 + $0xbc0] sm:$0xf]  ;;  %v6364_v27 = vld [vmem:[#allocation5 + $0x28c] sm:$0xf0] }
 0x158   : > { %3743 = vmatpush.bf16.msrb.mxu2 %v5830_v6  ;;  %v3467_v6 = vpop.f32.mrf.mxu0  ;;  %v4681_v56 = vld [vmem:[#allocation5 + $0x260] sm:$0xf]  ;;  %v5882_v58 = vor.u32 %v6664_v49, %v5881_v48  ;;  %v6544_v12 = vld [vmem:[#allocation5 + $0x82c] sm:$0xf0] }
 0x159   : > { %3756 = vmatpush.bf16.msrb.mxu3 %v6214_v10  ;;  %v7367_v3 = vadd.f32 %v3504_v61, %v3492_v17  ;;  %v4819_v10 = vld [vmem:[#allocation5 + $0x3a8] sm:$0xf0]  ;;  %v5065_v57 = vld [vmem:[#allocation5 + $0x560] sm:$0xf]  ;;  %v6556_v61 = vld [vmem:[#allocation5 + $0x88c] sm:$0xf0]  ;;  %v4682_v1 = vor.u32 %v6364_v27, %v4681_v56 }
 0x15a   : > { %3718 = vmatpush.bf16.msrb.mxu0 %v5014_v44  ;;  %v5587_v44 = vld [vmem:[#allocation5 + $0x9a8] sm:$0xf0]  ;;  %v5449_v17 = vld [vmem:[#allocation5 + $0x860] sm:$0xf]  ;;  %v6352_v6 = vld [vmem:[#allocation5 + $0x22c] sm:$0xf0] }
 0x15b   : > { %3731 = vmatpush.bf16.msrb.mxu1 %v5398_v21  ;;  %v5971_v21 = vld [vmem:[#allocation5 + $0xca8] sm:$0xf0]  ;;  %v4633_v59 = vld [vmem:[#allocation5 + $0x200] sm:$0xf]  ;;  %v6616_v49 = vld [vmem:[#allocation5 + $0xa6c] sm:$0xf0] }
 0x15c   : > { %3744 = vmatpush.bf16.msrb.mxu2 %v5782_v23  ;;  %v4822_v23 = vor.u32 %v6393_v9, %v4819_v10  ;;  %v5974_v33 = vor.u32 %v6681_v16, %v5971_v21  ;;  %v5834_v9 = vor.u32 %v6652_v63, %v5833_v62  ;;  %v6448_v10 = vld [vmem:[#allocation5 + $0x52c] sm:$0xf0]  ;;  %v5402_v21 = vor.u32 %v6544_v12, %v5401_v11  ;;  %v5689_v48 = vld [vmem:[#allocation5 + $0xa40] sm:$0xf] }
 0x15d   : > { %3757 = vmatpush.bf16.msrb.mxu3 %v6166_v28  ;;  %v5590_v28 = vor.u32 %v6585_v15, %v5587_v44  ;;  %v4634_v15 = vor.u32 %v6352_v6, %v4633_v59  ;;  %v6316_v56 = vld [vmem:[#allocation5 + $0x10c] sm:$0xf0]  ;;  %v4873_v27 = vld [vmem:[#allocation5 + $0x3e0] sm:$0xf] }
 0x15e   : > { %3719 = vmatpush.bf16.msrb.mxu0 %v4966_v35  ;;  %v3493_v32 = vpop.f32.mrf.mxu2  ;;  %v5539_v35 = vld [vmem:[#allocation5 + $0x948] sm:$0xf0]  ;;  %v5641_v63 = vld [vmem:[#allocation5 + $0x9e0] sm:$0xf] }
 0x15f   : > { %3732 = vmatpush.bf16.msrb.mxu1 %v5350_v4  ;;  %v5923_v4 = vld [vmem:[#allocation5 + $0xc48] sm:$0xf0]  ;;  %v5542_v47 = vor.u32 %v6573_v31, %v5539_v35  ;;  %v5737_v31 = vld [vmem:[#allocation5 + $0xaa0] sm:$0xf]  ;;  %v6628_v32 = vld [vmem:[#allocation5 + $0xacc] sm:$0xf0] }
 0x160   : > { %3745 = vmatpush.bf16.msrb.mxu2 %v5734_v37  ;;  %v3506_v37 = vpop.f32.mrf.mxu3  ;;  %v5926_v51 = vor.u32 %v6669_v36, %v5923_v4  ;;  %v4825_v11 = vld [vmem:[#allocation5 + $0x380] sm:$0xf] }
 0x161   : > { %3758 = vmatpush.bf16.msrb.mxu3 %v6118_v43  ;;  %v5497_v43 = vld [vmem:[#allocation5 + $0x8c0] sm:$0xf]  ;;  %v5354_v37 = vor.u32 %v6532_v30, %v5353_v29 }
 0x162   : > { %3720 = vmatpush.bf16.msrb.mxu0 %v4918_v53  ;;  %v4730_v53 = vor.u32 %v6376_v39, %v4729_v38  ;;  %v4537_v38 = vld [vmem:[#allocation5 + $0x140] sm:$0xf]  ;;  %v6328_v39 = vld [vmem:[#allocation5 + $0x16c] sm:$0xf0] }
 0x163   : > { %3733 = vmatpush.bf16.msrb.mxu1 %v5302_v54  ;;  %v5114_v54 = vor.u32 %v6472_v42, %v5113_v40  ;;  %v4921_v40 = vld [vmem:[#allocation5 + $0x440] sm:$0xf]  ;;  %v5738_v42 = vor.u32 %v6628_v32, %v5737_v31  ;;  %v6388_v31 = vld [vmem:[#allocation5 + $0x34c] sm:$0xf0] }
 0x164   : > { %3746 = vmatpush.bf16.msrb.mxu2 %v5686_v55  ;;  %v5498_v55 = vor.u32 %v6568_v45, %v5497_v43  ;;  %v6424_v43 = vld [vmem:[#allocation5 + $0x46c] sm:$0xf0]  ;;  %v5305_v45 = vld [vmem:[#allocation5 + $0x740] sm:$0xf] }
 0x165   : > { %3759 = vmatpush.bf16.msrb.mxu3 %v6070_v60  ;;  %v6460_v60 = vld [vmem:[#allocation5 + $0x58c] sm:$0xf0]  ;;  %v4777_v30 = vld [vmem:[#allocation5 + $0x320] sm:$0xf] }
 0x166   : > { %3721 = vmatpush.bf16.msrb.mxu0 %v4870_v5  ;;  %v5066_v2 = vor.u32 %v6460_v60, %v5065_v57  ;;  %v5450_v5 = vor.u32 %v6556_v61, %v5449_v17  ;;  %v5690_v57 = vor.u32 %v6616_v49, %v5689_v48  ;;  %v5257_v60 = vld [vmem:[#allocation5 + $0x6e0] sm:$0xf]  ;;  %v6508_v17 = vld [vmem:[#allocation5 + $0x70c] sm:$0xf0]  ;;  %v6562_v49 = vld [vmem:[#allocation5 + $0x8c4] sm:$0xf] }
 0x167   : > { %3734 = vmatpush.bf16.msrb.mxu1 %v5254_v7  ;;  %v5017_v7 = vld [vmem:[#allocation5 + $0x500] sm:$0xf] }
 0x168   : > { %3747 = vmatpush.bf16.msrb.mxu2 %v5638_v8  ;;  %v7369_v8 = vld [vmem:[#allocation7 + $0x10] sm:$0xff]  ;;  %v5018_v16 = vor.u32 %v6448_v10, %v5017_v7  ;;  %v5258_v7 = vor.u32 %v6508_v17, %v5257_v60  ;;  %v5161_v32 = vld [vmem:[#allocation5 + $0x620] sm:$0xf] }
 0x169   : > { %3760 = vmatpush.bf16.msrb.mxu3 %v6022_v13  ;;  %v5785_v13 = vld [vmem:[#allocation5 + $0xb00] sm:$0xf]  ;;  %v822_v44 = vunpack.c.l.bf16 %v7369_v8  ;;  %v6304_v10 = vld [vmem:[#allocation5 + $0xac] sm:$0xf0]  ;;  %v4683_v17 = vld [vmem:[#allocation5 + $0x290] sm:$0xf0] }
 0x16a   : > { %3722 = vmatpush.bf16.msrb.mxu0 %v4822_v23  ;;  %v4585_v23 = vld [vmem:[#allocation5 + $0x1a0] sm:$0xf] }
 0x16b   : > { %3735 = vmatpush.bf16.msrb.mxu1 %v5206_v26  ;;  %v5786_v26 = vor.u32 %v6640_v14, %v5785_v13  ;;  %v4586_v35 = vor.u32 %v6340_v24, %v4585_v23  ;;  %v6592_v23 = vld [vmem:[#allocation5 + $0x9ac] sm:$0xf0] }
 0x16c   : > { %3748 = vmatpush.bf16.msrb.mxu2 %v5590_v28  ;;  %v6436_v28 = vld [vmem:[#allocation5 + $0x4cc] sm:$0xf0] }
 0x16d   : > { %3761 = vmatpush.bf16.msrb.mxu3 %v5974_v33  ;;  %v4970_v4 = vor.u32 %v6436_v28, %v4969_v25  ;;  %v4393_v25 = vld [vmem:[#allocation5 + $0x20] sm:$0xf] }
 0x16e   : > { %3723 = vmatpush.bf16.msrb.mxu0 %v4774_v41  ;;  %v3517_v33 = vpop.f32.mrf.mxu0 }
 0x16f   : > { %3736 = vmatpush.bf16.msrb.mxu1 %v5158_v46  ;;  %v3518_v36 = vadd.f32 %v3517_v33, %v822_v44  ;;  %v3530_v41 = vpop.f32.mrf.mxu1  ;;  %v6520_v46 = vld [vmem:[#allocation5 + $0x76c] sm:$0xf0]  ;;  %v5209_v44 = vld [vmem:[#allocation5 + $0x680] sm:$0xf] }
 0x170   : > { %3749 = vmatpush.bf16.msrb.mxu2 %v5542_v47 }
 0x171   : > { %3762 = vmatpush.bf16.msrb.mxu3 %v5926_v51  ;;  %3724 = vmatmul.bf16.vlgmr.msrb.gmra.mxu0 %v7300_v22  ;;  %v3531_v47 = vadd.f32 %v3530_v41, %v3518_v36  ;;  %v4538_v51 = vor.u32 %v6328_v39, %v4537_v38  ;;  %v5545_v36 = vld [vmem:[#allocation5 + $0x920] sm:$0xf]  ;;  %v6370_v41 = vld [vmem:[#allocation5 + $0x2c4] sm:$0xf] }
 0x172   : > { %3768 = vmatpush.bf16.msra.mxu0 %v4730_v53  ;;  %3737 = vmatmul.bf16.vlgmr.msrb.gmra.mxu1 %v7294_v18  ;;  %v4922_v53 = vor.u32 %v6424_v43, %v4921_v40  ;;  %v6265_v39 = vld [vmem:[#allocation5 + $0xec0] sm:$0xf]  ;;  %v6760_v40 = vld [vmem:[#allocation5 + $0xeec] sm:$0xf0]  ;;  %v4731_v43 = vld [vmem:[#allocation5 + $0x2f0] sm:$0xf0] }
 0x173   : > { %3781 = vmatpush.bf16.msra.mxu1 %v5114_v54  ;;  %3750 = vmatmul.bf16.vlgmr.msrb.gmra.mxu2 %v7298_v20  ;;  %v5306_v54 = vor.u32 %v6520_v46, %v5305_v45  ;;  %v6466_v45 = vld [vmem:[#allocation5 + $0x5c4] sm:$0xf]  ;;  %v5115_v46 = vld [vmem:[#allocation5 + $0x5f0] sm:$0xf0] }
 0x174   : > { %3794 = vmatpush.bf16.msra.mxu2 %v5498_v55  ;;  %3763 = vmatmul.bf16.vlgmr.msrb.gmra.mxu3 %v7307_v34  ;;  %v4489_v55 = vld [vmem:[#allocation5 + $0xe0] sm:$0xf] }
 0x175   : > { %3807 = vmatpush.bf16.msra.mxu3 %v5882_v58  ;;  %v6412_v58 = vld [vmem:[#allocation5 + $0x40c] sm:$0xf0] }
 0x176   : > { %3769 = vmatpush.bf16.msra.mxu0 %v4682_v1  ;;  %v3543_v61 = vpop.f32.mrf.mxu2  ;;  %v6604_v1 = vld [vmem:[#allocation5 + $0xa0c] sm:$0xf0]  ;;  %v3519_v59 = vpop.f32.mrf.mxu0  ;;  %v4874_v6 = vor.u32 %v6412_v58, %v4873_v27  ;;  %v6217_v27 = vld [vmem:[#allocation5 + $0xe60] sm:$0xf]  ;;  %v6358_v58 = vld [vmem:[#allocation5 + $0x264] sm:$0xf] }
 0x177   : > { %3782 = vmatpush.bf16.msra.mxu1 %v5066_v2  ;;  %v3556_v62 = vpop.f32.mrf.mxu3  ;;  %v3544_v2 = vadd.f32 %v3543_v61, %v3531_v47  ;;  %v3532_v13 = vpop.f32.mrf.mxu1  ;;  %v5642_v14 = vor.u32 %v6604_v1, %v5641_v63  ;;  %v4778_v47 = vor.u32 %v6388_v31, %v4777_v30  ;;  %v6454_v61 = vld [vmem:[#allocation5 + $0x564] sm:$0xf]  ;;  %v5451_v1 = vld [vmem:[#allocation5 + $0x890] sm:$0xf0] }
 0x178   : > { %3795 = vmatpush.bf16.msra.mxu2 %v5450_v5  ;;  %v4490_v5 = vor.u32 %v6316_v56, %v4489_v55  ;;  %v4734_v55 = vor.u32 %v6370_v41, %v4731_v43  ;;  %v5118_v56 = vor.u32 %v6466_v45, %v5115_v46  ;;  %v6550_v63 = vld [vmem:[#allocation5 + $0x864] sm:$0xf]  ;;  %v4971_v31 = vld [vmem:[#allocation5 + $0x4d0] sm:$0xf0]  ;;  %v6073_v41 = vld [vmem:[#allocation5 + $0xd40] sm:$0xf] }
 0x179   : > { %3808 = vmatpush.bf16.msra.mxu3 %v5834_v9  ;;  %v4441_v9 = vld [vmem:[#allocation5 + $0x80] sm:$0xf]  ;;  %v7376_v12 = vadd.f32 %v3556_v62, %v3544_v2  ;;  %v5067_v62 = vld [vmem:[#allocation5 + $0x590] sm:$0xf0]  ;;  %v4686_v2 = vor.u32 %v6358_v58, %v4683_v17  ;;  %v6442_v13 = vld [vmem:[#allocation5 + $0x504] sm:$0xf] }
 0x17a   : > { %3770 = vmatpush.bf16.msra.mxu0 %v4634_v15  ;;  %v6400_v15 = vld [vmem:[#allocation5 + $0x3ac] sm:$0xf0]  ;;  %v4442_v24 = vor.u32 %v6304_v10, %v4441_v9  ;;  %v6346_v9 = vld [vmem:[#allocation5 + $0x204] sm:$0xf]  ;;  %v5454_v10 = vor.u32 %v6550_v63, %v5451_v1  ;;  %v4539_v46 = vld [vmem:[#allocation5 + $0x170] sm:$0xf0] }
 0x17b   : > { %3783 = vmatpush.bf16.msra.mxu1 %v5018_v16  ;;  %v6496_v16 = vld [vmem:[#allocation5 + $0x6ac] sm:$0xf0]  ;;  %v4826_v28 = vor.u32 %v6400_v15, %v4825_v11  ;;  %v4635_v11 = vld [vmem:[#allocation5 + $0x230] sm:$0xf0]  ;;  %v6538_v15 = vld [vmem:[#allocation5 + $0x804] sm:$0xf] }
 0x17c   : > { %3796 = vmatpush.bf16.msra.mxu2 %v5402_v21  ;;  %v5593_v21 = vld [vmem:[#allocation5 + $0x980] sm:$0xf]  ;;  %v5210_v29 = vor.u32 %v6496_v16, %v5209_v44  ;;  %v5403_v44 = vld [vmem:[#allocation5 + $0x830] sm:$0xf0]  ;;  %v6430_v30 = vld [vmem:[#allocation5 + $0x4a4] sm:$0xf] }
 0x17d   : > { %3809 = vmatpush.bf16.msra.mxu3 %v5786_v26  ;;  %v6292_v26 = vld [vmem:[#allocation5 + $0x4c] sm:$0xf0]  ;;  %v5594_v33 = vor.u32 %v6592_v23, %v5593_v21  ;;  %v4638_v21 = vor.u32 %v6346_v9, %v4635_v11  ;;  %v6322_v43 = vld [vmem:[#allocation5 + $0x144] sm:$0xf]  ;;  %v4491_v58 = vld [vmem:[#allocation5 + $0x110] sm:$0xf0] }
 0x17e   : > { %3771 = vmatpush.bf16.msra.mxu0 %v4586_v35  ;;  %v6484_v35 = vld [vmem:[#allocation5 + $0x64c] sm:$0xf0]  ;;  %v4875_v17 = vld [vmem:[#allocation5 + $0x410] sm:$0xf0] }
 0x17f   : > { %3784 = vmatpush.bf16.msra.mxu1 %v4970_v4  ;;  %v6580_v4 = vld [vmem:[#allocation5 + $0x94c] sm:$0xf0]  ;;  %v3558_v38 = vpop.f32.mrf.mxu3  ;;  %v5162_v48 = vor.u32 %v6484_v35, %v5161_v32  ;;  %v5355_v35 = vld [vmem:[#allocation5 + $0x7d0] sm:$0xf0] }
 0x180   : > { %3797 = vmatpush.bf16.msra.mxu2 %v5354_v37  ;;  %v3545_v37 = vpop.f32.mrf.mxu2  ;;  %v5259_v63 = vld [vmem:[#allocation5 + $0x710] sm:$0xf0]  ;;  %v6688_v11 = vld [vmem:[#allocation5 + $0xcac] sm:$0xf0] }
 0x181   : > { %3810 = vmatpush.bf16.msra.mxu3 %v5738_v42  ;;  %v4394_v42 = vor.u32 %v6292_v26, %v4393_v25  ;;  %v6724_v25 = vld [vmem:[#allocation5 + $0xdcc] sm:$0xf0]  ;;  %v6334_v26 = vld [vmem:[#allocation5 + $0x1a4] sm:$0xf] }
 0x182   : > { %3772 = vmatpush.bf16.msra.mxu0 %v4538_v51  ;;  %v5499_v51 = vld [vmem:[#allocation5 + $0x8f0] sm:$0xf0] }
 0x183   : > { %3785 = vmatpush.bf16.msra.mxu1 %v4922_v53  ;;  %v5546_v53 = vor.u32 %v6580_v4, %v5545_v36  ;;  %v5502_v60 = vor.u32 %v6562_v49, %v5499_v51  ;;  %v823_v36 = vunpack.c.h.bf16 %v7369_v8  ;;  %v6514_v49 = vld [vmem:[#allocation5 + $0x744] sm:$0xf]  ;;  %v5307_v8 = vld [vmem:[#allocation5 + $0x770] sm:$0xf0] }
 0x184   : > { %3798 = vmatpush.bf16.msra.mxu2 %v5306_v54  ;;  %v6266_v54 = vor.u32 %v6760_v40, %v6265_v39  ;;  %v4974_v40 = vor.u32 %v6430_v30, %v4971_v31  ;;  %v6286_v31 = vld [vmem:[#allocation5 + $0x24] sm:$0xf] }
 0x185   : > { %3811 = vmatpush.bf16.msra.mxu3 %v5690_v57  ;;  %v6748_v57 = vld [vmem:[#allocation5 + $0xe8c] sm:$0xf0] }
 0x186   : > { %3773 = vmatpush.bf16.msra.mxu0 %v4490_v5  ;;  %v6218_v59 = vor.u32 %v6748_v57, %v6217_v27  ;;  %v5070_v5 = vor.u32 %v6454_v61, %v5067_v62  ;;  %v6310_v27 = vld [vmem:[#allocation5 + $0xe4] sm:$0xf]  ;;  %v5310_v57 = vor.u32 %v6514_v49, %v5307_v8 }
 0x187   : > { %3786 = vmatpush.bf16.msra.mxu1 %v4874_v6  ;;  %v6169_v6 = vld [vmem:[#allocation5 + $0xe00] sm:$0xf]  ;;  %v6502_v62 = vld [vmem:[#allocation5 + $0x6e4] sm:$0xf] }
 0x188   : > { %3799 = vmatpush.bf16.msra.mxu2 %v5258_v7  ;;  %v6736_v7 = vld [vmem:[#allocation5 + $0xe2c] sm:$0xf0] }
 0x189   : > { %3812 = vmatpush.bf16.msra.mxu3 %v5642_v14  ;;  %v5019_v14 = vld [vmem:[#allocation5 + $0x530] sm:$0xf0]  ;;  %v6170_v16 = vor.u32 %v6736_v7, %v6169_v6  ;;  %v4494_v7 = vor.u32 %v6310_v27, %v4491_v58  ;;  %v6646_v27 = vld [vmem:[#allocation5 + $0xb64] sm:$0xf] }
 0x18a   : > { %3774 = vmatpush.bf16.msra.mxu0 %v4442_v24  ;;  %v5022_v23 = vor.u32 %v6442_v13, %v5019_v14  ;;  %v6121_v24 = vld [vmem:[#allocation5 + $0xda0] sm:$0xf]  ;;  %v6298_v13 = vld [vmem:[#allocation5 + $0x84] sm:$0xf] }
 0x18b   : > { %3787 = vmatpush.bf16.msra.mxu1 %v4826_v28  ;;  %v5406_v28 = vor.u32 %v6538_v15, %v5403_v44  ;;  %v6122_v37 = vor.u32 %v6724_v25, %v6121_v24  ;;  %v5262_v15 = vor.u32 %v6502_v62, %v5259_v63  ;;  %v4443_v44 = vld [vmem:[#allocation5 + $0xb0] sm:$0xf0]  ;;  %v6742_v58 = vld [vmem:[#allocation5 + $0xe64] sm:$0xf]  ;;  %v6365_v62 = vld [vmem:[#allocation5 + $0x294] sm:$0xf0] }
 0x18c   : > { %3800 = vmatpush.bf16.msra.mxu2 %v5210_v29  ;;  %v4587_v29 = vld [vmem:[#allocation5 + $0x1d0] sm:$0xf0]  ;;  %v5073_v63 = vld [vmem:[#allocation5 + $0x568] sm:$0xf] }
 0x18d   : > { %3813 = vmatpush.bf16.msra.mxu3 %v5594_v33  ;;  %v6526_v33 = vld [vmem:[#allocation5 + $0x7a4] sm:$0xf]  ;;  %v4590_v39 = vor.u32 %v6334_v26, %v4587_v29  ;;  %v5211_v24 = vld [vmem:[#allocation5 + $0x6b0] sm:$0xf0]  ;;  %v5929_v26 = vld [vmem:[#allocation5 + $0xc20] sm:$0xf]  ;;  %v4446_v29 = vor.u32 %v6298_v13, %v4443_v44 }
 0x18e   : > { %3775 = vmatpush.bf16.msra.mxu0 %v4394_v42  ;;  %v3569_v32 = vpop.f32.mrf.mxu0  ;;  %v6712_v42 = vld [vmem:[#allocation5 + $0xd6c] sm:$0xf0]  ;;  %v5358_v45 = vor.u32 %v6526_v33, %v5355_v35  ;;  %v6382_v33 = vld [vmem:[#allocation5 + $0x324] sm:$0xf]  ;;  %v4641_v13 = vld [vmem:[#allocation5 + $0x208] sm:$0xf] }
 0x18f   : > { %3788 = vmatpush.bf16.msra.mxu1 %v4778_v47  ;;  %v7384_v4 = vadd.f32 %v3569_v32, %v7376_v12  ;;  %v3582_v38 = vpop.f32.mrf.mxu1  ;;  %v6418_v47 = vld [vmem:[#allocation5 + $0x444] sm:$0xf]  ;;  %v6074_v12 = vor.u32 %v6712_v42, %v6073_v41  ;;  %v4395_v32 = vld [vmem:[#allocation5 + $0x50] sm:$0xf0]  ;;  %v5025_v44 = vld [vmem:[#allocation5 + $0x508] sm:$0xf] }
 0x190   : > { %3801 = vmatpush.bf16.msra.mxu2 %v5162_v48  ;;  %v4923_v48 = vld [vmem:[#allocation5 + $0x470] sm:$0xf0]  ;;  %v3583_v51 = vadd.f32 %v3582_v38, %v823_v36  ;;  %v6754_v42 = vld [vmem:[#allocation5 + $0xec4] sm:$0xf]  ;;  %v4398_v49 = vor.u32 %v6286_v31, %v4395_v32  ;;  %v4593_v31 = vld [vmem:[#allocation5 + $0x1a8] sm:$0xf] }
 0x191   : > { %3814 = vmatpush.bf16.msra.mxu3 %v5546_v53  ;;  %3776 = vmatmul.bf16.vlgmr.msra.gmra.mxu0 %v7296_v19  ;;  %v4542_v53 = vor.u32 %v6322_v43, %v4539_v46  ;;  %v4779_v36 = vld [vmem:[#allocation5 + $0x350] sm:$0xf0]  ;;  %v6341_v32 = vld [vmem:[#allocation5 + $0x1d4] sm:$0xf0] }
 0x192   : > { %3820 = vmatpush.bf16.msrb.mxu0 %v6266_v54  ;;  %3789 = vmatmul.bf16.vlgmr.msra.gmra.mxu1 %v7300_v22  ;;  %v4926_v54 = vor.u32 %v6418_v47, %v4923_v48  ;;  %v5163_v38 = vld [vmem:[#allocation5 + $0x650] sm:$0xf0]  ;;  %v4737_v47 = vld [vmem:[#allocation5 + $0x2c8] sm:$0xf]  ;;  %v6377_v48 = vld [vmem:[#allocation5 + $0x2f4] sm:$0xf0]  ;;  %v4782_v8 = vor.u32 %v6382_v33, %v4779_v36 }
 0x193   : > { %3833 = vmatpush.bf16.msrb.mxu1 %v4734_v55  ;;  %3802 = vmatmul.bf16.vlgmr.msra.gmra.mxu2 %v7294_v18  ;;  %v6025_v55 = vld [vmem:[#allocation5 + $0xce0] sm:$0xf]  ;;  %v5883_v41 = vld [vmem:[#allocation5 + $0xbf0] sm:$0xf0]  ;;  %v6437_v36 = vld [vmem:[#allocation5 + $0x4d4] sm:$0xf0] }
 0x194   : > { %3846 = vmatpush.bf16.msrb.mxu2 %v5118_v56  ;;  %3815 = vmatmul.bf16.vlgmr.msra.gmra.mxu3 %v7298_v20  ;;  %v6700_v56 = vld [vmem:[#allocation5 + $0xd0c] sm:$0xf0]  ;;  %v6267_v46 = vld [vmem:[#allocation5 + $0xef0] sm:$0xf0] }
 0x195   : > { %3859 = vmatpush.bf16.msrb.mxu3 %v5502_v60  ;;  %v6406_v60 = vld [vmem:[#allocation5 + $0x3e4] sm:$0xf] }
 0x196   : > { %3821 = vmatpush.bf16.msrb.mxu0 %v6218_v59  ;;  %v3595_v61 = vpop.f32.mrf.mxu2  ;;  %v3571_v1 = vpop.f32.mrf.mxu0  ;;  %v4878_v9 = vor.u32 %v6406_v60, %v4875_v17  ;;  %v6219_v17 = vld [vmem:[#allocation5 + $0xe90] sm:$0xf0] }
 0x197   : > { %3834 = vmatpush.bf16.msrb.mxu1 %v4686_v2  ;;  %v3596_v59 = vadd.f32 %v3595_v61, %v3583_v51  ;;  %v3608_v2 = vpop.f32.mrf.mxu3  ;;  %v3584_v6 = vpop.f32.mrf.mxu1  ;;  %v5121_v51 = vld [vmem:[#allocation5 + $0x5c8] sm:$0xf]  ;;  %v6461_v1 = vld [vmem:[#allocation5 + $0x594] sm:$0xf0] }
 0x198   : > { %3847 = vmatpush.bf16.msrb.mxu2 %v5070_v5  ;;  %v6026_v5 = vor.u32 %v6700_v56, %v6025_v55  ;;  %v6270_v55 = vor.u32 %v6754_v42, %v6267_v46  ;;  %v4738_v56 = vor.u32 %v6377_v48, %v4737_v47  ;;  %v4689_v61 = vld [vmem:[#allocation5 + $0x268] sm:$0xf]  ;;  %v6634_v6 = vld [vmem:[#allocation5 + $0xb04] sm:$0xf]  ;;  %v4594_v42 = vor.u32 %v6341_v32, %v4593_v31  ;;  %v5547_v31 = vld [vmem:[#allocation5 + $0x950] sm:$0xf0] }
 0x199   : > { %3860 = vmatpush.bf16.msrb.mxu3 %v5454_v10  ;;  %v5977_v10 = vld [vmem:[#allocation5 + $0xc80] sm:$0xf]  ;;  %v7386_v14 = vadd.f32 %v3608_v2, %v3596_v59  ;;  %v6222_v2 = vor.u32 %v6742_v58, %v6219_v17  ;;  %v6706_v46 = vld [vmem:[#allocation5 + $0xd44] sm:$0xf]  ;;  %v6027_v17 = vld [vmem:[#allocation5 + $0xd10] sm:$0xf0] }
 0x19a   : > { %3822 = vmatpush.bf16.msrb.mxu0 %v6170_v16  ;;  %v6394_v16 = vld [vmem:[#allocation5 + $0x384] sm:$0xf]  ;;  %v5978_v25 = vor.u32 %v6688_v11, %v5977_v10  ;;  %v5074_v10 = vor.u32 %v6461_v1, %v5073_v63  ;;  %v6171_v11 = vld [vmem:[#allocation5 + $0xe30] sm:$0xf0]  ;;  %v4881_v1 = vld [vmem:[#allocation5 + $0x3e8] sm:$0xf] }
 0x19b   : > { %3835 = vmatpush.bf16.msrb.mxu1 %v4638_v21  ;;  %v4827_v21 = vld [vmem:[#allocation5 + $0x3b0] sm:$0xf0]  ;;  %v6694_v58 = vld [vmem:[#allocation5 + $0xce4] sm:$0xf] }
 0x19c   : > { %3848 = vmatpush.bf16.msrb.mxu2 %v5022_v23  ;;  %v6490_v23 = vld [vmem:[#allocation5 + $0x684] sm:$0xf]  ;;  %v4830_v30 = vor.u32 %v6394_v16, %v4827_v21  ;;  %v6449_v16 = vld [vmem:[#allocation5 + $0x534] sm:$0xf0] }
 0x19d   : > { %3861 = vmatpush.bf16.msrb.mxu3 %v5406_v28  ;;  %v6676_v28 = vld [vmem:[#allocation5 + $0xc4c] sm:$0xf0]  ;;  %v5214_v35 = vor.u32 %v6490_v23, %v5211_v24 }
 0x19e   : > { %3823 = vmatpush.bf16.msrb.mxu0 %v6122_v37  ;;  %v6478_v37 = vld [vmem:[#allocation5 + $0x624] sm:$0xf] }
 0x19f   : > { %3836 = vmatpush.bf16.msrb.mxu1 %v4590_v39  ;;  %v3597_v39 = vpop.f32.mrf.mxu2  ;;  %v3610_v43 = vpop.f32.mrf.mxu3 }
 0x1a0   : > { %3849 = vmatpush.bf16.msrb.mxu2 %v4974_v40  ;;  %v6658_v40 = vld [vmem:[#allocation5 + $0xbc4] sm:$0xf] }
 0x1a1   : > { %3862 = vmatpush.bf16.msrb.mxu3 %v5358_v45  ;;  %v5930_v45 = vor.u32 %v6676_v28, %v5929_v26  ;;  %v5739_v26 = vld [vmem:[#allocation5 + $0xad0] sm:$0xf0]  ;;  %v6718_v28 = vld [vmem:[#allocation5 + $0xda4] sm:$0xf] }
 0x1a2   : > { %3824 = vmatpush.bf16.msrb.mxu0 %v6074_v12  ;;  %v6473_v12 = vld [vmem:[#allocation5 + $0x5f4] sm:$0xf0]  ;;  %v6610_v43 = vld [vmem:[#allocation5 + $0xa44] sm:$0xf] }
 0x1a3   : > { %3837 = vmatpush.bf16.msrb.mxu1 %v4542_v53  ;;  %v5166_v53 = vor.u32 %v6478_v37, %v5163_v38  ;;  %v5122_v60 = vor.u32 %v6473_v12, %v5121_v51  ;;  %v6329_v51 = vld [vmem:[#allocation5 + $0x174] sm:$0xf0]  ;;  %v4929_v12 = vld [vmem:[#allocation5 + $0x448] sm:$0xf] }
 0x1a4   : > { %3850 = vmatpush.bf16.msrb.mxu2 %v4926_v54  ;;  %v5886_v54 = vor.u32 %v6658_v40, %v5883_v41  ;;  %v7393_v40 = vld [vmem:[#allocation7 + $0x18] sm:$0xff] }
 0x1a5   : > { %3863 = vmatpush.bf16.msrb.mxu3 %v5310_v57  ;;  %v5835_v57 = vld [vmem:[#allocation5 + $0xb90] sm:$0xf0] }
 0x1a6   : > { %3825 = vmatpush.bf16.msrb.mxu0 %v6026_v5  ;;  %v5838_v59 = vor.u32 %v6646_v27, %v5835_v57  ;;  %v4690_v5 = vor.u32 %v6365_v62, %v4689_v61  ;;  %v6598_v27 = vld [vmem:[#allocation5 + $0x9e4] sm:$0xf]  ;;  %v5643_v57 = vld [vmem:[#allocation5 + $0xa10] sm:$0xf0]  ;;  %v4497_v61 = vld [vmem:[#allocation5 + $0xe8] sm:$0xf] }
 0x1a7   : > { %3838 = vmatpush.bf16.msrb.mxu1 %v4494_v7  ;;  %v5787_v7 = vld [vmem:[#allocation5 + $0xb30] sm:$0xf0]  ;;  %v6317_v62 = vld [vmem:[#allocation5 + $0x114] sm:$0xf0] }
 0x1a8   : > { %3851 = vmatpush.bf16.msrb.mxu2 %v4878_v9  ;;  %v6730_v9 = vld [vmem:[#allocation5 + $0xe04] sm:$0xf]  ;;  %v5790_v21 = vor.u32 %v6634_v6, %v5787_v7  ;;  %v5646_v7 = vor.u32 %v6598_v27, %v5643_v57 }
 0x1a9   : > { %3864 = vmatpush.bf16.msrb.mxu3 %v5262_v15  ;;  %v6353_v15 = vld [vmem:[#allocation5 + $0x234] sm:$0xf0]  ;;  %v6174_v23 = vor.u32 %v6730_v9, %v6171_v11  ;;  %v4498_v11 = vor.u32 %v6317_v62, %v4497_v61  ;;  %v5841_v62 = vld [vmem:[#allocation5 + $0xb68] sm:$0xf] }
 0x1aa   : > { %3826 = vmatpush.bf16.msrb.mxu0 %v5978_v25  ;;  %v4642_v24 = vor.u32 %v6353_v15, %v4641_v13  ;;  %v6622_v25 = vld [vmem:[#allocation5 + $0xaa4] sm:$0xf]  ;;  %v5595_v15 = vld [vmem:[#allocation5 + $0x9b0] sm:$0xf0]  ;;  %v6557_v61 = vld [vmem:[#allocation5 + $0x894] sm:$0xf0] }
 0x1ab   : > { %3839 = vmatpush.bf16.msrb.mxu1 %v4446_v29  ;;  %v5026_v29 = vor.u32 %v6449_v16, %v5025_v44  ;;  %v5742_v38 = vor.u32 %v6622_v25, %v5739_v26  ;;  %v6586_v13 = vld [vmem:[#allocation5 + $0x984] sm:$0xf]  ;;  %v6305_v25 = vld [vmem:[#allocation5 + $0xb4] sm:$0xf0]  ;;  %v4833_v26 = vld [vmem:[#allocation5 + $0x388] sm:$0xf] }
 0x1ac   : > { %3852 = vmatpush.bf16.msrb.mxu2 %v4830_v30  ;;  %v6123_v30 = vld [vmem:[#allocation5 + $0xdd0] sm:$0xf0]  ;;  %v6682_v44 = vld [vmem:[#allocation5 + $0xc84] sm:$0xf] }
 0x1ad   : > { %3865 = vmatpush.bf16.msrb.mxu3 %v5214_v35  ;;  %v4977_v35 = vld [vmem:[#allocation5 + $0x4a8] sm:$0xf]  ;;  %v6126_v41 = vor.u32 %v6718_v28, %v6123_v30  ;;  %v6401_v28 = vld [vmem:[#allocation5 + $0x3b4] sm:$0xf0]  ;;  %v6574_v30 = vld [vmem:[#allocation5 + $0x924] sm:$0xf] }
 0x1ae   : > { %3827 = vmatpush.bf16.msrb.mxu0 %v5930_v45  ;;  %v3621_v33 = vpop.f32.mrf.mxu0  ;;  %v5691_v45 = vld [vmem:[#allocation5 + $0xa70] sm:$0xf0]  ;;  %v4978_v47 = vor.u32 %v6437_v36, %v4977_v35  ;;  %v6670_v35 = vld [vmem:[#allocation5 + $0xc24] sm:$0xf] }
 0x1af   : > { %3840 = vmatpush.bf16.msrb.mxu1 %v4398_v49  ;;  %v3622_v37 = vadd.f32 %v3621_v33, %v7386_v14  ;;  %v3634_v39 = vpop.f32.mrf.mxu1  ;;  %v6075_v49 = vld [vmem:[#allocation5 + $0xd70] sm:$0xf0]  ;;  %v6425_v14 = vld [vmem:[#allocation5 + $0x474] sm:$0xf0] }
 0x1b0   : > { %3853 = vmatpush.bf16.msrb.mxu2 %v4782_v8  ;;  %v4545_v8 = vld [vmem:[#allocation5 + $0x148] sm:$0xf]  ;;  %v5931_v36 = vld [vmem:[#allocation5 + $0xc50] sm:$0xf0] }
 0x1b1   : > { %3866 = vmatpush.bf16.msrb.mxu3 %v5166_v53  ;;  %3828 = vmatmul.bf16.vlgmr.msrb.gmra.mxu0 %v7307_v34  ;;  %v7395_v48 = vadd.f32 %v3634_v39, %v3622_v37  ;;  %v824_v53 = vunpack.c.l.bf16 %v7393_v40  ;;  %v4401_v37 = vld [vmem:[#allocation5 + $0x28] sm:$0xf]  ;;  %v6293_v39 = vld [vmem:[#allocation5 + $0x54] sm:$0xf0] }
 0x1b2   : > { %3872 = vmatpush.bf16.msra.mxu0 %v5886_v54  ;;  %3841 = vmatmul.bf16.vlgmr.msrb.gmra.mxu1 %v7296_v19  ;;  %v5694_v54 = vor.u32 %v6610_v43, %v5691_v45  ;;  %v5505_v45 = vld [vmem:[#allocation5 + $0x8c8] sm:$0xf] }
 0x1b3   : > { %3885 = vmatpush.bf16.msra.mxu1 %v6270_v55  ;;  %3854 = vmatmul.bf16.vlgmr.msrb.gmra.mxu2 %v7300_v22  ;;  %v6078_v55 = vor.u32 %v6706_v46, %v6075_v49  ;;  %v6569_v46 = vld [vmem:[#allocation5 + $0x8f4] sm:$0xf0] }
 0x1b4   : > { %3898 = vmatpush.bf16.msra.mxu2 %v4738_v56  ;;  %3867 = vmatmul.bf16.vlgmr.msrb.gmra.mxu3 %v7294_v18  ;;  %v4546_v56 = vor.u32 %v6329_v51, %v4545_v8  ;;  %v5550_v8 = vor.u32 %v6574_v30, %v5547_v31  ;;  %v6665_v51 = vld [vmem:[#allocation5 + $0xbf4] sm:$0xf0]  ;;  %v5506_v57 = vor.u32 %v6569_v46, %v5505_v45  ;;  %v5361_v31 = vld [vmem:[#allocation5 + $0x7a8] sm:$0xf] }
 0x1b5   : > { %3911 = vmatpush.bf16.msra.mxu3 %v5122_v60  ;;  %v4930_v60 = vor.u32 %v6425_v14, %v4929_v12  ;;  %v6273_v12 = vld [vmem:[#allocation5 + $0xec8] sm:$0xf]  ;;  %v6761_v14 = vld [vmem:[#allocation5 + $0xef4] sm:$0xf0] }
 0x1b6   : > { %3873 = vmatpush.bf16.msra.mxu0 %v5838_v59  ;;  %v3647_v63 = vpop.f32.mrf.mxu2  ;;  %v6413_v59 = vld [vmem:[#allocation5 + $0x414] sm:$0xf0] }
 0x1b7   : > { %3886 = vmatpush.bf16.msra.mxu1 %v6222_v2  ;;  %v3648_v2 = vadd.f32 %v3647_v63, %v824_v53  ;;  %v3660_v6 = vpop.f32.mrf.mxu3  ;;  %v3636_v9 = vpop.f32.mrf.mxu1  ;;  %v5934_v53 = vor.u32 %v6670_v35, %v5931_v36  ;;  %v6629_v36 = vld [vmem:[#allocation5 + $0xad4] sm:$0xf0] }
 0x1b8   : > { %3899 = vmatpush.bf16.msra.mxu2 %v4690_v5  ;;  %v3623_v5 = vpop.f32.mrf.mxu0 }
 0x1b9   : > { %3912 = vmatpush.bf16.msra.mxu3 %v5074_v10  ;;  %v6030_v10 = vor.u32 %v6694_v58, %v6027_v17  ;;  %v7398_v16 = vadd.f32 %v3660_v6, %v3648_v2  ;;  %v5457_v17 = vld [vmem:[#allocation5 + $0x868] sm:$0xf]  ;;  %v6749_v2 = vld [vmem:[#allocation5 + $0xe94] sm:$0xf0]  ;;  %v6359_v5 = vld [vmem:[#allocation5 + $0x26c] sm:$0xf] }
 0x1ba   : > { %3874 = vmatpush.bf16.msra.mxu0 %v5790_v21  ;;  %v4882_v21 = vor.u32 %v6413_v59, %v4881_v1  ;;  %v6653_v1 = vld [vmem:[#allocation5 + $0xb94] sm:$0xf0]  ;;  %v6225_v59 = vld [vmem:[#allocation5 + $0xe68] sm:$0xf]  ;;  %v4691_v6 = vld [vmem:[#allocation5 + $0x298] sm:$0xf0] }
 0x1bb   : > { %3887 = vmatpush.bf16.msra.mxu1 %v6174_v23  ;;  %v5979_v23 = vld [vmem:[#allocation5 + $0xcb0] sm:$0xf0]  ;;  %v5842_v9 = vor.u32 %v6653_v1, %v5841_v62  ;;  %v5265_v62 = vld [vmem:[#allocation5 + $0x6e8] sm:$0xf] }
 0x1bc   : > { %3900 = vmatpush.bf16.msra.mxu2 %v4642_v24  ;;  %v4449_v24 = vld [vmem:[#allocation5 + $0x88] sm:$0xf]  ;;  %v5982_v32 = vor.u32 %v6682_v44, %v5979_v23  ;;  %v4694_v44 = vor.u32 %v6359_v5, %v4691_v6  ;;  %v6701_v6 = vld [vmem:[#allocation5 + $0xd14] sm:$0xf0] }
 0x1bd   : > { %3913 = vmatpush.bf16.msra.mxu3 %v5026_v29  ;;  %v5598_v29 = vor.u32 %v6586_v13, %v5595_v15  ;;  %v4450_v33 = vor.u32 %v6305_v25, %v4449_v24  ;;  %v6545_v13 = vld [vmem:[#allocation5 + $0x834] sm:$0xf0]  ;;  %v5793_v15 = vld [vmem:[#allocation5 + $0xb08] sm:$0xf]  ;;  %v6347_v25 = vld [vmem:[#allocation5 + $0x20c] sm:$0xf] }
 0x1be   : > { %3875 = vmatpush.bf16.msra.mxu0 %v5742_v38  ;;  %v4834_v38 = vor.u32 %v6401_v28, %v4833_v26  ;;  %v3649_v43 = vpop.f32.mrf.mxu2  ;;  %v6177_v23 = vld [vmem:[#allocation5 + $0xe08] sm:$0xf]  ;;  %v6737_v24 = vld [vmem:[#allocation5 + $0xe34] sm:$0xf0]  ;;  %v4643_v26 = vld [vmem:[#allocation5 + $0x238] sm:$0xf0] }
 0x1bf   : > { %3888 = vmatpush.bf16.msra.mxu1 %v6126_v41  ;;  %v4785_v41 = vld [vmem:[#allocation5 + $0x328] sm:$0xf]  ;;  %v3662_v49 = vpop.f32.mrf.mxu3  ;;  %v6178_v30 = vor.u32 %v6737_v24, %v6177_v23  ;;  %v4646_v35 = vor.u32 %v6347_v25, %v4643_v26  ;;  %v6497_v24 = vld [vmem:[#allocation5 + $0x6b4] sm:$0xf0] }
 0x1c0   : > { %3901 = vmatpush.bf16.msra.mxu2 %v4594_v42  ;;  %v6389_v42 = vld [vmem:[#allocation5 + $0x354] sm:$0xf0]  ;;  %v6033_v5 = vld [vmem:[#allocation5 + $0xce8] sm:$0xf] }
 0x1c1   : > { %3914 = vmatpush.bf16.msra.mxu3 %v4978_v47  ;;  %v5889_v47 = vld [vmem:[#allocation5 + $0xbc8] sm:$0xf]  ;;  %v4786_v27 = vor.u32 %v6389_v42, %v4785_v41  ;;  %v4595_v41 = vld [vmem:[#allocation5 + $0x1d8] sm:$0xf0] }
 0x1c2   : > { %3876 = vmatpush.bf16.msra.mxu0 %v5694_v54  ;;  %v4402_v54 = vor.u32 %v6293_v39, %v4401_v37  ;;  %v5890_v58 = vor.u32 %v6665_v51, %v5889_v47  ;;  %v6129_v37 = vld [vmem:[#allocation5 + $0xda8] sm:$0xf]  ;;  %v6335_v39 = vld [vmem:[#allocation5 + $0x1ac] sm:$0xf]  ;;  %v6521_v51 = vld [vmem:[#allocation5 + $0x774] sm:$0xf0] }
 0x1c3   : > { %3889 = vmatpush.bf16.msra.mxu1 %v6078_v55  ;;  %v6371_v55 = vld [vmem:[#allocation5 + $0x2cc] sm:$0xf]  ;;  %v5217_v23 = vld [vmem:[#allocation5 + $0x688] sm:$0xf] }
 0x1c4   : > { %3902 = vmatpush.bf16.msra.mxu2 %v4546_v56  ;;  %v4739_v56 = vld [vmem:[#allocation5 + $0x2f8] sm:$0xf0]  ;;  %v5601_v25 = vld [vmem:[#allocation5 + $0x988] sm:$0xf] }
 0x1c5   : > { %3915 = vmatpush.bf16.msra.mxu3 %v4930_v60  ;;  %v6274_v60 = vor.u32 %v6761_v14, %v6273_v12  ;;  %v4742_v63 = vor.u32 %v6371_v55, %v4739_v56  ;;  %v5697_v12 = vld [vmem:[#allocation5 + $0xa48] sm:$0xf]  ;;  %v4598_v14 = vor.u32 %v6335_v39, %v4595_v41  ;;  %v6713_v55 = vld [vmem:[#allocation5 + $0xd74] sm:$0xf0] }
 0x1c6   : > { %3877 = vmatpush.bf16.msra.mxu0 %v5646_v7  ;;  %v5458_v7 = vor.u32 %v6557_v61, %v5457_v17  ;;  %v5553_v39 = vld [vmem:[#allocation5 + $0x928] sm:$0xf]  ;;  %v6581_v41 = vld [vmem:[#allocation5 + $0x954] sm:$0xf0] }
 0x1c7   : > { %3890 = vmatpush.bf16.msra.mxu1 %v6030_v10  ;;  %v6226_v10 = vor.u32 %v6749_v2, %v6225_v59  ;;  %v6605_v2 = vld [vmem:[#allocation5 + $0xa14] sm:$0xf0] }
 0x1c8   : > { %3903 = vmatpush.bf16.msra.mxu2 %v4498_v11  ;;  %v5409_v11 = vld [vmem:[#allocation5 + $0x808] sm:$0xf] }
 0x1c9   : > { %3916 = vmatpush.bf16.msra.mxu3 %v4882_v21  ;;  %v6641_v21 = vld [vmem:[#allocation5 + $0xb34] sm:$0xf0]  ;;  %v5410_v28 = vor.u32 %v6545_v13, %v5409_v11 }
 0x1ca   : > { %3878 = vmatpush.bf16.msra.mxu0 %v5598_v29  ;;  %v5794_v29 = vor.u32 %v6641_v21, %v5793_v15  ;;  %v6034_v21 = vor.u32 %v6701_v6, %v6033_v5  ;;  %v5459_v6 = vld [vmem:[#allocation5 + $0x898] sm:$0xf0] }
 0x1cb   : > { %3891 = vmatpush.bf16.msra.mxu1 %v5982_v32  ;;  %v6533_v32 = vld [vmem:[#allocation5 + $0x7d4] sm:$0xf0] }
 0x1cc   : > { %3904 = vmatpush.bf16.msra.mxu2 %v4450_v33  ;;  %v5745_v33 = vld [vmem:[#allocation5 + $0xaa8] sm:$0xf]  ;;  %v5362_v42 = vor.u32 %v6533_v32, %v5361_v31  ;;  %v6299_v31 = vld [vmem:[#allocation5 + $0x8c] sm:$0xf]  ;;  %v4451_v32 = vld [vmem:[#allocation5 + $0xb8] sm:$0xf0] }
 0x1cd   : > { %3917 = vmatpush.bf16.msra.mxu3 %v4834_v38  ;;  %v6725_v38 = vld [vmem:[#allocation5 + $0xdd4] sm:$0xf0]  ;;  %v5746_v46 = vor.u32 %v6629_v36, %v5745_v33  ;;  %v5218_v33 = vor.u32 %v6497_v24, %v5217_v23  ;;  %v6443_v24 = vld [vmem:[#allocation5 + $0x50c] sm:$0xf] }
 0x1ce   : > { %3879 = vmatpush.bf16.msra.mxu0 %v5550_v8  ;;  %v3673_v43 = vpop.f32.mrf.mxu0  ;;  %v6130_v47 = vor.u32 %v6725_v38, %v6129_v37  ;;  %v5313_v8 = vld [vmem:[#allocation5 + $0x748] sm:$0xf]  ;;  %v6485_v36 = vld [vmem:[#allocation5 + $0x654] sm:$0xf0] }
 0x1cf   : > { %3892 = vmatpush.bf16.msra.mxu1 %v5934_v53  ;;  %v3686_v45 = vpop.f32.mrf.mxu1  ;;  %v3674_v49 = vadd.f32 %v3673_v43, %v7398_v16  ;;  %v6617_v53 = vld [vmem:[#allocation5 + $0xa74] sm:$0xf0] }
 0x1d0   : > { %3905 = vmatpush.bf16.msra.mxu2 %v4402_v54  ;;  %v6081_v54 = vld [vmem:[#allocation5 + $0xd48] sm:$0xf]  ;;  %v6509_v16 = vld [vmem:[#allocation5 + $0x714] sm:$0xf0] }
 0x1d1   : > { %3918 = vmatpush.bf16.msra.mxu3 %v4786_v27  ;;  %3880 = vmatmul.bf16.vlgmr.msra.gmra.mxu0 %v7298_v20  ;;  %v3687_v56 = vadd.f32 %v3686_v45, %v3674_v49  ;;  %v6323_v27 = vld [vmem:[#allocation5 + $0x14c] sm:$0xf]  ;;  %v6082_v17 = vor.u32 %v6713_v55, %v6081_v54  ;;  %v5266_v11 = vor.u32 %v6509_v16, %v5265_v62  ;;  %v4403_v49 = vld [vmem:[#allocation5 + $0x58] sm:$0xf0] }
 0x1d2   : > { %3924 = vmatpush.bf16.msrb.mxu0 %v5506_v57  ;;  %3893 = vmatmul.bf16.vlgmr.msra.gmra.mxu1 %v7307_v34  ;;  %v4547_v57 = vld [vmem:[#allocation5 + $0x178] sm:$0xf0]  ;;  %v4454_v45 = vor.u32 %v6299_v31, %v4451_v32  ;;  %v6659_v55 = vld [vmem:[#allocation5 + $0xbcc] sm:$0xf] }
 0x1d3   : > { %3937 = vmatpush.bf16.msrb.mxu1 %v5890_v58  ;;  %3906 = vmatmul.bf16.vlgmr.msra.gmra.mxu2 %v7296_v19  ;;  %v5314_v58 = vor.u32 %v6521_v51, %v5313_v8  ;;  %v4550_v1 = vor.u32 %v6323_v27, %v4547_v57  ;;  %v6467_v8 = vld [vmem:[#allocation5 + $0x5cc] sm:$0xf]  ;;  %v5123_v51 = vld [vmem:[#allocation5 + $0x5f8] sm:$0xf0]  ;;  %v5554_v27 = vor.u32 %v6581_v41, %v5553_v39 }
 0x1d4   : > { %3950 = vmatpush.bf16.msrb.mxu2 %v6274_v60  ;;  %3919 = vmatmul.bf16.vlgmr.msra.gmra.mxu3 %v7300_v22  ;;  %v5698_v60 = vor.u32 %v6617_v53, %v5697_v12  ;;  %v6563_v12 = vld [vmem:[#allocation5 + $0x8cc] sm:$0xf]  ;;  %v5507_v54 = vld [vmem:[#allocation5 + $0x8f8] sm:$0xf0] }
 0x1d5   : > { %3963 = vmatpush.bf16.msrb.mxu3 %v4742_v63  ;;  %v5649_v63 = vld [vmem:[#allocation5 + $0x9e8] sm:$0xf]  ;;  %v5510_v62 = vor.u32 %v6563_v12, %v5507_v54  ;;  %v5795_v31 = vld [vmem:[#allocation5 + $0xb38] sm:$0xf0]  ;;  %v6731_v32 = vld [vmem:[#allocation5 + $0xe0c] sm:$0xf] }
 0x1d6   : > { %3925 = vmatpush.bf16.msrb.mxu0 %v5458_v7  ;;  %v3699_v61 = vpop.f32.mrf.mxu2  ;;  %v6311_v7 = vld [vmem:[#allocation5 + $0xec] sm:$0xf]  ;;  %v3675_v13 = vpop.f32.mrf.mxu0  ;;  %v4979_v39 = vld [vmem:[#allocation5 + $0x4d8] sm:$0xf0] }
 0x1d7   : > { %3938 = vmatpush.bf16.msrb.mxu1 %v5842_v9  ;;  %v7405_v59 = vadd.f32 %v3699_v61, %v3687_v56  ;;  %v4499_v9 = vld [vmem:[#allocation5 + $0x118] sm:$0xf0]  ;;  %v3688_v15 = vpop.f32.mrf.mxu1  ;;  %v5126_v61 = vor.u32 %v6467_v8, %v5123_v51  ;;  %v6527_v41 = vld [vmem:[#allocation5 + $0x7ac] sm:$0xf] }
 0x1d8   : > { %3951 = vmatpush.bf16.msrb.mxu2 %v6226_v10  ;;  %v7407_v10 = vpop.f32.mrf.mxu3  ;;  %v4502_v26 = vor.u32 %v6311_v7, %v4499_v9  ;;  %v5891_v56 = vld [vmem:[#allocation5 + $0xbf8] sm:$0xf0]  ;;  %v6647_v7 = vld [vmem:[#allocation5 + $0xb6c] sm:$0xf] }
 0x1d9   : > { %3964 = vmatpush.bf16.msrb.mxu3 %v4694_v44  ;;  %v5650_v44 = vor.u32 %v6605_v2, %v5649_v63  ;;  %v5894_v16 = vor.u32 %v6659_v55, %v5891_v56  ;;  %v6455_v63 = vld [vmem:[#allocation5 + $0x56c] sm:$0xf]  ;;  %v5843_v9 = vld [vmem:[#allocation5 + $0xb98] sm:$0xf0] }
 0x1da   : > { %3926 = vmatpush.bf16.msrb.mxu0 %v5410_v28  ;;  %v6593_v28 = vld [vmem:[#allocation5 + $0x9b4] sm:$0xf0]  ;;  %v6551_v2 = vld [vmem:[#allocation5 + $0x86c] sm:$0xf]  ;;  %v6227_v13 = vld [vmem:[#allocation5 + $0xe98] sm:$0xf0]  ;;  %v5846_v23 = vor.u32 %v6647_v7, %v5843_v9 }
 0x1db   : > { %3939 = vmatpush.bf16.msrb.mxu1 %v5794_v29  ;;  %v5985_v29 = vld [vmem:[#allocation5 + $0xc88] sm:$0xf]  ;;  %v5602_v37 = vor.u32 %v6593_v28, %v5601_v25  ;;  %v5027_v25 = vld [vmem:[#allocation5 + $0x538] sm:$0xf0]  ;;  %v6515_v55 = vld [vmem:[#allocation5 + $0x74c] sm:$0xf] }
 0x1dc   : > { %3952 = vmatpush.bf16.msrb.mxu2 %v6178_v30  ;;  %v6689_v30 = vld [vmem:[#allocation5 + $0xcb4] sm:$0xf0]  ;;  %v4931_v54 = vld [vmem:[#allocation5 + $0x478] sm:$0xf0] }
 0x1dd   : > { %3965 = vmatpush.bf16.msrb.mxu3 %v4646_v35  ;;  %v5169_v35 = vld [vmem:[#allocation5 + $0x628] sm:$0xf]  ;;  %v5986_v38 = vor.u32 %v6689_v30, %v5985_v29  ;;  %v5411_v29 = vld [vmem:[#allocation5 + $0x838] sm:$0xf0]  ;;  %v6635_v30 = vld [vmem:[#allocation5 + $0xb0c] sm:$0xf] }
 0x1de   : > { %3927 = vmatpush.bf16.msrb.mxu0 %v5362_v42  ;;  %v5937_v42 = vld [vmem:[#allocation5 + $0xc28] sm:$0xf]  ;;  %v3701_v43 = vpop.f32.mrf.mxu2  ;;  %v5170_v53 = vor.u32 %v6485_v36, %v5169_v35 }
 0x1df   : > { %3940 = vmatpush.bf16.msrb.mxu1 %v5746_v46  ;;  %v6677_v46 = vld [vmem:[#allocation5 + $0xc54] sm:$0xf0]  ;;  %v5363_v43 = vld [vmem:[#allocation5 + $0x7d8] sm:$0xf0] }
 0x1e0   : > { %3953 = vmatpush.bf16.msrb.mxu2 %v6130_v47  ;;  %v6287_v47 = vld [vmem:[#allocation5 + $0x2c] sm:$0xf]  ;;  %v5938_v57 = vor.u32 %v6677_v46, %v5937_v42  ;;  %v5747_v46 = vld [vmem:[#allocation5 + $0xad8] sm:$0xf0] }
 0x1e1   : > { %3966 = vmatpush.bf16.msrb.mxu3 %v4598_v14  ;;  %v3714_v14 = vpop.f32.mrf.mxu3 }
 0x1e2   : > { %3928 = vmatpush.bf16.msrb.mxu0 %v5314_v58  ;;  %v6755_v58 = vld [vmem:[#allocation5 + $0xecc] sm:$0xf] }
 0x1e3   : > { %3941 = vmatpush.bf16.msrb.mxu1 %v5698_v60  ;;  %v6275_v60 = vld [vmem:[#allocation5 + $0xef8] sm:$0xf0] }
 0x1e4   : > { %3954 = vmatpush.bf16.msrb.mxu2 %v6082_v17  ;;  %v4406_v17 = vor.u32 %v6287_v47, %v4403_v49  ;;  %v6278_v5 = vor.u32 %v6755_v58, %v6275_v60  ;;  %v6719_v47 = vld [vmem:[#allocation5 + $0xdac] sm:$0xf]  ;;  %v6131_v49 = vld [vmem:[#allocation5 + $0xdd8] sm:$0xf0] }
 0x1e5   : > { %3967 = vmatpush.bf16.msrb.mxu3 %v4550_v1  ;;  %v5075_v1 = vld [vmem:[#allocation5 + $0x598] sm:$0xf0]  ;;  %v6134_v56 = vor.u32 %v6719_v47, %v6131_v49  ;;  %v6479_v47 = vld [vmem:[#allocation5 + $0x62c] sm:$0xf] }
 0x1e6   : > { %3929 = vmatpush.bf16.msrb.mxu0 %v5266_v11  ;;  %v6743_v11 = vld [vmem:[#allocation5 + $0xe6c] sm:$0xf]  ;;  %v5078_v15 = vor.u32 %v6455_v63, %v5075_v1  ;;  %v5699_v58 = vld [vmem:[#allocation5 + $0xa78] sm:$0xf0] }
 0x1e7   : > { %3942 = vmatpush.bf16.msrb.mxu1 %v5650_v44  ;;  %v825_v44 = vunpack.c.h.bf16 %v7393_v40  ;;  %v6230_v28 = vor.u32 %v6743_v11, %v6227_v13  ;;  %v5030_v40 = vor.u32 %v6443_v24, %v5027_v25  ;;  %v5267_v13 = vld [vmem:[#allocation5 + $0x718] sm:$0xf0] }
 0x1e8   : > { %3955 = vmatpush.bf16.msrb.mxu2 %v6034_v21  ;;  %v5462_v21 = vor.u32 %v6551_v2, %v5459_v6  ;;  %v6407_v2 = vld [vmem:[#allocation5 + $0x3ec] sm:$0xf] }
 0x1e9   : > { %3968 = vmatpush.bf16.msrb.mxu3 %v4502_v26  ;;  %v6539_v26 = vld [vmem:[#allocation5 + $0x80c] sm:$0xf]  ;;  %v3713_v35 = vadd.f32 %v7407_v10, %v825_v44  ;;  %v5651_v44 = vld [vmem:[#allocation5 + $0xa18] sm:$0xf0] }
 0x1ea   : > { %3930 = vmatpush.bf16.msrb.mxu0 %v5218_v33  ;;  %v6179_v33 = vld [vmem:[#allocation5 + $0xe38] sm:$0xf0]  ;;  %v5414_v36 = vor.u32 %v6539_v26, %v5411_v29  ;;  %v6503_v6 = vld [vmem:[#allocation5 + $0x6ec] sm:$0xf] }
 0x1eb   : > { %3943 = vmatpush.bf16.msrb.mxu1 %v5602_v37  ;;  %v5798_v37 = vor.u32 %v6635_v30, %v5795_v31  ;;  %v6182_v42 = vor.u32 %v6731_v32, %v6179_v33  ;;  %v6395_v30 = vld [vmem:[#allocation5 + $0x38c] sm:$0xf]  ;;  %v4835_v31 = vld [vmem:[#allocation5 + $0x3b8] sm:$0xf0] }
 0x1ec   : > { %3956 = vmatpush.bf16.msrb.mxu2 %v5986_v38  ;;  %v6431_v38 = vld [vmem:[#allocation5 + $0x4ac] sm:$0xf] }
 0x1ed   : > { %3969 = vmatpush.bf16.msrb.mxu3 %v4454_v45  ;;  %v6623_v45 = vld [vmem:[#allocation5 + $0xaac] sm:$0xf]  ;;  %v4982_v8 = vor.u32 %v6431_v38, %v4979_v39  ;;  %v5987_v39 = vld [vmem:[#allocation5 + $0xcb8] sm:$0xf0] }
 0x1ee   : > { %3931 = vmatpush.bf16.msrb.mxu0 %v5170_v53  ;;  %v3725_v51 = vpop.f32.mrf.mxu0  ;;  %v5750_v10 = vor.u32 %v6623_v45, %v5747_v46  ;;  %v6419_v53 = vld [vmem:[#allocation5 + $0x44c] sm:$0xf]  ;;  %v4787_v46 = vld [vmem:[#allocation5 + $0x358] sm:$0xf0] }
 0x1ef   : > { %3944 = vmatpush.bf16.msrb.mxu1 %v5554_v27  ;;  %v3726_v12 = vadd.f32 %v3725_v51, %v3713_v35  ;;  %v3738_v14 = vpop.f32.mrf.mxu1  ;;  %v5315_v27 = vld [vmem:[#allocation5 + $0x778] sm:$0xf0]  ;;  %v6491_v32 = vld [vmem:[#allocation5 + $0x68c] sm:$0xf] }
 0x1f0   : > { %3957 = vmatpush.bf16.msrb.mxu2 %v5938_v57  ;;  %v6611_v57 = vld [vmem:[#allocation5 + $0xa4c] sm:$0xf]  ;;  %v5219_v35 = vld [vmem:[#allocation5 + $0x6b8] sm:$0xf0] }
 0x1f1   : > { %3970 = vmatpush.bf16.msrb.mxu3 %v4406_v17  ;;  %3932 = vmatmul.bf16.vlgmr.msrb.gmra.mxu0 %v7294_v18  ;;  %v3739_v60 = vadd.f32 %v3738_v14, %v3726_v12  ;;  %v6707_v17 = vld [vmem:[#allocation5 + $0xd4c] sm:$0xf]  ;;  %v5702_v63 = vor.u32 %v6611_v57, %v5699_v58  ;;  %v5171_v51 = vld [vmem:[#allocation5 + $0x658] sm:$0xf0]  ;;  %v816_v57 = vld [vmem:[#allocation7 + $0x20] sm:$0xff] }
 0x1f2   : > { %3976 = vmatpush.bf16.msra.mxu0 %v5126_v61  ;;  %3945 = vmatmul.bf16.vlgmr.msrb.gmra.mxu1 %v7298_v20  ;;  %v6083_v61 = vld [vmem:[#allocation5 + $0xd78] sm:$0xf0]  ;;  %v6683_v38 = vld [vmem:[#allocation5 + $0xc8c] sm:$0xf]  ;;  %v826_v58 = vunpack.c.l.bf16 %v816_v57 }
 0x1f3   : > { %3989 = vmatpush.bf16.msra.mxu1 %v5510_v62  ;;  %3958 = vmatmul.bf16.vlgmr.msrb.gmra.mxu2 %v7307_v34  ;;  %v4934_v62 = vor.u32 %v6419_v53, %v4931_v54  ;;  %v6086_v7 = vor.u32 %v6707_v17, %v6083_v61  ;;  %v6383_v45 = vld [vmem:[#allocation5 + $0x32c] sm:$0xf]  ;;  %v5939_v53 = vld [vmem:[#allocation5 + $0xc58] sm:$0xf0] }
 0x1f4   : > { %4002 = vmatpush.bf16.msra.mxu2 %v5894_v16  ;;  %3971 = vmatmul.bf16.vlgmr.msrb.gmra.mxu3 %v7296_v19  ;;  %v5366_v19 = vor.u32 %v6527_v41, %v5363_v43  ;;  %v5318_v16 = vor.u32 %v6515_v55, %v5315_v27  ;;  %v4838_v41 = vor.u32 %v6395_v30, %v4835_v31  ;;  %v6671_v14 = vld [vmem:[#allocation5 + $0xc2c] sm:$0xf] }
 0x1f5   : > { %4015 = vmatpush.bf16.msra.mxu3 %v6278_v5  ;;  %v4883_v5 = vld [vmem:[#allocation5 + $0x418] sm:$0xf0]  ;;  %v4790_v54 = vor.u32 %v6383_v45, %v4787_v46  ;;  %v5174_v55 = vor.u32 %v6479_v47, %v5171_v51  ;;  %v5942_v27 = vor.u32 %v6671_v14, %v5939_v53  ;;  %v817_v45 = vld [vmem:[#allocation7 + $0x28] sm:$0xff]  ;;  %v4028_v51 = vadd.f32 %v7347_v52, %v7336_v50 }
 0x1f6   : > { %3977 = vmatpush.bf16.msra.mxu0 %v5078_v15  ;;  %v3751_v1 = vpop.f32.mrf.mxu2  ;;  %v6599_v15 = vld [vmem:[#allocation5 + $0x9ec] sm:$0xf]  ;;  %v4886_v25 = vor.u32 %v6407_v2, %v4883_v5  ;;  %v3727_v26 = vpop.f32.mrf.mxu0  ;;  %v828_v47 = vunpack.c.l.bf16 %v817_v45  ;;  %v829_v14 = vunpack.c.h.bf16 %v817_v45 }
 0x1f7   : > { %3990 = vmatpush.bf16.msra.mxu1 %v5462_v21  ;;  %v3752_v9 = vadd.f32 %v3751_v1, %v3739_v60  ;;  %v3764_v11 = vpop.f32.mrf.mxu3  ;;  %v6695_v21 = vld [vmem:[#allocation5 + $0xcec] sm:$0xf]  ;;  %v5654_v29 = vor.u32 %v6599_v15, %v5651_v44  ;;  %v3740_v33 = vpop.f32.mrf.mxu1 }
 0x1f8   : > { %4003 = vmatpush.bf16.msra.mxu2 %v5846_v23  ;;  %v6035_v23 = vld [vmem:[#allocation5 + $0xd18] sm:$0xf0] }
 0x1f9   : > { %4016 = vmatpush.bf16.msra.mxu3 %v6230_v28  ;;  %v7415_v24 = vadd.f32 %v3764_v11, %v3752_v9  ;;  %v5270_v28 = vor.u32 %v6503_v6, %v5267_v13  ;;  %v827_v11 = vunpack.c.h.bf16 %v816_v57 }
 0x1fa   : > { %3978 = vmatpush.bf16.msra.mxu0 %v5030_v40  ;;  %v6038_v40 = vor.u32 %v6695_v21, %v6035_v23 }
 0x1fb   : > { %3991 = vmatpush.bf16.msra.mxu1 %v5414_v36  ;;  %v6587_v36 = vld [vmem:[#allocation5 + $0x98c] sm:$0xf] }
 0x1fc   : > { %4004 = vmatpush.bf16.msra.mxu2 %v5798_v37  ;;  %v5603_v37 = vld [vmem:[#allocation5 + $0x9b8] sm:$0xf0] }
 0x1fd   : > { %4017 = vmatpush.bf16.msra.mxu3 %v6182_v42  ;;  %v5222_v42 = vor.u32 %v6491_v32, %v5219_v35  ;;  %v5606_v43 = vor.u32 %v6587_v36, %v5603_v37 }
 0x1fe   : > { %3979 = vmatpush.bf16.msra.mxu0 %v4982_v8  ;;  %v3753_v49 = vpop.f32.mrf.mxu2  ;;  %v5990_v8 = vor.u32 %v6683_v38, %v5987_v39 }
 0x1ff   : > { %3992 = vmatpush.bf16.msra.mxu1 %v5366_v19  ;;  %v6575_v19 = vld [vmem:[#allocation5 + $0x92c] sm:$0xf]  ;;  %v3766_v12 = vpop.f32.mrf.mxu3 }
 0x200   : > { %4005 = vmatpush.bf16.msra.mxu2 %v5750_v10  ;;  %v5555_v10 = vld [vmem:[#allocation5 + $0x958] sm:$0xf0] }
 0x201   : > { %4018 = vmatpush.bf16.msra.mxu3 %v6134_v56  ;;  %v5558_v56 = vor.u32 %v6575_v19, %v5555_v10  ;;  %v4029_v19 = vadd.f32 %v4028_v51, %v7357_v0 }
 0x202   : > { %3980 = vmatpush.bf16.msra.mxu0 %v4934_v62 }
 0x203   : > { %3993 = vmatpush.bf16.msra.mxu1 %v5318_v16  ;;  %v4030_v12 = vadd.f32 %v4029_v19, %v7367_v3 }
 0x204   : > { %4006 = vmatpush.bf16.msra.mxu2 %v5702_v63 }
 0x205   : > { %4019 = vmatpush.bf16.msra.mxu3 %v6086_v7  ;;  %v4031_v53 = vadd.f32 %v4030_v12, %v7384_v4 }
 0x206   : > { %3981 = vmatpush.bf16.msra.mxu0 %v4886_v25 }
 0x207   : > { %3994 = vmatpush.bf16.msra.mxu1 %v5270_v28 }
 0x208   : > { %4007 = vmatpush.bf16.msra.mxu2 %v5654_v29 }
 0x209   : > { %4020 = vmatpush.bf16.msra.mxu3 %v6038_v40 }
 0x20a   : > { %3982 = vmatpush.bf16.msra.mxu0 %v4838_v41 }
 0x20b   : > { %3995 = vmatpush.bf16.msra.mxu1 %v5222_v42 }
 0x20c   : > { %4008 = vmatpush.bf16.msra.mxu2 %v5606_v43 }
 0x20d   : > { %4021 = vmatpush.bf16.msra.mxu3 %v5990_v8 }
 0x20e   : > { %3983 = vmatpush.bf16.msra.mxu0 %v4790_v54  ;;  %v3777_v60 = vpop.f32.mrf.mxu0 }
 0x20f   : > { %3996 = vmatpush.bf16.msra.mxu1 %v5174_v55  ;;  %v3778_v17 = vadd.f32 %v3777_v60, %v826_v58  ;;  %v3790_v61 = vpop.f32.mrf.mxu1  ;;  %v4032_v55 = vadd.f32 %v4031_v53, %v7395_v48 }
 0x210   : > { %4009 = vmatpush.bf16.msra.mxu2 %v5558_v56 }
 0x211   : > { %4022 = vmatpush.bf16.msra.mxu3 %v5942_v27  ;;  %3984 = vmatmul.bf16.vlgmr.msra.gmra.mxu0 %v7300_v22  ;;  %v3791_v62 = vadd.f32 %v3790_v61, %v3778_v17  ;;  %v4033_v60 = vadd.f32 %v4032_v55, %v7405_v59 }
 0x212   : > { %3997 = vmatmul.bf16.vlgmr.msra.gmra.mxu1 %v7294_v18 }
 0x213   : > { %4010 = vmatmul.bf16.vlgmr.msra.gmra.mxu2 %v7298_v20 }
 0x214   : > { %4023 = vmatmul.bf16.vlgmr.msra.gmra.mxu3 %v7307_v34 }
 0x216   : > { %v3803_v16 = vpop.f32.mrf.mxu2  ;;  %v3779_v1 = vpop.f32.mrf.mxu0 }
 0x217   : > { %v3816_v63 = vpop.f32.mrf.mxu3  ;;  %v3804_v2 = vadd.f32 %v3803_v16, %v3791_v62  ;;  %v3792_v6 = vpop.f32.mrf.mxu1  ;;  %v4034_v62 = vadd.f32 %v4033_v60, %v7415_v24 }
 0x219   : > { %v3817_v5 = vadd.f32 %v3816_v63, %v3804_v2 }
 0x21e   : > { %v3805_v7 = vpop.f32.mrf.mxu2 }
 0x21f   : > { %v3818_v22 = vpop.f32.mrf.mxu3 }
 0x22e   : > { %v3829_v9 = vpop.f32.mrf.mxu0 }
 0x22f   : > { %v7421_v18 = vadd.f32 %v3829_v9, %v3817_v5  ;;  %v3842_v20 = vpop.f32.mrf.mxu1 }
 0x230   : > { %v3843_v13 = vadd.f32 %v3842_v20, %v827_v11 }
 0x231   : > { %v4035_v63 = vadd.f32 %v4034_v62, %v7421_v18 }
 0x236   : > { %v3855_v34 = vpop.f32.mrf.mxu2  ;;  %v3831_v15 = vpop.f32.mrf.mxu0 }
 0x237   : > { %v3856_v44 = vadd.f32 %v3855_v34, %v3843_v13  ;;  %v3868_v21 = vpop.f32.mrf.mxu3  ;;  %v3844_v23 = vpop.f32.mrf.mxu1 }
 0x239   : > { %v3869_v25 = vadd.f32 %v3868_v21, %v3856_v44  ;;  %v7125_v21 = vmov 1536.0  }
 0x23a   : > { %6873 = vrcp.f32 %v7125_v21  ;;  %v4150_v21 = vld [vmem:[#allocation10] sm:$0xff] }
 0x23e   : > { %v3857_v26 = vpop.f32.mrf.mxu2 }
 0x23f   : > { %v3870_v28 = vpop.f32.mrf.mxu3 }
 0x240   : > { %v6874_v23 = vpop.eup %6873 }
 0x241   : > { %vm4046_vm0 = vweird.f32 %v6874_v23 }
 0x24e   : > { %v3881_v29 = vpop.f32.mrf.mxu0 }
 0x24f   : > { %v3894_v30 = vpop.f32.mrf.mxu1  ;;  %v3882_v56 = vadd.f32 %v3881_v29, %v3869_v25  ;;  %v4042_v25 = vmul.f32 1536.0, %v6874_v23 }
 0x251   : > { %v3895_v16 = vadd.f32 %v3894_v30, %v3882_v56  ;;  %v4043_v26 = vsub.f32 1.0, %v4042_v25 }
 0x253   : > { %v4036_v6 = vadd.f32 %v4035_v63, %v3895_v16  ;;  %v4044_v28 = vmul.f32 %v6874_v23, %v4043_v26  ;;  %v4110_v63 = vld [vmem:[#allocation8] sm:$0xff] }
 0x255   : > { %v4045_v29 = vadd.f32 %v6874_v23, %v4044_v28 }
 0x256   : > { %v3907_v31 = vpop.f32.mrf.mxu2  ;;  %v3883_v32 = vpop.f32.mrf.mxu0 }
 0x257   : > { %v3920_v33 = vpop.f32.mrf.mxu3  ;;  %v3896_v40 = vpop.f32.mrf.mxu1  ;;  %v3908_v8 = vadd.f32 %v3907_v31, %v828_v47  ;;  %v4047_v30 = vsel %vm4046_vm0, %v6874_v23, %v4045_v29 }
 0x259   : > { %v3921_v10 = vadd.f32 %v3920_v33, %v3908_v8 }
 0x25e   : > { %v3909_v35 = vpop.f32.mrf.mxu2 }
 0x25f   : > { %v3922_v36 = vpop.f32.mrf.mxu3 }
 0x26e   : > { %v3933_v37 = vpop.f32.mrf.mxu0 }
 0x26f   : > { %v3946_v38 = vpop.f32.mrf.mxu1  ;;  %v3934_v54 = vadd.f32 %v3933_v37, %v3921_v10 }
 0x271   : > { %v3947_v17 = vadd.f32 %v3946_v38, %v3934_v54 }
 0x276   : > { %v3959_v39 = vpop.f32.mrf.mxu2  ;;  %v3935_v42 = vpop.f32.mrf.mxu0 }
 0x277   : > { %v3972_v41 = vpop.f32.mrf.mxu3  ;;  %v3948_v43 = vpop.f32.mrf.mxu1  ;;  %v3960_v1 = vadd.f32 %v3959_v39, %v3947_v17 }
 0x278   : > { %v3973_v27 = vadd.f32 %v3972_v41, %v829_v14 }
 0x279   : > { %v4037_v13 = vadd.f32 %v4036_v6, %v3960_v1  ;;  %v4114_v6 = vperm.slane %v4110_v63, 0 }
 0x27e   : > { %v3961_v46 = vpop.f32.mrf.mxu2 }
 0x27f   : > { %v3974_v49 = vpop.f32.mrf.mxu3 }
 0x28e   : > { %v3985_v57 = vpop.f32.mrf.mxu0 }
 0x28f   : > { %v3998_v58 = vpop.f32.mrf.mxu1  ;;  %v3986_v61 = vadd.f32 %v3985_v57, %v3973_v27 }
 0x291   : > { %v3999_v2 = vadd.f32 %v3998_v58, %v3986_v61 }
 0x296   : > { %v4011_v5 = vpop.f32.mrf.mxu2  ;;  %v3987_v9 = vpop.f32.mrf.mxu0 }
 0x297   : > { %v4012_v7 = vadd.f32 %v4011_v5, %v3999_v2  ;;  %v4024_v22 = vpop.f32.mrf.mxu3  ;;  %v4000_v11 = vpop.f32.mrf.mxu1  ;;  %v7485_v2 = vld [vmem:[#allocation8 + $0x8] sm:$0xf]  ;;  %v4117_v9 = vperm.slane %v4110_v63, 3 }
 0x298   : > { %v4118_v11 = vperm.slane %v4110_v63, 4  ;;  %v4123_v23 = vperm.slane %v7485_v2, 1  ;;  %v4124_v25 = vperm.slane %v7485_v2, 2  ;;  %v4125_v26 = vperm.slane %v7485_v2, 3 }
 0x299   : > { %v4025_v20 = vadd.f32 %v4024_v22, %v4012_v7  ;;  %v4115_v7 = vperm.slane %v4110_v63, 1  ;;  %v4116_v22 = vperm.slane %v4110_v63, 2 }
 0x29b   : > { %v4038_v34 = vadd.f32 %v4037_v13, %v4025_v20  ;;  %v4119_v13 = vperm.slane %v4110_v63, 5 }
 0x29d   : > { %4039 = vadd.xlane.f32.xlu0 %v4038_v34  ;;  %v4120_v34 = vperm.slane %v4110_v63, 6 }
 0x29e   : > { %v4013_v15 = vpop.f32.mrf.mxu2 }
 0x29f   : > { %v4026_v44 = vpop.f32.mrf.mxu3  ;;  %v4121_v15 = vperm.slane %v4110_v63, 7 }
 0x2a0   : > { %v4122_v44 = vperm.slane %v7485_v2, 0 }
 0x310   : > { %v4040_v31 = vpop.xlane.xlu0 %4039 }
 0x311   : > { %v4048_v32 = vmul.f32 %v4047_v30, %v4040_v31 }
 0x313   : > { %v7433_v33 = vsub.f32 %v7336_v50, %v4048_v32  ;;  %v7436_v40 = vsub.f32 %v7347_v52, %v4048_v32  ;;  %v7439_v35 = vsub.f32 %v7357_v0, %v4048_v32  ;;  %v7446_v38 = vsub.f32 %v7367_v3, %v4048_v32 }
 0x314   : > { %v7449_v39 = vsub.f32 %v7384_v4, %v4048_v32  ;;  %v7454_v41 = vsub.f32 %v7395_v48, %v4048_v32  ;;  %v7459_v43 = vsub.f32 %v7405_v59, %v4048_v32  ;;  %v4056_v4 = vsub.f32 %v7415_v24, %v4048_v32 }
 0x315   : > { %v4061_v36 = vmul.f32 %v7433_v33, %v7433_v33  ;;  %v4062_v37 = vmul.f32 %v7436_v40, %v7436_v40  ;;  %v4063_v50 = vmul.f32 %v7439_v35, %v7439_v35  ;;  %v4064_v0 = vmul.f32 %v7446_v38, %v7446_v38 }
 0x316   : > { %v4065_v3 = vmul.f32 %v7449_v39, %v7449_v39  ;;  %v4066_v46 = vmul.f32 %v7454_v41, %v7454_v41  ;;  %v7467_v48 = vsub.f32 %v7421_v18, %v4048_v32  ;;  %v4067_v49 = vmul.f32 %v7459_v43, %v7459_v43 }
 0x317   : > { %v4073_v52 = vadd.f32 %v4062_v37, %v4061_v36  ;;  %v7471_v51 = vsub.f32 %v3895_v16, %v4048_v32  ;;  %v4068_v59 = vmul.f32 %v4056_v4, %v4056_v4  ;;  %v7473_v10 = vsub.f32 %v3960_v1, %v4048_v32 }
 0x318   : > { %v4069_v24 = vmul.f32 %v7467_v48, %v7467_v48  ;;  %v7477_v14 = vsub.f32 %v4025_v20, %v4048_v32  ;;  %v4154_v36 = vperm.slane %v4150_v21, 0  ;;  %v4155_v37 = vperm.slane %v4150_v21, 1 }
 0x319   : > { %v4074_v42 = vadd.f32 %v4073_v52, %v4063_v50  ;;  %v4070_v18 = vmul.f32 %v7471_v51, %v7471_v51  ;;  %v4071_v54 = vmul.f32 %v7473_v10, %v7473_v10 }
 0x31a   : > { %v4072_v56 = vmul.f32 %v7477_v14, %v7477_v14 }
 0x31b   : > { %v4075_v45 = vadd.f32 %v4074_v42, %v4064_v0  ;;  %v4156_v0 = vperm.slane %v4150_v21, 2  ;;  %v4157_v42 = vperm.slane %v4150_v21, 3 }
 0x31d   : > { %v4076_v47 = vadd.f32 %v4075_v45, %v4065_v3 }
 0x31f   : > { %v4077_v8 = vadd.f32 %v4076_v47, %v4066_v46 }
 0x321   : > { %v4078_v19 = vadd.f32 %v4077_v8, %v4067_v49  ;;  %v4158_v49 = vperm.slane %v4150_v21, 4 }
 0x323   : > { %v4079_v12 = vadd.f32 %v4078_v19, %v4068_v59  ;;  %v4151_v59 = vld [vmem:[#allocation10 + $0x8] sm:$0xf]  ;;  %v4160_v19 = vperm.slane %v4150_v21, 6 }
 0x325   : > { %v4080_v53 = vadd.f32 %v4079_v12, %v4069_v24 }
 0x327   : > { %v4081_v55 = vadd.f32 %v4080_v53, %v4070_v18  ;;  %v4161_v53 = vperm.slane %v4150_v21, 7 }
 0x329   : > { %v4082_v27 = vadd.f32 %v4081_v55, %v4071_v54 }
 0x32b   : > { %v4083_v57 = vadd.f32 %v4082_v27, %v4072_v56 }
 0x32d   : > { %4084 = vadd.xlane.f32.xlu0 %v4083_v57 }
 0x3a0   : > { %v4085_v58 = vpop.xlane.xlu0 %4084 }
 0x3a1   : > { %v4086_v60 = vmul.f32 %v4085_v58, %v4047_v30 }
 0x3a3   : > { %v4087_v17 = vadd.f32 1e-06, %v4086_v60  ;;  %v4164_v60 = vperm.slane %v4151_v59, 2 }
 0x3a5   : > { %6875 = vrsqrt.f32 %v4087_v17  ;;  %vm4094_vm2 = vweird.f32 %v4087_v17 }
 0x3ab   : > { %v6876_v61 = vpop.eup %6875 }
 0x3ac   : > { %v4089_v62 = vmul.f32 %v6876_v61, %v4087_v17  ;;  %vm4095_vm1 = vweird.f32 %v6876_v61 }
 0x3ad   : > { %vm4096_vm3 = vmor %vm4094_vm2, %vm4095_vm1 }
 0x3ae   : > { %v4090_v16 = vmul.f32 %v6876_v61, %v4089_v62  ;;  %v4165_v62 = vperm.slane %v4151_v59, 3 }
 0x3b0   : > { %v4091_v1 = vmul.f32 0.5, %v4090_v16 }
 0x3b2   : > { %v4092_v5 = vsub.f32 1.5, %v4091_v1 }
 0x3b4   : > { %v4093_v20 = vmul.f32 %v6876_v61, %v4092_v5 }
 0x3b6   : > { %v4097_v28 = vsel %vm4096_vm3, %v6876_v61, %v4093_v20 }
 0x3b7   : > { %v4098_v29 = vmul.f32 %v4097_v28, %v7433_v33  ;;  %v4099_v30 = vmul.f32 %v4097_v28, %v7436_v40  ;;  %v4100_v31 = vmul.f32 %v4097_v28, %v7439_v35  ;;  %v4101_v32 = vmul.f32 %v4097_v28, %v7446_v38 }
 0x3b8   : > { %v4102_v50 = vmul.f32 %v4097_v28, %v7449_v39  ;;  %v4103_v52 = vmul.f32 %v4097_v28, %v7454_v41  ;;  %v4104_v3 = vmul.f32 %v4097_v28, %v7459_v43  ;;  %v4105_v45 = vmul.f32 %v4097_v28, %v4056_v4 }
 0x3b9   : > { %v4138_v46 = vmul.f32 %v4114_v6, %v4098_v29  ;;  %v4139_v33 = vmul.f32 %v4115_v7, %v4099_v30  ;;  %v4140_v47 = vmul.f32 %v4116_v22, %v4100_v31  ;;  %v4141_v40 = vmul.f32 %v4117_v9, %v4101_v32 }
 0x3ba   : > { %v4159_v35 = vperm.slane %v4150_v21, 5  ;;  %v4106_v38 = vmul.f32 %v4097_v28, %v7467_v48  ;;  %v4142_v8 = vmul.f32 %v4118_v11, %v4102_v50  ;;  %v4107_v39 = vmul.f32 %v4097_v28, %v7471_v51 }
 0x3bb   : > { %v4108_v41 = vmul.f32 %v4097_v28, %v7473_v10  ;;  %v4143_v24 = vmul.f32 %v4119_v13, %v4103_v52  ;;  %v4144_v43 = vmul.f32 %v4120_v34, %v4104_v3  ;;  %v4178_v4 = vadd.f32 %v4154_v36, %v4138_v46 }
 0x3bc   : > { %v4179_v12 = vadd.f32 %v4155_v37, %v4139_v33  ;;  %v4180_v18 = vadd.f32 %v4156_v0, %v4140_v47  ;;  %v4109_v54 = vmul.f32 %v4097_v28, %v7477_v14  ;;  %v4145_v55 = vmul.f32 %v4121_v15, %v4105_v45 }
 0x3bd   : > { %v4181_v56 = vadd.f32 %v4157_v42, %v4141_v40  ;;  %v4162_v48 = vperm.slane %v4151_v59, 0  ;;  %v4146_v27 = vmul.f32 %v4122_v44, %v4106_v38  ;;  %v4182_v57 = vadd.f32 %v4158_v49, %v4142_v8  ;;  %4190 = vst [vmem:[%s328_s14] sm:$0xff] %v4178_v4 }
 0x3be   : > { %v4163_v51 = vperm.slane %v4151_v59, 1  ;;  %v4147_v58 = vmul.f32 %v4123_v23, %v4107_v39  ;;  %v4183_v10 = vadd.f32 %v4159_v35, %v4143_v24  ;;  %4191 = vst [vmem:[%s328_s14 + $0x8] sm:$0xff] %v4179_v12  ;;  %v4148_v17 = vmul.f32 %v4124_v25, %v4108_v41 }
 0x3bf   : > { %v4184_v61 = vadd.f32 %v4160_v19, %v4144_v43  ;;  %4192 = vst [vmem:[%s328_s14 + $0x10] sm:$0xff] %v4180_v18  ;;  %v4149_v16 = vmul.f32 %v4125_v26, %v4109_v54  ;;  %v4185_v14 = vadd.f32 %v4161_v53, %v4145_v55  ;;  %v4186_v63 = vadd.f32 %v4162_v48, %v4146_v27 }
 0x3c0   : > { %4193 = vst [vmem:[%s328_s14 + $0x18] sm:$0xff] %v4181_v56  ;;  %v4187_v1 = vadd.f32 %v4163_v51, %v4147_v58  ;;  %v4188_v2 = vadd.f32 %v4164_v60, %v4148_v17 }
 0x3c1   : > { %4194 = vst [vmem:[%s328_s14 + $0x20] sm:$0xff] %v4182_v57  ;;  %v4189_v5 = vadd.f32 %v4165_v62, %v4149_v16 }
 0x3c2   : > { %4195 = vst [vmem:[%s328_s14 + $0x28] sm:$0xff] %v4183_v10 }
 0x3c3   : > { %4196 = vst [vmem:[%s328_s14 + $0x30] sm:$0xff] %v4184_v61 }
 0x3c4   : > { %4197 = vst [vmem:[%s328_s14 + $0x38] sm:$0xff] %v4185_v14 }
 0x3c5   : > { %4198 = vst [vmem:[%s328_s14 + $0x40] sm:$0xff] %v4186_v63 }
 0x3c6   : > { %4199 = vst [vmem:[%s328_s14 + $0x48] sm:$0xff] %v4187_v1 }
 0x3c7   : > { %4200 = vst [vmem:[%s328_s14 + $0x50] sm:$0xff] %v4188_v2 }
 0x3c8   : > { %4201 = vst [vmem:[%s328_s14 + $0x58] sm:$0xff] %v4189_v5 }
 0x3c9   : > { %7054 = shalt.err (!%p7051_p13)
}
 0x3ca   : > { %6785 = dma.vmem_to_hbm [thread:$0]  (%p7252_p2), %s4219_s30, 1536, %s4221_s6, %s4203_s8  }
 0x3cb PF: > { %s4232_s7 = sand.u32 1, %s7097_s18   ;;  %p6805_p0 = pnand %p4352_p6, %p7259_p5 }
 0x3cc   : > { %s4233_s29 = scalar_lea.sflag [#allocation4], %s4232_s7 }
 0x3cd   : > { %p6806_p4 = pneg %p6805_p0 }
 0x3cf   : > { %7092 = dma.done.wait (%p6806_p4), %s4233_s29, 1536  }
 0x3d0   : > { %7094 = vsyncadd (%p6806_p4), %s4233_s29, 4294965760  ;;  %s23_s23 = sadd.s32 1, %s7117_s23   ;;  %s7556_s18 = smov %s7101_s19 }
 0x3d1   : > { %p20_p7 = scmp.ge.s32.totalorder %s23_s23, 4   ;;  %s7557_s19 = smov %s7105_s20 }
 0x3d2   : > { %s7558_s20 = smov %s7257_s16  ;;  %s7559_s21 = smov %s7113_s22 }
 0x3d3   : > { %s7560_s22 = smov %s7562_s11  ;;  %22 = sbr.rel (!%p20_p7) target bundleno = 8 (0x8), region = 102 }
 0x3d8   :  { %4239 = vsyncpa [#allocation3], 1 }
 0x3d9   :  { %4241 = vsyncpa [#allocation3 + $0x1], 1 }
 0x3da   :  { %4242 = vsyncpa [#allocation6], 1 }
 0x3db   :  { %4243 = vsyncpa [#allocation9], 1 }
 0x3dc   :  { %4244 = vsyncpa [#allocation4], 1 }
 0x3dd   :  { %4246 = vsyncpa [#allocation4 + $0x1], 1 }

</bundles_post_ra>
